<compile_context>
chip_gen: v7x
topology: tpu7x:2x2x1
jax: 0.10.0
libtpu: 0.0.40
codegen_flags: <defaults>
</compile_context>

<pallas_src>
import functools

import jax
import jax.numpy as jnp
from jax.experimental import pallas as pl
from jax.experimental.pallas import tpu as pltpu


def _pad2d_zeros(a, p):
    """Zero-pad a (H, W) array by p on every side using concatenate."""
    h, w = a.shape
    zr = jnp.zeros((p, w), a.dtype)
    a = jnp.concatenate([zr, a, zr], axis=0)          # (H + 2p, W)
    zc = jnp.zeros((h + 2 * p, p), a.dtype)
    return jnp.concatenate([zc, a, zc], axis=1)       # (H + 2p, W + 2p)


def _spatial_attention_kernel(x_ref, w_ref, o_ref, *, ksize, pad):
    # x_ref : (1, C, H, W) VMEM tile (one batch element)
    # w_ref : (2 * ksize * ksize,) f32 in SMEM, layout [channel, ky, kx]
    #         channel 0 -> mean map, channel 1 -> max map
    # o_ref : (1, C, H, W)
    x = x_ref[0].astype(jnp.float32)                  # (C, H, W)
    _, H, W = x.shape

    # channel-wise mean / max (reduction over the leading, non-layout axis)
    avg = jnp.mean(x, axis=0)                         # (H, W)
    mx = jnp.max(x, axis=0)                           # (H, W)

    avg_p = _pad2d_zeros(avg, pad)                    # (H + 2p, W + 2p)
    mx_p = _pad2d_zeros(mx, pad)

    # 7x7 (or 3x3) cross-correlation, 2 input channels -> 1 output channel,
    # unrolled as scalar-weighted shifted-window accumulation in VMEM.
    acc = jnp.zeros((H, W), jnp.float32)
    kk = ksize * ksize
    for dy in range(ksize):
        for dx in range(ksize):
            w_avg = w_ref[0 * kk + dy * ksize + dx]   # scalar from SMEM
            w_max = w_ref[1 * kk + dy * ksize + dx]
            acc = acc + w_avg * avg_p[dy:dy + H, dx:dx + W]
            acc = acc + w_max * mx_p[dy:dy + H, dx:dx + W]

    att = jax.nn.sigmoid(acc)                         # (H, W)
    o_ref[0] = (x * att[None, :, :]).astype(o_ref.dtype)


def spatial_attention_pallas(x, w, *, kernel_size=7):
    """x: (N, C, H, W); w: (1, 2, k, k) conv weight (no bias). Returns (N, C, H, W)."""
    assert kernel_size in (3, 7), "kernel size must be 3 or 7"
    pad = 3 if kernel_size == 7 else 1
    N, C, H, W = x.shape
    w_flat = w.reshape(-1).astype(jnp.float32)        # (2 * k * k,)

    kern = functools.partial(_spatial_attention_kernel, ksize=kernel_size, pad=pad)
    return pl.pallas_call(
        kern,
        out_shape=jax.ShapeDtypeStruct((N, C, H, W), x.dtype),
        grid=(N,),
        in_specs=[
            pl.BlockSpec((1, C, H, W), lambda n: (n, 0, 0, 0)),
            pl.BlockSpec(memory_space=pltpu.MemorySpace.SMEM),   # conv weights
        ],
        out_specs=pl.BlockSpec((1, C, H, W), lambda n: (n, 0, 0, 0)),
        compiler_params=pltpu.CompilerParams(
            dimension_semantics=("parallel",)),       # >= 2 steps -> both v7x TCs
    )(x, w_flat)


# --------------------------- pure-JAX reference ---------------------------
def spatial_attention_ref(x, w, *, kernel_size=7):
    pad = 3 if kernel_size == 7 else 1
    avg = jnp.mean(x, axis=1, keepdims=True)
    mx = jnp.max(x, axis=1, keepdims=True)
    att_in = jnp.concatenate([avg, mx], axis=1)       # (N, 2, H, W)
    att = jax.lax.conv_general_dilated(
        att_in, w, window_strides=(1, 1), padding=[(pad, pad), (pad, pad)],
        dimension_numbers=("NCHW", "OIHW", "NCHW"))
    return x * jax.nn.sigmoid(att)


# ----------------------------------- main -----------------------------------
if __name__ == "__main__":
    key = jax.random.PRNGKey(0)
    kx, kw = jax.random.split(key)

    N, C, H, W = 2, 16, 16, 16
    K = 7
    x = jax.random.normal(kx, (N, C, H, W), jnp.float32)
    w = jax.random.normal(kw, (1, 2, K, K), jnp.float32) / jnp.sqrt(2.0 * K * K)

    fn = jax.jit(functools.partial(spatial_attention_pallas, kernel_size=K))
    out = jax.block_until_ready(fn(x, w))

    ref = spatial_attention_ref(x, w, kernel_size=K)
    assert out.shape == ref.shape == (N, C, H, W), (out.shape, ref.shape)
    max_err = float(jnp.max(jnp.abs(out - ref)))
    assert max_err < 1e-3, f"max abs error too large: {max_err}"

    print("KERNEL_OK")
</pallas_src>

<mosaic_0001>
module attributes {stable_mosaic.version = 11 : i64} {
  func.func @_spatial_attention_kernel(%arg0: i32, %arg1: memref<1x16x16x16xf32, #tpu.memory_space<vmem>>, %arg2: memref<98xf32, #tpu.memory_space<smem>>, %arg3: memref<1x16x16x16xf32, #tpu.memory_space<vmem>>) attributes {dimension_semantics = [#tpu.dimension_semantics<parallel>], iteration_bounds = array<i64: 2>, scalar_prefetch = 0 : i64, scratch_operands = 0 : i64, tpu.core_type = #tpu.core_type<tc>, window_params = [{transform_indices = @transform_0, window_bounds = array<i64: 1, 16, 16, 16>}, {transform_indices = @transform_1, window_bounds = array<i64: 98>}, {transform_indices = @transform_2, window_bounds = array<i64: 1, 16, 16, 16>}]} {
    %c0 = arith.constant 0 : index
    %c0_0 = arith.constant 0 : index
    %c0_1 = arith.constant 0 : index
    %c0_2 = arith.constant 0 : index
    %0 = vector.load %arg1[%c0, %c0_0, %c0_1, %c0_2] : memref<1x16x16x16xf32, #tpu.memory_space<vmem>>, vector<1x16x16x16xf32>
    %1 = vector.shape_cast %0 : vector<1x16x16x16xf32> to vector<16x16x16xf32>
    %cst = arith.constant dense<0.000000e+00> : vector<16x16xf32>
    %2 = vector.multi_reduction <add>, %1, %cst [0] : vector<16x16x16xf32> to vector<16x16xf32>
    %cst_3 = arith.constant 1.600000e+01 : f32
    %3 = vector.broadcast %cst_3 : f32 to vector<16x16xf32>
    %4 = arith.divf %2, %3 : vector<16x16xf32>
    %cst_4 = arith.constant dense<0xFF800000> : vector<16x16xf32>
    %5 = vector.multi_reduction <maximumf>, %1, %cst_4 [0] : vector<16x16x16xf32> to vector<16x16xf32>
    %cst_5 = arith.constant 0.000000e+00 : f32
    %6 = vector.broadcast %cst_5 : f32 to vector<3x16xf32>
    %7 = tpu.concatenate %6, %4, %6 in 0 : vector<3x16xf32>, vector<16x16xf32>, vector<3x16xf32> -> vector<22x16xf32>
    %cst_6 = arith.constant 0.000000e+00 : f32
    %8 = vector.broadcast %cst_6 : f32 to vector<22x3xf32>
    %9 = tpu.concatenate %8, %7, %8 in 1 : vector<22x3xf32>, vector<22x16xf32>, vector<22x3xf32> -> vector<22x22xf32>
    %cst_7 = arith.constant 0.000000e+00 : f32
    %10 = vector.broadcast %cst_7 : f32 to vector<3x16xf32>
    %11 = tpu.concatenate %10, %5, %10 in 0 : vector<3x16xf32>, vector<16x16xf32>, vector<3x16xf32> -> vector<22x16xf32>
    %cst_8 = arith.constant 0.000000e+00 : f32
    %12 = vector.broadcast %cst_8 : f32 to vector<22x3xf32>
    %13 = tpu.concatenate %12, %11, %12 in 1 : vector<22x3xf32>, vector<22x16xf32>, vector<22x3xf32> -> vector<22x22xf32>
    %cst_9 = arith.constant 0.000000e+00 : f32
    %14 = vector.broadcast %cst_9 : f32 to vector<16x16xf32>
    %c0_10 = arith.constant 0 : index
    %15 = memref.load %arg2[%c0_10] : memref<98xf32, #tpu.memory_space<smem>>
    %c49 = arith.constant 49 : index
    %16 = memref.load %arg2[%c49] : memref<98xf32, #tpu.memory_space<smem>>
    %17 = vector.extract_strided_slice %9 {offsets = [0, 0], sizes = [16, 16], strides = [1, 1]} : vector<22x22xf32> to vector<16x16xf32>
    %18 = vector.broadcast %15 : f32 to vector<16x16xf32>
    %19 = arith.mulf %18, %17 : vector<16x16xf32>
    %20 = arith.addf %14, %19 : vector<16x16xf32>
    %21 = vector.extract_strided_slice %13 {offsets = [0, 0], sizes = [16, 16], strides = [1, 1]} : vector<22x22xf32> to vector<16x16xf32>
    %22 = vector.broadcast %16 : f32 to vector<16x16xf32>
    %23 = arith.mulf %22, %21 : vector<16x16xf32>
    %24 = arith.addf %20, %23 : vector<16x16xf32>
    %c1 = arith.constant 1 : index
    %25 = memref.load %arg2[%c1] : memref<98xf32, #tpu.memory_space<smem>>
    %c50 = arith.constant 50 : index
    %26 = memref.load %arg2[%c50] : memref<98xf32, #tpu.memory_space<smem>>
    %27 = vector.extract_strided_slice %9 {offsets = [0, 1], sizes = [16, 16], strides = [1, 1]} : vector<22x22xf32> to vector<16x16xf32>
    %28 = vector.broadcast %25 : f32 to vector<16x16xf32>
    %29 = arith.mulf %28, %27 : vector<16x16xf32>
    %30 = arith.addf %24, %29 : vector<16x16xf32>
    %31 = vector.extract_strided_slice %13 {offsets = [0, 1], sizes = [16, 16], strides = [1, 1]} : vector<22x22xf32> to vector<16x16xf32>
    %32 = vector.broadcast %26 : f32 to vector<16x16xf32>
    %33 = arith.mulf %32, %31 : vector<16x16xf32>
    %34 = arith.addf %30, %33 : vector<16x16xf32>
    %c2 = arith.constant 2 : index
    %35 = memref.load %arg2[%c2] : memref<98xf32, #tpu.memory_space<smem>>
    %c51 = arith.constant 51 : index
    %36 = memref.load %arg2[%c51] : memref<98xf32, #tpu.memory_space<smem>>
    %37 = vector.extract_strided_slice %9 {offsets = [0, 2], sizes = [16, 16], strides = [1, 1]} : vector<22x22xf32> to vector<16x16xf32>
    %38 = vector.broadcast %35 : f32 to vector<16x16xf32>
    %39 = arith.mulf %38, %37 : vector<16x16xf32>
    %40 = arith.addf %34, %39 : vector<16x16xf32>
    %41 = vector.extract_strided_slice %13 {offsets = [0, 2], sizes = [16, 16], strides = [1, 1]} : vector<22x22xf32> to vector<16x16xf32>
    %42 = vector.broadcast %36 : f32 to vector<16x16xf32>
    %43 = arith.mulf %42, %41 : vector<16x16xf32>
    %44 = arith.addf %40, %43 : vector<16x16xf32>
    %c3 = arith.constant 3 : index
    %45 = memref.load %arg2[%c3] : memref<98xf32, #tpu.memory_space<smem>>
    %c52 = arith.constant 52 : index
    %46 = memref.load %arg2[%c52] : memref<98xf32, #tpu.memory_space<smem>>
    %47 = vector.extract_strided_slice %9 {offsets = [0, 3], sizes = [16, 16], strides = [1, 1]} : vector<22x22xf32> to vector<16x16xf32>
    %48 = vector.broadcast %45 : f32 to vector<16x16xf32>
    %49 = arith.mulf %48, %47 : vector<16x16xf32>
    %50 = arith.addf %44, %49 : vector<16x16xf32>
    %51 = vector.extract_strided_slice %13 {offsets = [0, 3], sizes = [16, 16], strides = [1, 1]} : vector<22x22xf32> to vector<16x16xf32>
    %52 = vector.broadcast %46 : f32 to vector<16x16xf32>
    %53 = arith.mulf %52, %51 : vector<16x16xf32>
    %54 = arith.addf %50, %53 : vector<16x16xf32>
    %c4 = arith.constant 4 : index
    %55 = memref.load %arg2[%c4] : memref<98xf32, #tpu.memory_space<smem>>
    %c53 = arith.constant 53 : index
    %56 = memref.load %arg2[%c53] : memref<98xf32, #tpu.memory_space<smem>>
    %57 = vector.extract_strided_slice %9 {offsets = [0, 4], sizes = [16, 16], strides = [1, 1]} : vector<22x22xf32> to vector<16x16xf32>
    %58 = vector.broadcast %55 : f32 to vector<16x16xf32>
    %59 = arith.mulf %58, %57 : vector<16x16xf32>
    %60 = arith.addf %54, %59 : vector<16x16xf32>
    %61 = vector.extract_strided_slice %13 {offsets = [0, 4], sizes = [16, 16], strides = [1, 1]} : vector<22x22xf32> to vector<16x16xf32>
    %62 = vector.broadcast %56 : f32 to vector<16x16xf32>
    %63 = arith.mulf %62, %61 : vector<16x16xf32>
    %64 = arith.addf %60, %63 : vector<16x16xf32>
    %c5 = arith.constant 5 : index
    %65 = memref.load %arg2[%c5] : memref<98xf32, #tpu.memory_space<smem>>
    %c54 = arith.constant 54 : index
    %66 = memref.load %arg2[%c54] : memref<98xf32, #tpu.memory_space<smem>>
    %67 = vector.extract_strided_slice %9 {offsets = [0, 5], sizes = [16, 16], strides = [1, 1]} : vector<22x22xf32> to vector<16x16xf32>
    %68 = vector.broadcast %65 : f32 to vector<16x16xf32>
    %69 = arith.mulf %68, %67 : vector<16x16xf32>
    %70 = arith.addf %64, %69 : vector<16x16xf32>
    %71 = vector.extract_strided_slice %13 {offsets = [0, 5], sizes = [16, 16], strides = [1, 1]} : vector<22x22xf32> to vector<16x16xf32>
    %72 = vector.broadcast %66 : f32 to vector<16x16xf32>
    %73 = arith.mulf %72, %71 : vector<16x16xf32>
    %74 = arith.addf %70, %73 : vector<16x16xf32>
    %c6 = arith.constant 6 : index
    %75 = memref.load %arg2[%c6] : memref<98xf32, #tpu.memory_space<smem>>
    %c55 = arith.constant 55 : index
    %76 = memref.load %arg2[%c55] : memref<98xf32, #tpu.memory_space<smem>>
    %77 = vector.extract_strided_slice %9 {offsets = [0, 6], sizes = [16, 16], strides = [1, 1]} : vector<22x22xf32> to vector<16x16xf32>
    %78 = vector.broadcast %75 : f32 to vector<16x16xf32>
    %79 = arith.mulf %78, %77 : vector<16x16xf32>
    %80 = arith.addf %74, %79 : vector<16x16xf32>
    %81 = vector.extract_strided_slice %13 {offsets = [0, 6], sizes = [16, 16], strides = [1, 1]} : vector<22x22xf32> to vector<16x16xf32>
    %82 = vector.broadcast %76 : f32 to vector<16x16xf32>
    %83 = arith.mulf %82, %81 : vector<16x16xf32>
    %84 = arith.addf %80, %83 : vector<16x16xf32>
    %c7 = arith.constant 7 : index
    %85 = memref.load %arg2[%c7] : memref<98xf32, #tpu.memory_space<smem>>
    %c56 = arith.constant 56 : index
    %86 = memref.load %arg2[%c56] : memref<98xf32, #tpu.memory_space<smem>>
    %87 = vector.extract_strided_slice %9 {offsets = [1, 0], sizes = [16, 16], strides = [1, 1]} : vector<22x22xf32> to vector<16x16xf32>
    %88 = vector.broadcast %85 : f32 to vector<16x16xf32>
    %89 = arith.mulf %88, %87 : vector<16x16xf32>
    %90 = arith.addf %84, %89 : vector<16x16xf32>
    %91 = vector.extract_strided_slice %13 {offsets = [1, 0], sizes = [16, 16], strides = [1, 1]} : vector<22x22xf32> to vector<16x16xf32>
    %92 = vector.broadcast %86 : f32 to vector<16x16xf32>
    %93 = arith.mulf %92, %91 : vector<16x16xf32>
    %94 = arith.addf %90, %93 : vector<16x16xf32>
    %c8 = arith.constant 8 : index
    %95 = memref.load %arg2[%c8] : memref<98xf32, #tpu.memory_space<smem>>
    %c57 = arith.constant 57 : index
    %96 = memref.load %arg2[%c57] : memref<98xf32, #tpu.memory_space<smem>>
    %97 = vector.extract_strided_slice %9 {offsets = [1, 1], sizes = [16, 16], strides = [1, 1]} : vector<22x22xf32> to vector<16x16xf32>
    %98 = vector.broadcast %95 : f32 to vector<16x16xf32>
    %99 = arith.mulf %98, %97 : vector<16x16xf32>
    %100 = arith.addf %94, %99 : vector<16x16xf32>
    %101 = vector.extract_strided_slice %13 {offsets = [1, 1], sizes = [16, 16], strides = [1, 1]} : vector<22x22xf32> to vector<16x16xf32>
    %102 = vector.broadcast %96 : f32 to vector<16x16xf32>
    %103 = arith.mulf %102, %101 : vector<16x16xf32>
    %104 = arith.addf %100, %103 : vector<16x16xf32>
    %c9 = arith.constant 9 : index
    %105 = memref.load %arg2[%c9] : memref<98xf32, #tpu.memory_space<smem>>
    %c58 = arith.constant 58 : index
    %106 = memref.load %arg2[%c58] : memref<98xf32, #tpu.memory_space<smem>>
    %107 = vector.extract_strided_slice %9 {offsets = [1, 2], sizes = [16, 16], strides = [1, 1]} : vector<22x22xf32> to vector<16x16xf32>
    %108 = vector.broadcast %105 : f32 to vector<16x16xf32>
    %109 = arith.mulf %108, %107 : vector<16x16xf32>
    %110 = arith.addf %104, %109 : vector<16x16xf32>
    %111 = vector.extract_strided_slice %13 {offsets = [1, 2], sizes = [16, 16], strides = [1, 1]} : vector<22x22xf32> to vector<16x16xf32>
    %112 = vector.broadcast %106 : f32 to vector<16x16xf32>
    %113 = arith.mulf %112, %111 : vector<16x16xf32>
    %114 = arith.addf %110, %113 : vector<16x16xf32>
    %c10 = arith.constant 10 : index
    %115 = memref.load %arg2[%c10] : memref<98xf32, #tpu.memory_space<smem>>
    %c59 = arith.constant 59 : index
    %116 = memref.load %arg2[%c59] : memref<98xf32, #tpu.memory_space<smem>>
    %117 = vector.extract_strided_slice %9 {offsets = [1, 3], sizes = [16, 16], strides = [1, 1]} : vector<22x22xf32> to vector<16x16xf32>
    %118 = vector.broadcast %115 : f32 to vector<16x16xf32>
    %119 = arith.mulf %118, %117 : vector<16x16xf32>
    %120 = arith.addf %114, %119 : vector<16x16xf32>
    %121 = vector.extract_strided_slice %13 {offsets = [1, 3], sizes = [16, 16], strides = [1, 1]} : vector<22x22xf32> to vector<16x16xf32>
    %122 = vector.broadcast %116 : f32 to vector<16x16xf32>
    %123 = arith.mulf %122, %121 : vector<16x16xf32>
    %124 = arith.addf %120, %123 : vector<16x16xf32>
    %c11 = arith.constant 11 : index
    %125 = memref.load %arg2[%c11] : memref<98xf32, #tpu.memory_space<smem>>
    %c60 = arith.constant 60 : index
    %126 = memref.load %arg2[%c60] : memref<98xf32, #tpu.memory_space<smem>>
    %127 = vector.extract_strided_slice %9 {offsets = [1, 4], sizes = [16, 16], strides = [1, 1]} : vector<22x22xf32> to vector<16x16xf32>
    %128 = vector.broadcast %125 : f32 to vector<16x16xf32>
    %129 = arith.mulf %128, %127 : vector<16x16xf32>
    %130 = arith.addf %124, %129 : vector<16x16xf32>
    %131 = vector.extract_strided_slice %13 {offsets = [1, 4], sizes = [16, 16], strides = [1, 1]} : vector<22x22xf32> to vector<16x16xf32>
    %132 = vector.broadcast %126 : f32 to vector<16x16xf32>
    %133 = arith.mulf %132, %131 : vector<16x16xf32>
    %134 = arith.addf %130, %133 : vector<16x16xf32>
    %c12 = arith.constant 12 : index
    %135 = memref.load %arg2[%c12] : memref<98xf32, #tpu.memory_space<smem>>
    %c61 = arith.constant 61 : index
    %136 = memref.load %arg2[%c61] : memref<98xf32, #tpu.memory_space<smem>>
    %137 = vector.extract_strided_slice %9 {offsets = [1, 5], sizes = [16, 16], strides = [1, 1]} : vector<22x22xf32> to vector<16x16xf32>
    %138 = vector.broadcast %135 : f32 to vector<16x16xf32>
    %139 = arith.mulf %138, %137 : vector<16x16xf32>
    %140 = arith.addf %134, %139 : vector<16x16xf32>
    %141 = vector.extract_strided_slice %13 {offsets = [1, 5], sizes = [16, 16], strides = [1, 1]} : vector<22x22xf32> to vector<16x16xf32>
    %142 = vector.broadcast %136 : f32 to vector<16x16xf32>
    %143 = arith.mulf %142, %141 : vector<16x16xf32>
    %144 = arith.addf %140, %143 : vector<16x16xf32>
    %c13 = arith.constant 13 : index
    %145 = memref.load %arg2[%c13] : memref<98xf32, #tpu.memory_space<smem>>
    %c62 = arith.constant 62 : index
    %146 = memref.load %arg2[%c62] : memref<98xf32, #tpu.memory_space<smem>>
    %147 = vector.extract_strided_slice %9 {offsets = [1, 6], sizes = [16, 16], strides = [1, 1]} : vector<22x22xf32> to vector<16x16xf32>
    %148 = vector.broadcast %145 : f32 to vector<16x16xf32>
    %149 = arith.mulf %148, %147 : vector<16x16xf32>
    %150 = arith.addf %144, %149 : vector<16x16xf32>
    %151 = vector.extract_strided_slice %13 {offsets = [1, 6], sizes = [16, 16], strides = [1, 1]} : vector<22x22xf32> to vector<16x16xf32>
    %152 = vector.broadcast %146 : f32 to vector<16x16xf32>
    %153 = arith.mulf %152, %151 : vector<16x16xf32>
    %154 = arith.addf %150, %153 : vector<16x16xf32>
    %c14 = arith.constant 14 : index
    %155 = memref.load %arg2[%c14] : memref<98xf32, #tpu.memory_space<smem>>
    %c63 = arith.constant 63 : index
    %156 = memref.load %arg2[%c63] : memref<98xf32, #tpu.memory_space<smem>>
    %157 = vector.extract_strided_slice %9 {offsets = [2, 0], sizes = [16, 16], strides = [1, 1]} : vector<22x22xf32> to vector<16x16xf32>
    %158 = vector.broadcast %155 : f32 to vector<16x16xf32>
    %159 = arith.mulf %158, %157 : vector<16x16xf32>
    %160 = arith.addf %154, %159 : vector<16x16xf32>
    %161 = vector.extract_strided_slice %13 {offsets = [2, 0], sizes = [16, 16], strides = [1, 1]} : vector<22x22xf32> to vector<16x16xf32>
    %162 = vector.broadcast %156 : f32 to vector<16x16xf32>
    %163 = arith.mulf %162, %161 : vector<16x16xf32>
    %164 = arith.addf %160, %163 : vector<16x16xf32>
    %c15 = arith.constant 15 : index
    %165 = memref.load %arg2[%c15] : memref<98xf32, #tpu.memory_space<smem>>
    %c64 = arith.constant 64 : index
    %166 = memref.load %arg2[%c64] : memref<98xf32, #tpu.memory_space<smem>>
    %167 = vector.extract_strided_slice %9 {offsets = [2, 1], sizes = [16, 16], strides = [1, 1]} : vector<22x22xf32> to vector<16x16xf32>
    %168 = vector.broadcast %165 : f32 to vector<16x16xf32>
    %169 = arith.mulf %168, %167 : vector<16x16xf32>
    %170 = arith.addf %164, %169 : vector<16x16xf32>
    %171 = vector.extract_strided_slice %13 {offsets = [2, 1], sizes = [16, 16], strides = [1, 1]} : vector<22x22xf32> to vector<16x16xf32>
    %172 = vector.broadcast %166 : f32 to vector<16x16xf32>
    %173 = arith.mulf %172, %171 : vector<16x16xf32>
    %174 = arith.addf %170, %173 : vector<16x16xf32>
    %c16 = arith.constant 16 : index
    %175 = memref.load %arg2[%c16] : memref<98xf32, #tpu.memory_space<smem>>
    %c65 = arith.constant 65 : index
    %176 = memref.load %arg2[%c65] : memref<98xf32, #tpu.memory_space<smem>>
    %177 = vector.extract_strided_slice %9 {offsets = [2, 2], sizes = [16, 16], strides = [1, 1]} : vector<22x22xf32> to vector<16x16xf32>
    %178 = vector.broadcast %175 : f32 to vector<16x16xf32>
    %179 = arith.mulf %178, %177 : vector<16x16xf32>
    %180 = arith.addf %174, %179 : vector<16x16xf32>
    %181 = vector.extract_strided_slice %13 {offsets = [2, 2], sizes = [16, 16], strides = [1, 1]} : vector<22x22xf32> to vector<16x16xf32>
    %182 = vector.broadcast %176 : f32 to vector<16x16xf32>
    %183 = arith.mulf %182, %181 : vector<16x16xf32>
    %184 = arith.addf %180, %183 : vector<16x16xf32>
    %c17 = arith.constant 17 : index
    %185 = memref.load %arg2[%c17] : memref<98xf32, #tpu.memory_space<smem>>
    %c66 = arith.constant 66 : index
    %186 = memref.load %arg2[%c66] : memref<98xf32, #tpu.memory_space<smem>>
    %187 = vector.extract_strided_slice %9 {offsets = [2, 3], sizes = [16, 16], strides = [1, 1]} : vector<22x22xf32> to vector<16x16xf32>
    %188 = vector.broadcast %185 : f32 to vector<16x16xf32>
    %189 = arith.mulf %188, %187 : vector<16x16xf32>
    %190 = arith.addf %184, %189 : vector<16x16xf32>
    %191 = vector.extract_strided_slice %13 {offsets = [2, 3], sizes = [16, 16], strides = [1, 1]} : vector<22x22xf32> to vector<16x16xf32>
    %192 = vector.broadcast %186 : f32 to vector<16x16xf32>
    %193 = arith.mulf %192, %191 : vector<16x16xf32>
    %194 = arith.addf %190, %193 : vector<16x16xf32>
    %c18 = arith.constant 18 : index
    %195 = memref.load %arg2[%c18] : memref<98xf32, #tpu.memory_space<smem>>
    %c67 = arith.constant 67 : index
    %196 = memref.load %arg2[%c67] : memref<98xf32, #tpu.memory_space<smem>>
    %197 = vector.extract_strided_slice %9 {offsets = [2, 4], sizes = [16, 16], strides = [1, 1]} : vector<22x22xf32> to vector<16x16xf32>
    %198 = vector.broadcast %195 : f32 to vector<16x16xf32>
    %199 = arith.mulf %198, %197 : vector<16x16xf32>
    %200 = arith.addf %194, %199 : vector<16x16xf32>
    %201 = vector.extract_strided_slice %13 {offsets = [2, 4], sizes = [16, 16], strides = [1, 1]} : vector<22x22xf32> to vector<16x16xf32>
    %202 = vector.broadcast %196 : f32 to vector<16x16xf32>
    %203 = arith.mulf %202, %201 : vector<16x16xf32>
    %204 = arith.addf %200, %203 : vector<16x16xf32>
    %c19 = arith.constant 19 : index
    %205 = memref.load %arg2[%c19] : memref<98xf32, #tpu.memory_space<smem>>
    %c68 = arith.constant 68 : index
    %206 = memref.load %arg2[%c68] : memref<98xf32, #tpu.memory_space<smem>>
    %207 = vector.extract_strided_slice %9 {offsets = [2, 5], sizes = [16, 16], strides = [1, 1]} : vector<22x22xf32> to vector<16x16xf32>
    %208 = vector.broadcast %205 : f32 to vector<16x16xf32>
    %209 = arith.mulf %208, %207 : vector<16x16xf32>
    %210 = arith.addf %204, %209 : vector<16x16xf32>
    %211 = vector.extract_strided_slice %13 {offsets = [2, 5], sizes = [16, 16], strides = [1, 1]} : vector<22x22xf32> to vector<16x16xf32>
    %212 = vector.broadcast %206 : f32 to vector<16x16xf32>
    %213 = arith.mulf %212, %211 : vector<16x16xf32>
    %214 = arith.addf %210, %213 : vector<16x16xf32>
    %c20 = arith.constant 20 : index
    %215 = memref.load %arg2[%c20] : memref<98xf32, #tpu.memory_space<smem>>
    %c69 = arith.constant 69 : index
    %216 = memref.load %arg2[%c69] : memref<98xf32, #tpu.memory_space<smem>>
    %217 = vector.extract_strided_slice %9 {offsets = [2, 6], sizes = [16, 16], strides = [1, 1]} : vector<22x22xf32> to vector<16x16xf32>
    %218 = vector.broadcast %215 : f32 to vector<16x16xf32>
    %219 = arith.mulf %218, %217 : vector<16x16xf32>
    %220 = arith.addf %214, %219 : vector<16x16xf32>
    %221 = vector.extract_strided_slice %13 {offsets = [2, 6], sizes = [16, 16], strides = [1, 1]} : vector<22x22xf32> to vector<16x16xf32>
    %222 = vector.broadcast %216 : f32 to vector<16x16xf32>
    %223 = arith.mulf %222, %221 : vector<16x16xf32>
    %224 = arith.addf %220, %223 : vector<16x16xf32>
    %c21 = arith.constant 21 : index
    %225 = memref.load %arg2[%c21] : memref<98xf32, #tpu.memory_space<smem>>
    %c70 = arith.constant 70 : index
    %226 = memref.load %arg2[%c70] : memref<98xf32, #tpu.memory_space<smem>>
    %227 = vector.extract_strided_slice %9 {offsets = [3, 0], sizes = [16, 16], strides = [1, 1]} : vector<22x22xf32> to vector<16x16xf32>
    %228 = vector.broadcast %225 : f32 to vector<16x16xf32>
    %229 = arith.mulf %228, %227 : vector<16x16xf32>
    %230 = arith.addf %224, %229 : vector<16x16xf32>
    %231 = vector.extract_strided_slice %13 {offsets = [3, 0], sizes = [16, 16], strides = [1, 1]} : vector<22x22xf32> to vector<16x16xf32>
    %232 = vector.broadcast %226 : f32 to vector<16x16xf32>
    %233 = arith.mulf %232, %231 : vector<16x16xf32>
    %234 = arith.addf %230, %233 : vector<16x16xf32>
    %c22 = arith.constant 22 : index
    %235 = memref.load %arg2[%c22] : memref<98xf32, #tpu.memory_space<smem>>
    %c71 = arith.constant 71 : index
    %236 = memref.load %arg2[%c71] : memref<98xf32, #tpu.memory_space<smem>>
    %237 = vector.extract_strided_slice %9 {offsets = [3, 1], sizes = [16, 16], strides = [1, 1]} : vector<22x22xf32> to vector<16x16xf32>
    %238 = vector.broadcast %235 : f32 to vector<16x16xf32>
    %239 = arith.mulf %238, %237 : vector<16x16xf32>
    %240 = arith.addf %234, %239 : vector<16x16xf32>
    %241 = vector.extract_strided_slice %13 {offsets = [3, 1], sizes = [16, 16], strides = [1, 1]} : vector<22x22xf32> to vector<16x16xf32>
    %242 = vector.broadcast %236 : f32 to vector<16x16xf32>
    %243 = arith.mulf %242, %241 : vector<16x16xf32>
    %244 = arith.addf %240, %243 : vector<16x16xf32>
    %c23 = arith.constant 23 : index
    %245 = memref.load %arg2[%c23] : memref<98xf32, #tpu.memory_space<smem>>
    %c72 = arith.constant 72 : index
    %246 = memref.load %arg2[%c72] : memref<98xf32, #tpu.memory_space<smem>>
    %247 = vector.extract_strided_slice %9 {offsets = [3, 2], sizes = [16, 16], strides = [1, 1]} : vector<22x22xf32> to vector<16x16xf32>
    %248 = vector.broadcast %245 : f32 to vector<16x16xf32>
    %249 = arith.mulf %248, %247 : vector<16x16xf32>
    %250 = arith.addf %244, %249 : vector<16x16xf32>
    %251 = vector.extract_strided_slice %13 {offsets = [3, 2], sizes = [16, 16], strides = [1, 1]} : vector<22x22xf32> to vector<16x16xf32>
    %252 = vector.broadcast %246 : f32 to vector<16x16xf32>
    %253 = arith.mulf %252, %251 : vector<16x16xf32>
    %254 = arith.addf %250, %253 : vector<16x16xf32>
    %c24 = arith.constant 24 : index
    %255 = memref.load %arg2[%c24] : memref<98xf32, #tpu.memory_space<smem>>
    %c73 = arith.constant 73 : index
    %256 = memref.load %arg2[%c73] : memref<98xf32, #tpu.memory_space<smem>>
    %257 = vector.extract_strided_slice %9 {offsets = [3, 3], sizes = [16, 16], strides = [1, 1]} : vector<22x22xf32> to vector<16x16xf32>
    %258 = vector.broadcast %255 : f32 to vector<16x16xf32>
    %259 = arith.mulf %258, %257 : vector<16x16xf32>
    %260 = arith.addf %254, %259 : vector<16x16xf32>
    %261 = vector.extract_strided_slice %13 {offsets = [3, 3], sizes = [16, 16], strides = [1, 1]} : vector<22x22xf32> to vector<16x16xf32>
    %262 = vector.broadcast %256 : f32 to vector<16x16xf32>
    %263 = arith.mulf %262, %261 : vector<16x16xf32>
    %264 = arith.addf %260, %263 : vector<16x16xf32>
    %c25 = arith.constant 25 : index
    %265 = memref.load %arg2[%c25] : memref<98xf32, #tpu.memory_space<smem>>
    %c74 = arith.constant 74 : index
    %266 = memref.load %arg2[%c74] : memref<98xf32, #tpu.memory_space<smem>>
    %267 = vector.extract_strided_slice %9 {offsets = [3, 4], sizes = [16, 16], strides = [1, 1]} : vector<22x22xf32> to vector<16x16xf32>
    %268 = vector.broadcast %265 : f32 to vector<16x16xf32>
    %269 = arith.mulf %268, %267 : vector<16x16xf32>
    %270 = arith.addf %264, %269 : vector<16x16xf32>
    %271 = vector.extract_strided_slice %13 {offsets = [3, 4], sizes = [16, 16], strides = [1, 1]} : vector<22x22xf32> to vector<16x16xf32>
    %272 = vector.broadcast %266 : f32 to vector<16x16xf32>
    %273 = arith.mulf %272, %271 : vector<16x16xf32>
    %274 = arith.addf %270, %273 : vector<16x16xf32>
    %c26 = arith.constant 26 : index
    %275 = memref.load %arg2[%c26] : memref<98xf32, #tpu.memory_space<smem>>
    %c75 = arith.constant 75 : index
    %276 = memref.load %arg2[%c75] : memref<98xf32, #tpu.memory_space<smem>>
    %277 = vector.extract_strided_slice %9 {offsets = [3, 5], sizes = [16, 16], strides = [1, 1]} : vector<22x22xf32> to vector<16x16xf32>
    %278 = vector.broadcast %275 : f32 to vector<16x16xf32>
    %279 = arith.mulf %278, %277 : vector<16x16xf32>
    %280 = arith.addf %274, %279 : vector<16x16xf32>
    %281 = vector.extract_strided_slice %13 {offsets = [3, 5], sizes = [16, 16], strides = [1, 1]} : vector<22x22xf32> to vector<16x16xf32>
    %282 = vector.broadcast %276 : f32 to vector<16x16xf32>
    %283 = arith.mulf %282, %281 : vector<16x16xf32>
    %284 = arith.addf %280, %283 : vector<16x16xf32>
    %c27 = arith.constant 27 : index
    %285 = memref.load %arg2[%c27] : memref<98xf32, #tpu.memory_space<smem>>
    %c76 = arith.constant 76 : index
    %286 = memref.load %arg2[%c76] : memref<98xf32, #tpu.memory_space<smem>>
    %287 = vector.extract_strided_slice %9 {offsets = [3, 6], sizes = [16, 16], strides = [1, 1]} : vector<22x22xf32> to vector<16x16xf32>
    %288 = vector.broadcast %285 : f32 to vector<16x16xf32>
    %289 = arith.mulf %288, %287 : vector<16x16xf32>
    %290 = arith.addf %284, %289 : vector<16x16xf32>
    %291 = vector.extract_strided_slice %13 {offsets = [3, 6], sizes = [16, 16], strides = [1, 1]} : vector<22x22xf32> to vector<16x16xf32>
    %292 = vector.broadcast %286 : f32 to vector<16x16xf32>
    %293 = arith.mulf %292, %291 : vector<16x16xf32>
    %294 = arith.addf %290, %293 : vector<16x16xf32>
    %c28 = arith.constant 28 : index
    %295 = memref.load %arg2[%c28] : memref<98xf32, #tpu.memory_space<smem>>
    %c77 = arith.constant 77 : index
    %296 = memref.load %arg2[%c77] : memref<98xf32, #tpu.memory_space<smem>>
    %297 = vector.extract_strided_slice %9 {offsets = [4, 0], sizes = [16, 16], strides = [1, 1]} : vector<22x22xf32> to vector<16x16xf32>
    %298 = vector.broadcast %295 : f32 to vector<16x16xf32>
    %299 = arith.mulf %298, %297 : vector<16x16xf32>
    %300 = arith.addf %294, %299 : vector<16x16xf32>
    %301 = vector.extract_strided_slice %13 {offsets = [4, 0], sizes = [16, 16], strides = [1, 1]} : vector<22x22xf32> to vector<16x16xf32>
    %302 = vector.broadcast %296 : f32 to vector<16x16xf32>
    %303 = arith.mulf %302, %301 : vector<16x16xf32>
    %304 = arith.addf %300, %303 : vector<16x16xf32>
    %c29 = arith.constant 29 : index
    %305 = memref.load %arg2[%c29] : memref<98xf32, #tpu.memory_space<smem>>
    %c78 = arith.constant 78 : index
    %306 = memref.load %arg2[%c78] : memref<98xf32, #tpu.memory_space<smem>>
    %307 = vector.extract_strided_slice %9 {offsets = [4, 1], sizes = [16, 16], strides = [1, 1]} : vector<22x22xf32> to vector<16x16xf32>
    %308 = vector.broadcast %305 : f32 to vector<16x16xf32>
    %309 = arith.mulf %308, %307 : vector<16x16xf32>
    %310 = arith.addf %304, %309 : vector<16x16xf32>
    %311 = vector.extract_strided_slice %13 {offsets = [4, 1], sizes = [16, 16], strides = [1, 1]} : vector<22x22xf32> to vector<16x16xf32>
    %312 = vector.broadcast %306 : f32 to vector<16x16xf32>
    %313 = arith.mulf %312, %311 : vector<16x16xf32>
    %314 = arith.addf %310, %313 : vector<16x16xf32>
    %c30 = arith.constant 30 : index
    %315 = memref.load %arg2[%c30] : memref<98xf32, #tpu.memory_space<smem>>
    %c79 = arith.constant 79 : index
    %316 = memref.load %arg2[%c79] : memref<98xf32, #tpu.memory_space<smem>>
    %317 = vector.extract_strided_slice %9 {offsets = [4, 2], sizes = [16, 16], strides = [1, 1]} : vector<22x22xf32> to vector<16x16xf32>
    %318 = vector.broadcast %315 : f32 to vector<16x16xf32>
    %319 = arith.mulf %318, %317 : vector<16x16xf32>
    %320 = arith.addf %314, %319 : vector<16x16xf32>
    %321 = vector.extract_strided_slice %13 {offsets = [4, 2], sizes = [16, 16], strides = [1, 1]} : vector<22x22xf32> to vector<16x16xf32>
    %322 = vector.broadcast %316 : f32 to vector<16x16xf32>
    %323 = arith.mulf %322, %321 : vector<16x16xf32>
    %324 = arith.addf %320, %323 : vector<16x16xf32>
    %c31 = arith.constant 31 : index
    %325 = memref.load %arg2[%c31] : memref<98xf32, #tpu.memory_space<smem>>
    %c80 = arith.constant 80 : index
    %326 = memref.load %arg2[%c80] : memref<98xf32, #tpu.memory_space<smem>>
    %327 = vector.extract_strided_slice %9 {offsets = [4, 3], sizes = [16, 16], strides = [1, 1]} : vector<22x22xf32> to vector<16x16xf32>
    %328 = vector.broadcast %325 : f32 to vector<16x16xf32>
    %329 = arith.mulf %328, %327 : vector<16x16xf32>
    %330 = arith.addf %324, %329 : vector<16x16xf32>
    %331 = vector.extract_strided_slice %13 {offsets = [4, 3], sizes = [16, 16], strides = [1, 1]} : vector<22x22xf32> to vector<16x16xf32>
    %332 = vector.broadcast %326 : f32 to vector<16x16xf32>
    %333 = arith.mulf %332, %331 : vector<16x16xf32>
    %334 = arith.addf %330, %333 : vector<16x16xf32>
    %c32 = arith.constant 32 : index
    %335 = memref.load %arg2[%c32] : memref<98xf32, #tpu.memory_space<smem>>
    %c81 = arith.constant 81 : index
    %336 = memref.load %arg2[%c81] : memref<98xf32, #tpu.memory_space<smem>>
    %337 = vector.extract_strided_slice %9 {offsets = [4, 4], sizes = [16, 16], strides = [1, 1]} : vector<22x22xf32> to vector<16x16xf32>
    %338 = vector.broadcast %335 : f32 to vector<16x16xf32>
    %339 = arith.mulf %338, %337 : vector<16x16xf32>
    %340 = arith.addf %334, %339 : vector<16x16xf32>
    %341 = vector.extract_strided_slice %13 {offsets = [4, 4], sizes = [16, 16], strides = [1, 1]} : vector<22x22xf32> to vector<16x16xf32>
    %342 = vector.broadcast %336 : f32 to vector<16x16xf32>
    %343 = arith.mulf %342, %341 : vector<16x16xf32>
    %344 = arith.addf %340, %343 : vector<16x16xf32>
    %c33 = arith.constant 33 : index
    %345 = memref.load %arg2[%c33] : memref<98xf32, #tpu.memory_space<smem>>
    %c82 = arith.constant 82 : index
    %346 = memref.load %arg2[%c82] : memref<98xf32, #tpu.memory_space<smem>>
    %347 = vector.extract_strided_slice %9 {offsets = [4, 5], sizes = [16, 16], strides = [1, 1]} : vector<22x22xf32> to vector<16x16xf32>
    %348 = vector.broadcast %345 : f32 to vector<16x16xf32>
    %349 = arith.mulf %348, %347 : vector<16x16xf32>
    %350 = arith.addf %344, %349 : vector<16x16xf32>
    %351 = vector.extract_strided_slice %13 {offsets = [4, 5], sizes = [16, 16], strides = [1, 1]} : vector<22x22xf32> to vector<16x16xf32>
    %352 = vector.broadcast %346 : f32 to vector<16x16xf32>
    %353 = arith.mulf %352, %351 : vector<16x16xf32>
    %354 = arith.addf %350, %353 : vector<16x16xf32>
    %c34 = arith.constant 34 : index
    %355 = memref.load %arg2[%c34] : memref<98xf32, #tpu.memory_space<smem>>
    %c83 = arith.constant 83 : index
    %356 = memref.load %arg2[%c83] : memref<98xf32, #tpu.memory_space<smem>>
    %357 = vector.extract_strided_slice %9 {offsets = [4, 6], sizes = [16, 16], strides = [1, 1]} : vector<22x22xf32> to vector<16x16xf32>
    %358 = vector.broadcast %355 : f32 to vector<16x16xf32>
    %359 = arith.mulf %358, %357 : vector<16x16xf32>
    %360 = arith.addf %354, %359 : vector<16x16xf32>
    %361 = vector.extract_strided_slice %13 {offsets = [4, 6], sizes = [16, 16], strides = [1, 1]} : vector<22x22xf32> to vector<16x16xf32>
    %362 = vector.broadcast %356 : f32 to vector<16x16xf32>
    %363 = arith.mulf %362, %361 : vector<16x16xf32>
    %364 = arith.addf %360, %363 : vector<16x16xf32>
    %c35 = arith.constant 35 : index
    %365 = memref.load %arg2[%c35] : memref<98xf32, #tpu.memory_space<smem>>
    %c84 = arith.constant 84 : index
    %366 = memref.load %arg2[%c84] : memref<98xf32, #tpu.memory_space<smem>>
    %367 = vector.extract_strided_slice %9 {offsets = [5, 0], sizes = [16, 16], strides = [1, 1]} : vector<22x22xf32> to vector<16x16xf32>
    %368 = vector.broadcast %365 : f32 to vector<16x16xf32>
    %369 = arith.mulf %368, %367 : vector<16x16xf32>
    %370 = arith.addf %364, %369 : vector<16x16xf32>
    %371 = vector.extract_strided_slice %13 {offsets = [5, 0], sizes = [16, 16], strides = [1, 1]} : vector<22x22xf32> to vector<16x16xf32>
    %372 = vector.broadcast %366 : f32 to vector<16x16xf32>
    %373 = arith.mulf %372, %371 : vector<16x16xf32>
    %374 = arith.addf %370, %373 : vector<16x16xf32>
    %c36 = arith.constant 36 : index
    %375 = memref.load %arg2[%c36] : memref<98xf32, #tpu.memory_space<smem>>
    %c85 = arith.constant 85 : index
    %376 = memref.load %arg2[%c85] : memref<98xf32, #tpu.memory_space<smem>>
    %377 = vector.extract_strided_slice %9 {offsets = [5, 1], sizes = [16, 16], strides = [1, 1]} : vector<22x22xf32> to vector<16x16xf32>
    %378 = vector.broadcast %375 : f32 to vector<16x16xf32>
    %379 = arith.mulf %378, %377 : vector<16x16xf32>
    %380 = arith.addf %374, %379 : vector<16x16xf32>
    %381 = vector.extract_strided_slice %13 {offsets = [5, 1], sizes = [16, 16], strides = [1, 1]} : vector<22x22xf32> to vector<16x16xf32>
    %382 = vector.broadcast %376 : f32 to vector<16x16xf32>
    %383 = arith.mulf %382, %381 : vector<16x16xf32>
    %384 = arith.addf %380, %383 : vector<16x16xf32>
    %c37 = arith.constant 37 : index
    %385 = memref.load %arg2[%c37] : memref<98xf32, #tpu.memory_space<smem>>
    %c86 = arith.constant 86 : index
    %386 = memref.load %arg2[%c86] : memref<98xf32, #tpu.memory_space<smem>>
    %387 = vector.extract_strided_slice %9 {offsets = [5, 2], sizes = [16, 16], strides = [1, 1]} : vector<22x22xf32> to vector<16x16xf32>
    %388 = vector.broadcast %385 : f32 to vector<16x16xf32>
    %389 = arith.mulf %388, %387 : vector<16x16xf32>
    %390 = arith.addf %384, %389 : vector<16x16xf32>
    %391 = vector.extract_strided_slice %13 {offsets = [5, 2], sizes = [16, 16], strides = [1, 1]} : vector<22x22xf32> to vector<16x16xf32>
    %392 = vector.broadcast %386 : f32 to vector<16x16xf32>
    %393 = arith.mulf %392, %391 : vector<16x16xf32>
    %394 = arith.addf %390, %393 : vector<16x16xf32>
    %c38 = arith.constant 38 : index
    %395 = memref.load %arg2[%c38] : memref<98xf32, #tpu.memory_space<smem>>
    %c87 = arith.constant 87 : index
    %396 = memref.load %arg2[%c87] : memref<98xf32, #tpu.memory_space<smem>>
    %397 = vector.extract_strided_slice %9 {offsets = [5, 3], sizes = [16, 16], strides = [1, 1]} : vector<22x22xf32> to vector<16x16xf32>
    %398 = vector.broadcast %395 : f32 to vector<16x16xf32>
    %399 = arith.mulf %398, %397 : vector<16x16xf32>
    %400 = arith.addf %394, %399 : vector<16x16xf32>
    %401 = vector.extract_strided_slice %13 {offsets = [5, 3], sizes = [16, 16], strides = [1, 1]} : vector<22x22xf32> to vector<16x16xf32>
    %402 = vector.broadcast %396 : f32 to vector<16x16xf32>
    %403 = arith.mulf %402, %401 : vector<16x16xf32>
    %404 = arith.addf %400, %403 : vector<16x16xf32>
    %c39 = arith.constant 39 : index
    %405 = memref.load %arg2[%c39] : memref<98xf32, #tpu.memory_space<smem>>
    %c88 = arith.constant 88 : index
    %406 = memref.load %arg2[%c88] : memref<98xf32, #tpu.memory_space<smem>>
    %407 = vector.extract_strided_slice %9 {offsets = [5, 4], sizes = [16, 16], strides = [1, 1]} : vector<22x22xf32> to vector<16x16xf32>
    %408 = vector.broadcast %405 : f32 to vector<16x16xf32>
    %409 = arith.mulf %408, %407 : vector<16x16xf32>
    %410 = arith.addf %404, %409 : vector<16x16xf32>
    %411 = vector.extract_strided_slice %13 {offsets = [5, 4], sizes = [16, 16], strides = [1, 1]} : vector<22x22xf32> to vector<16x16xf32>
    %412 = vector.broadcast %406 : f32 to vector<16x16xf32>
    %413 = arith.mulf %412, %411 : vector<16x16xf32>
    %414 = arith.addf %410, %413 : vector<16x16xf32>
    %c40 = arith.constant 40 : index
    %415 = memref.load %arg2[%c40] : memref<98xf32, #tpu.memory_space<smem>>
    %c89 = arith.constant 89 : index
    %416 = memref.load %arg2[%c89] : memref<98xf32, #tpu.memory_space<smem>>
    %417 = vector.extract_strided_slice %9 {offsets = [5, 5], sizes = [16, 16], strides = [1, 1]} : vector<22x22xf32> to vector<16x16xf32>
    %418 = vector.broadcast %415 : f32 to vector<16x16xf32>
    %419 = arith.mulf %418, %417 : vector<16x16xf32>
    %420 = arith.addf %414, %419 : vector<16x16xf32>
    %421 = vector.extract_strided_slice %13 {offsets = [5, 5], sizes = [16, 16], strides = [1, 1]} : vector<22x22xf32> to vector<16x16xf32>
    %422 = vector.broadcast %416 : f32 to vector<16x16xf32>
    %423 = arith.mulf %422, %421 : vector<16x16xf32>
    %424 = arith.addf %420, %423 : vector<16x16xf32>
    %c41 = arith.constant 41 : index
    %425 = memref.load %arg2[%c41] : memref<98xf32, #tpu.memory_space<smem>>
    %c90 = arith.constant 90 : index
    %426 = memref.load %arg2[%c90] : memref<98xf32, #tpu.memory_space<smem>>
    %427 = vector.extract_strided_slice %9 {offsets = [5, 6], sizes = [16, 16], strides = [1, 1]} : vector<22x22xf32> to vector<16x16xf32>
    %428 = vector.broadcast %425 : f32 to vector<16x16xf32>
    %429 = arith.mulf %428, %427 : vector<16x16xf32>
    %430 = arith.addf %424, %429 : vector<16x16xf32>
    %431 = vector.extract_strided_slice %13 {offsets = [5, 6], sizes = [16, 16], strides = [1, 1]} : vector<22x22xf32> to vector<16x16xf32>
    %432 = vector.broadcast %426 : f32 to vector<16x16xf32>
    %433 = arith.mulf %432, %431 : vector<16x16xf32>
    %434 = arith.addf %430, %433 : vector<16x16xf32>
    %c42 = arith.constant 42 : index
    %435 = memref.load %arg2[%c42] : memref<98xf32, #tpu.memory_space<smem>>
    %c91 = arith.constant 91 : index
    %436 = memref.load %arg2[%c91] : memref<98xf32, #tpu.memory_space<smem>>
    %437 = vector.extract_strided_slice %9 {offsets = [6, 0], sizes = [16, 16], strides = [1, 1]} : vector<22x22xf32> to vector<16x16xf32>
    %438 = vector.broadcast %435 : f32 to vector<16x16xf32>
    %439 = arith.mulf %438, %437 : vector<16x16xf32>
    %440 = arith.addf %434, %439 : vector<16x16xf32>
    %441 = vector.extract_strided_slice %13 {offsets = [6, 0], sizes = [16, 16], strides = [1, 1]} : vector<22x22xf32> to vector<16x16xf32>
    %442 = vector.broadcast %436 : f32 to vector<16x16xf32>
    %443 = arith.mulf %442, %441 : vector<16x16xf32>
    %444 = arith.addf %440, %443 : vector<16x16xf32>
    %c43 = arith.constant 43 : index
    %445 = memref.load %arg2[%c43] : memref<98xf32, #tpu.memory_space<smem>>
    %c92 = arith.constant 92 : index
    %446 = memref.load %arg2[%c92] : memref<98xf32, #tpu.memory_space<smem>>
    %447 = vector.extract_strided_slice %9 {offsets = [6, 1], sizes = [16, 16], strides = [1, 1]} : vector<22x22xf32> to vector<16x16xf32>
    %448 = vector.broadcast %445 : f32 to vector<16x16xf32>
    %449 = arith.mulf %448, %447 : vector<16x16xf32>
    %450 = arith.addf %444, %449 : vector<16x16xf32>
    %451 = vector.extract_strided_slice %13 {offsets = [6, 1], sizes = [16, 16], strides = [1, 1]} : vector<22x22xf32> to vector<16x16xf32>
    %452 = vector.broadcast %446 : f32 to vector<16x16xf32>
    %453 = arith.mulf %452, %451 : vector<16x16xf32>
    %454 = arith.addf %450, %453 : vector<16x16xf32>
    %c44 = arith.constant 44 : index
    %455 = memref.load %arg2[%c44] : memref<98xf32, #tpu.memory_space<smem>>
    %c93 = arith.constant 93 : index
    %456 = memref.load %arg2[%c93] : memref<98xf32, #tpu.memory_space<smem>>
    %457 = vector.extract_strided_slice %9 {offsets = [6, 2], sizes = [16, 16], strides = [1, 1]} : vector<22x22xf32> to vector<16x16xf32>
    %458 = vector.broadcast %455 : f32 to vector<16x16xf32>
    %459 = arith.mulf %458, %457 : vector<16x16xf32>
    %460 = arith.addf %454, %459 : vector<16x16xf32>
    %461 = vector.extract_strided_slice %13 {offsets = [6, 2], sizes = [16, 16], strides = [1, 1]} : vector<22x22xf32> to vector<16x16xf32>
    %462 = vector.broadcast %456 : f32 to vector<16x16xf32>
    %463 = arith.mulf %462, %461 : vector<16x16xf32>
    %464 = arith.addf %460, %463 : vector<16x16xf32>
    %c45 = arith.constant 45 : index
    %465 = memref.load %arg2[%c45] : memref<98xf32, #tpu.memory_space<smem>>
    %c94 = arith.constant 94 : index
    %466 = memref.load %arg2[%c94] : memref<98xf32, #tpu.memory_space<smem>>
    %467 = vector.extract_strided_slice %9 {offsets = [6, 3], sizes = [16, 16], strides = [1, 1]} : vector<22x22xf32> to vector<16x16xf32>
    %468 = vector.broadcast %465 : f32 to vector<16x16xf32>
    %469 = arith.mulf %468, %467 : vector<16x16xf32>
    %470 = arith.addf %464, %469 : vector<16x16xf32>
    %471 = vector.extract_strided_slice %13 {offsets = [6, 3], sizes = [16, 16], strides = [1, 1]} : vector<22x22xf32> to vector<16x16xf32>
    %472 = vector.broadcast %466 : f32 to vector<16x16xf32>
    %473 = arith.mulf %472, %471 : vector<16x16xf32>
    %474 = arith.addf %470, %473 : vector<16x16xf32>
    %c46 = arith.constant 46 : index
    %475 = memref.load %arg2[%c46] : memref<98xf32, #tpu.memory_space<smem>>
    %c95 = arith.constant 95 : index
    %476 = memref.load %arg2[%c95] : memref<98xf32, #tpu.memory_space<smem>>
    %477 = vector.extract_strided_slice %9 {offsets = [6, 4], sizes = [16, 16], strides = [1, 1]} : vector<22x22xf32> to vector<16x16xf32>
    %478 = vector.broadcast %475 : f32 to vector<16x16xf32>
    %479 = arith.mulf %478, %477 : vector<16x16xf32>
    %480 = arith.addf %474, %479 : vector<16x16xf32>
    %481 = vector.extract_strided_slice %13 {offsets = [6, 4], sizes = [16, 16], strides = [1, 1]} : vector<22x22xf32> to vector<16x16xf32>
    %482 = vector.broadcast %476 : f32 to vector<16x16xf32>
    %483 = arith.mulf %482, %481 : vector<16x16xf32>
    %484 = arith.addf %480, %483 : vector<16x16xf32>
    %c47 = arith.constant 47 : index
    %485 = memref.load %arg2[%c47] : memref<98xf32, #tpu.memory_space<smem>>
    %c96 = arith.constant 96 : index
    %486 = memref.load %arg2[%c96] : memref<98xf32, #tpu.memory_space<smem>>
    %487 = vector.extract_strided_slice %9 {offsets = [6, 5], sizes = [16, 16], strides = [1, 1]} : vector<22x22xf32> to vector<16x16xf32>
    %488 = vector.broadcast %485 : f32 to vector<16x16xf32>
    %489 = arith.mulf %488, %487 : vector<16x16xf32>
    %490 = arith.addf %484, %489 : vector<16x16xf32>
    %491 = vector.extract_strided_slice %13 {offsets = [6, 5], sizes = [16, 16], strides = [1, 1]} : vector<22x22xf32> to vector<16x16xf32>
    %492 = vector.broadcast %486 : f32 to vector<16x16xf32>
    %493 = arith.mulf %492, %491 : vector<16x16xf32>
    %494 = arith.addf %490, %493 : vector<16x16xf32>
    %c48 = arith.constant 48 : index
    %495 = memref.load %arg2[%c48] : memref<98xf32, #tpu.memory_space<smem>>
    %c97 = arith.constant 97 : index
    %496 = memref.load %arg2[%c97] : memref<98xf32, #tpu.memory_space<smem>>
    %497 = vector.extract_strided_slice %9 {offsets = [6, 6], sizes = [16, 16], strides = [1, 1]} : vector<22x22xf32> to vector<16x16xf32>
    %498 = vector.broadcast %495 : f32 to vector<16x16xf32>
    %499 = arith.mulf %498, %497 : vector<16x16xf32>
    %500 = arith.addf %494, %499 : vector<16x16xf32>
    %501 = vector.extract_strided_slice %13 {offsets = [6, 6], sizes = [16, 16], strides = [1, 1]} : vector<22x22xf32> to vector<16x16xf32>
    %502 = vector.broadcast %496 : f32 to vector<16x16xf32>
    %503 = arith.mulf %502, %501 : vector<16x16xf32>
    %504 = arith.addf %500, %503 : vector<16x16xf32>
    %505 = arith.negf %504 : vector<16x16xf32>
    %506 = math.exp %505 : vector<16x16xf32>
    %cst_11 = arith.constant 1.000000e+00 : f32
    %507 = vector.broadcast %cst_11 : f32 to vector<16x16xf32>
    %508 = arith.addf %507, %506 : vector<16x16xf32>
    %509 = arith.divf %507, %508 : vector<16x16xf32>
    %510 = vector.shape_cast %509 : vector<16x16xf32> to vector<1x16x16xf32>
    %511 = vector.broadcast %510 : vector<1x16x16xf32> to vector<16x16x16xf32>
    %512 = arith.mulf %1, %511 : vector<16x16x16xf32>
    %c0_12 = arith.constant 0 : index
    %c0_13 = arith.constant 0 : index
    %c0_14 = arith.constant 0 : index
    %c0_15 = arith.constant 0 : index
    %513 = vector.load %arg3[%c0_12, %c0_13, %c0_14, %c0_15] : memref<1x16x16x16xf32, #tpu.memory_space<vmem>>, vector<1x16x16x16xf32>
    %514 = vector.shape_cast %513 : vector<1x16x16x16xf32> to vector<16x16x16xf32>
    %515 = vector.shape_cast %512 : vector<16x16x16xf32> to vector<1x16x16x16xf32>
    tpu.vector_store %arg3[%c0_12, %c0_13, %c0_14, %c0_15], %515 {strides = array<i32>} : memref<1x16x16x16xf32, #tpu.memory_space<vmem>>, vector<1x16x16x16xf32>,
    return
  }
  func.func @transform_0(%arg0: i32) -> (i32, i32, i32, i32) {
    %c0_i32 = arith.constant 0 : i32
    %c0_i32_0 = arith.constant 0 : i32
    %c0_i32_1 = arith.constant 0 : i32
    %c0_i32_2 = arith.constant 0 : i32
    return %arg0, %c0_i32, %c0_i32_0, %c0_i32_1 : i32, i32, i32, i32
  }
  func.func @transform_1(%arg0: i32) -> i32 {
    %c0_i32 = arith.constant 0 : i32
    %c0_i32_0 = arith.constant 0 : i32
    return %c0_i32 : i32
  }
  func.func @transform_2(%arg0: i32) -> (i32, i32, i32, i32) {
    %c0_i32 = arith.constant 0 : i32
    %c0_i32_0 = arith.constant 0 : i32
    %c0_i32_1 = arith.constant 0 : i32
    %c0_i32_2 = arith.constant 0 : i32
    return %arg0, %c0_i32, %c0_i32_0, %c0_i32_1 : i32, i32, i32, i32
  }
}

</mosaic_0001>

<bundles_post_ra>
// kernel: spatial_attention_pallas.1
= control target key start
LH: loop header
LB: loop body
LE: loop exit
PB: predicated region body
PF: predicated region fallthrough
CT: control target
= control target key end

     0   :  { %7 = vsyncpa [#allocation3], 0  ;;  %s4837_s0 = inlined_call_operand.hbm [shape: f32[2,16,16,16], index: 0, kind: input, shape index: {}]   ;;  %s4838_s1 = inlined_call_operand.vmem [shape: f32[98], index: 1, kind: input, shape index: {}]   ;;  %s4839_s2 = inlined_call_operand.hbm [shape: f32[2,16,16,16], index: 2, kind: output, shape index: {}]  }
   0x1   :  { %9 = vsyncpa [#allocation3 + $0x1], 0 }
   0x2   :  { %10 = vsyncpa [#allocation5], 0 }
   0x3   :  { %11 = vsyncpa [#allocation4], 0 }
   0x4   :  { %13 = vsyncpa [#allocation4 + $0x1], 0  ;;  %s2838_s9 = smov 0   ;;  %s2840_s10 = smov 0  }
   0x5   :  { %s2842_s11 = smov 0   ;;  %s2844_s12 = smov 0  }
   0x6 LB: > { %s2859_s13 = sadd.s32 4294967295, %s2807_s12   ;;  %s2467_s14 = sadd.s32 4294967294, %s2807_s12   ;;  %s2807_s12 = sphi %s2844_s12, %s4895_s12   ;;  %s2803_s11 = sphi %s2842_s11, %s4894_s11   ;;  %s2799_s10 = sphi %s2840_s10, %s4893_s10   ;;  %s2795_s9 = sphi %s2838_s9, %s4892_s9  }
   0x7   : > { %s2863_s15 = sadd.s32 1, %s2807_s12   ;;  %s26_s16 = sadd.s32 1, %s2803_s11 }
   0x8   : > { %s23_s17 = ssub.s32 %s2807_s12, %s2863_s15  ;;  %p33_p0 = scmp.ne.s32.totalorder %s2803_s11, %s2799_s10 }
   0x9   : > { %p24_p1 = scmp.eq.s32.totalorder %s23_s17, 0  ;;  %p34_p2 = scmp.eq.s32.totalorder %s2807_s12, 0 }
   0xa   : > { %p39_p3 = scmp.ne.s32.totalorder %s2799_s10, %s2795_s9  ;;  %p4841_p4 = scmp.eq.s32.totalorder %s2859_s13, 0 }
   0xb   : > { %s2875_s18 = scalar_select %p24_p1, %s2803_s11, %s26_s16  }
   0xc   : > { %p2877_p5 = por %p34_p2, %p33_p0  ;;  %p2883_p6 = por %p4841_p4, %p39_p3 }
   0xd   : > { %p84_p7 = scmp.eq.s32.totalorder %s2859_s13, 1  ;;  %p90_p8 = scmp.eq.s32.totalorder %s2467_s14, 1 }
   0xe   : > { %s4851_s20 = scalar_select %p2883_p6, 1, 0 }
   0xf   : > { %p2468_p9 = scmp.ge.s32.totalorder %s2807_s12, 1  ;;  %p97_p10 = scmp.lt.s32.totalorder %s2807_s12, 3 }
  0x10   : > { %p2890_p11 = por %p84_p7, %p33_p0  ;;  %p2894_p12 = por %p90_p8, %p39_p3 }
  0x11   : > { %p2898_p13 = pnand %p2468_p9, %p97_p10  ;;  %s110_s26 = sshll.u32 %s4838_s1, 4  ;;  %s111_s26 = int_to_ptr.vmem [resolvable:$true] %s110_s26 }
  0x12   : > { %s4852_s21 = scalar_select %p2890_p11, 1, 0 }
  0x13   : > { %s4853_s22 = scalar_select %p2894_p12, 1, 0 }
  0x14   : > { %p2592_p1 = pneg %p2898_p13  ;;  %p2605_p2 = scmp.lt.s32.totalorder %s2807_s12, 2 }
  0x15   : > { %s121_s28 = sand.u32 1, %s2803_s11   ;;  %s2692_s3 = scalar_lea.vmem %s111_s26, 16 }
  0x16   : > { %p2911_p7 = pnand %p2592_p1, %p4841_p4  ;;  %p2918_p3 = pnand %p2605_p2, %p2877_p5 }
  0x17   : > { %s2471_s30 = sshll.u32 %s121_s28, 8  ;;  %p2693_p8 = scmp.ne.s32.totalorder %s111_s26, %s2692_s3 }
  0x18   : > { %p2694_p9 = pneg %p2911_p7  ;;  %p2700_p12 = scmp.lt.s32.totalorder %s111_s26, %s111_s26 }
  0x19   : > { %p2701_p11 = scmp.lt.s32.totalorder %s2692_s3, %s2692_s3 }
  0x1a   : > { %p2695_p10 = pnand %p2694_p9, %p2693_p8 }
  0x1b   : > { %p2702_p1 = por %p2701_p11, %p2700_p12 }
  0x1c   : > { %p2696_p0 = pneg %p2695_p10 }
  0x1e   : > { %p2703_p4 = pnand %p2702_p1, %p2696_p0 }
  0x20   : > { %2706 = shalt.err (!%p2703_p4)
}
  0x21   : > { %s2809_s4 = smov [#allocation6]   ;;  %s2582_s5 = sshll.u32 %s2807_s12, 12 }
  0x22   : > { %2595 = dma.vmem_to_smem (!%p2911_p7), %s111_s26, 16, %s2809_s4, [#allocation5]  }
  0x23   : > { %s125_s6 = scalar_lea.vmem [#allocation2], %s2471_s30  ;;  %s2930_s16 = scalar_lea.hbm %s4837_s0, %s2582_s5 }
  0x24   : > { %s132_s7 = sshll.u32 %s125_s6, 4  ;;  %s2934_s17 = scalar_lea.sflag [#allocation3], %s121_s28  ;;  %s2932_s7 = int_to_ptr.vmem [resolvable:$true] %s132_s7 }
  0x25   : > { %s2707_s19 = scalar_lea.hbm %s2930_s16, 4096  ;;  %p2709_p5 = pneg %p2918_p3 }
  0x26   : > { %p2708_p4 = scmp.ne.s32.totalorder %s2930_s16, %s2707_s19  ;;  %s2712_s26 = scalar_lea.hbm %s4837_s0, 8192 }
  0x27   : > { %p2713_p0 = scmp.lt.u32.totalorder %s2930_s16, %s4837_s0  ;;  %p2714_p2 = scmp.lt.u32.totalorder %s2712_s26, %s2707_s19 }
  0x28   : > { %p2710_p11 = pnand %p2709_p5, %p2708_p4  ;;  %p2716_p8 = scmp.lt.u32.totalorder %s2707_s19, %s2930_s16 }
  0x29   : > { %p2715_p7 = por %p2714_p2, %p2713_p0 }
  0x2a   : > { %p2711_p12 = pneg %p2710_p11 }
  0x2b   : > { %p2717_p9 = por %p2716_p8, %p2715_p7 }
  0x2d   : > { %p2718_p10 = pnand %p2717_p9, %p2711_p12 }
  0x2f   : > { %2721 = shalt.err (!%p2718_p10)
}
  0x30   : > { %s2722_s28 = scalar_lea.vmem %s2932_s7, 4096  ;;  %s2810_s3 = smov [#allocation2]  }
  0x31   : > { %p2723_p1 = scmp.ne.s32.totalorder %s2932_s7, %s2722_s28  ;;  %s2727_s4 = sshll.u32 %s2810_s3, 4  ;;  %s2728_s4 = int_to_ptr.vmem [resolvable:$false] %s2727_s4 }
  0x32   : > { %s2729_s5 = scalar_lea.vmem %s2728_s4, 8192  ;;  %p2730_p6 = scmp.lt.s32.totalorder %s2932_s7, %s2728_s4 }
  0x33   : > { %p2725_p4 = pnand %p2723_p1, %p2709_p5  ;;  %p2731_p0 = scmp.lt.s32.totalorder %s2729_s5, %s2722_s28 }
  0x35   : > { %p2726_p11 = pneg %p2725_p4  ;;  %p2732_p2 = por %p2731_p0, %p2730_p6 }
  0x37   : > { %p2733_p7 = pnand %p2732_p2, %p2726_p11 }
  0x39   : > { %2736 = shalt.err (!%p2733_p7)
}
  0x3a   : > { %s2811_s6 = smov 128   ;;  %s2812_s8 = smov 8  }
  0x3b   : > { %2599 = dma.hbm_to_vmem [thread:$0]  (!%p2918_p3), %s2930_s16, 4096, %s2932_s7, %s2934_s17, %s2811_s6, %s2811_s6, %s2812_s8  }
  0x3c   : > { %144 = sbr.rel (%p2898_p13) target bundleno = 732 (0x2dc), region = 28 }
  0x43   : > { %s2965_s14 = sand.u32 1, %s2799_s10   ;;  %p4857_p6 = scmp.ne.s32.totalorder %s4851_s20, 0 }
  0x44   : > { %s2475_s19 = sshll.u32 %s2965_s14, 8  ;;  %s147_s24 = scalar_lea.sflag [#allocation3], %s2965_s14 }
  0x45   : > { %s2971_s25 = scalar_lea.vmem [#allocation2], %s2475_s19 }
  0x46   : > { %2782 = dma.done.wait (%p4857_p6), %s147_s24, 4096  }
  0x47   : > { %2784 = vsyncadd (%p4857_p6), %s147_s24, 4294963200  ;;  %p4858_p3 = scmp.eq.s32.totalorder %s2859_s13, 0 }
  0x49   : > { %2786 = dma.done.wait (%p4858_p3), [#allocation5], 16   ;;  %p4859_p13 = pmov %p4858_p3 }
  0x4b   : > { %2788 = vsyncadd (%p4859_p13), [#allocation5], 4294967280 }
  0x4c   : > { %159 = sfence }
  0x4d   : > { %v176_v0 = vld [vmem:[%s2971_s25] sm:$0xff]  ;;  %vm208_vm0 = vcmask 130048   ;;  %v178_v1 = vld [vmem:[%s2971_s25 + $0x10] sm:$0xff]  ;;  %v177_v40 = vld [vmem:[%s2971_s25 + $0x8] sm:$0xff]  ;;  %vm338_vm1 = vcmask 1042432   ;;  %s2813_s20 = smov 3  }
  0x4e   : > { %v180_v2 = vld [vmem:[%s2971_s25 + $0x20] sm:$0xff]  ;;  %v182_v3 = vld [vmem:[%s2971_s25 + $0x30] sm:$0xff]  ;;  %v274_v6 = vsel %vm208_vm0, %v176_v0, -inf  ;;  %v210_v9 = vsel %vm208_vm0, %v178_v1, 0.0  ;;  %v275_v12 = vsel %vm208_vm0, %v178_v1, -inf  ;;  %v209_v39 = vsel %vm208_vm0, %v176_v0, 0.0 }
  0x4f   : > { %v184_v4 = vld [vmem:[%s2971_s25 + $0x40] sm:$0xff]  ;;  %v186_v5 = vld [vmem:[%s2971_s25 + $0x50] sm:$0xff]  ;;  %v212_v10 = vsel %vm208_vm0, %v180_v2, 0.0  ;;  %v214_v11 = vsel %vm208_vm0, %v182_v3, 0.0  ;;  %v276_v13 = vsel %vm208_vm0, %v180_v2, -inf  ;;  %v278_v14 = vsel %vm208_vm0, %v182_v3, -inf }
  0x50   : > { %v188_v7 = vld [vmem:[%s2971_s25 + $0x60] sm:$0xff]  ;;  %v190_v8 = vld [vmem:[%s2971_s25 + $0x70] sm:$0xff]  ;;  %v280_v15 = vsel %vm208_vm0, %v184_v4, -inf  ;;  %v282_v16 = vsel %vm208_vm0, %v186_v5, -inf  ;;  %v216_v20 = vsel %vm208_vm0, %v184_v4, 0.0  ;;  %v3005_v21 = vsel %vm208_vm0, %v186_v5, 0.0 }
  0x51   : > { %v192_v17 = vld [vmem:[%s2971_s25 + $0x80] sm:$0xff]  ;;  %v194_v18 = vld [vmem:[%s2971_s25 + $0x90] sm:$0xff]  ;;  %v277_v22 = vmax.f32 %v274_v6, %v276_v13  ;;  %v279_v23 = vmax.f32 %v275_v12, %v278_v14  ;;  %v3008_v24 = vsel %vm208_vm0, %v188_v7, 0.0  ;;  %v3011_v25 = vsel %vm208_vm0, %v190_v8, 0.0  ;;  %v179_v45 = vld [vmem:[%s2971_s25 + $0x18] sm:$0xff]  ;;  %s3131_s23 = sld [smem:[#allocation6 + $0x32]] }
  0x52   : > { %v3001_v19 = vld [vmem:[%s2971_s25 + $0xa0] sm:$0xff]  ;;  %v284_v26 = vsel %vm208_vm0, %v188_v7, -inf  ;;  %v286_v27 = vsel %vm208_vm0, %v190_v8, -inf  ;;  %v3016_v28 = vld [vmem:[%s2971_s25 + $0xb0] sm:$0xff]  ;;  %v3025_v31 = vsel %vm208_vm0, %v192_v17, 0.0  ;;  %v3028_v32 = vsel %vm208_vm0, %v194_v18, 0.0 }
  0x53   : > { %v3019_v29 = vld [vmem:[%s2971_s25 + $0xc0] sm:$0xff]  ;;  %v3022_v30 = vld [vmem:[%s2971_s25 + $0xd0] sm:$0xff]  ;;  %v281_v33 = vmax.f32 %v277_v22, %v280_v15  ;;  %v283_v34 = vmax.f32 %v279_v23, %v282_v16  ;;  %v288_v36 = vsel %vm208_vm0, %v192_v17, -inf  ;;  %v290_v37 = vsel %vm208_vm0, %v194_v18, -inf  ;;  %v181_v46 = vld [vmem:[%s2971_s25 + $0x28] sm:$0xff]  ;;  %s3133_s29 = sld [smem:[#allocation6 + $0x33]] }
  0x54   : > { %v3031_v35 = vld [vmem:[%s2971_s25 + $0xe0] sm:$0xff]  ;;  %v292_v38 = vsel %vm208_vm0, %v3001_v19, -inf  ;;  %v3040_v41 = vld [vmem:[%s2971_s25 + $0xf0] sm:$0xff]  ;;  %v211_v44 = vadd.f32 %v210_v9, %v209_v39  ;;  %v240_v47 = vsel %vm208_vm0, %v177_v40, 0.0  ;;  %v294_v48 = vsel %vm208_vm0, %v3016_v28, -inf  ;;  %v183_v55 = vld [vmem:[%s2971_s25 + $0x38] sm:$0xff] }
  0x55   : > { %v285_v42 = vmax.f32 %v281_v33, %v284_v26  ;;  %v287_v43 = vmax.f32 %v283_v34, %v286_v27  ;;  %v296_v49 = vsel %vm208_vm0, %v3019_v29, -inf  ;;  %v241_v50 = vsel %vm208_vm0, %v179_v45, 0.0  ;;  %v185_v0 = vld [vmem:[%s2971_s25 + $0x48] sm:$0xff]  ;;  %v187_v1 = vld [vmem:[%s2971_s25 + $0x58] sm:$0xff]  ;;  %s3136_s7 = sld [smem:[#allocation6 + $0x34]]  ;;  %s3144_s16 = sld [smem:[#allocation6 + $0x35]] }
  0x56   : > { %v243_v51 = vsel %vm208_vm0, %v181_v46, 0.0  ;;  %v213_v54 = vadd.f32 %v212_v10, %v211_v44  ;;  %v242_v56 = vadd.f32 %v241_v50, %v240_v47  ;;  %v298_v57 = vsel %vm208_vm0, %v3022_v30, -inf  ;;  %v189_v10 = vld [vmem:[%s2971_s25 + $0x68] sm:$0xff]  ;;  %v191_v13 = vld [vmem:[%s2971_s25 + $0x78] sm:$0xff]  ;;  %s2814_s17 = smov 127   ;;  %s3149_s26 = sld [smem:[#allocation6 + $0x36]] }
  0x57   : > { %v289_v52 = vmax.f32 %v285_v42, %v288_v36  ;;  %v291_v53 = vmax.f32 %v287_v43, %v290_v37  ;;  %v300_v58 = vsel %vm208_vm0, %v3031_v35, -inf  ;;  %v302_v59 = vsel %vm208_vm0, %v3040_v41, -inf  ;;  %v193_v23 = vld [vmem:[%s2971_s25 + $0x88] sm:$0xff]  ;;  %s2815_s27 = smov 126   ;;  %s2494_s30 = sld [smem:[#allocation6 + $0x39]] }
  0x58   : > { %v245_v60 = vsel %vm208_vm0, %v183_v55, 0.0  ;;  %v215_v63 = vadd.f32 %v214_v11, %v213_v54  ;;  %v244_v2 = vadd.f32 %v243_v51, %v242_v56  ;;  %v247_v3 = vsel %vm208_vm0, %v185_v0, 0.0  ;;  %v197_v39 = vld [vmem:[%s2971_s25 + $0xa8] sm:$0xff]  ;;  %v203_v51 = vld [vmem:[%s2971_s25 + $0xd8] sm:$0xff]  ;;  %s3153_s28 = sld [smem:[#allocation6 + $0x37]]  ;;  %s2496_s3 = sld [smem:[#allocation6 + $0x3a]] }
  0x59   : > { %v293_v61 = vmax.f32 %v289_v52, %v292_v38  ;;  %v295_v62 = vmax.f32 %v291_v53, %v294_v48  ;;  %v249_v4 = vsel %vm208_vm0, %v187_v1, 0.0  ;;  %v305_v5 = vsel %vm208_vm0, %v177_v40, -inf  ;;  %v201_v50 = vld [vmem:[%s2971_s25 + $0xc8] sm:$0xff]  ;;  %s2816_s4 = smov 125   ;;  %s2498_s5 = sld [smem:[#allocation6 + $0x3b]] }
  0x5a   : > { %v306_v6 = vsel %vm208_vm0, %v179_v45, -inf  ;;  %v217_v9 = vadd.f32 %v216_v20, %v215_v63  ;;  %v246_v12 = vadd.f32 %v245_v60, %v244_v2  ;;  %v307_v11 = vsel %vm208_vm0, %v181_v46, -inf  ;;  %v195_v20 = vld [vmem:[%s2971_s25 + $0x98] sm:$0xff]  ;;  %v205_v60 = vld [vmem:[%s2971_s25 + $0xe8] sm:$0xff]  ;;  %s2817_s6 = smov 124   ;;  %s2500_s8 = sld [smem:[#allocation6 + $0x3c]] }
  0x5b   : > { %v297_v7 = vmax.f32 %v293_v61, %v296_v49  ;;  %v299_v8 = vmax.f32 %v295_v62, %v298_v57  ;;  %v309_v14 = vsel %vm208_vm0, %v183_v55, -inf  ;;  %v311_v15 = vsel %vm208_vm0, %v185_v0, -inf  ;;  %v207_v61 = vld [vmem:[%s2971_s25 + $0xf8] sm:$0xff]  ;;  %s2818_s24 = smov 123   ;;  %p4889_p12 = scmp.ne.s32.totalorder %s4852_s21, 0 }
  0x5c   : > { %v313_v16 = vsel %vm208_vm0, %v187_v1, -inf  ;;  %v219_v22 = vadd.f32 %v3005_v21, %v217_v9  ;;  %v248_v26 = vadd.f32 %v247_v3, %v246_v12  ;;  %v251_v27 = vsel %vm208_vm0, %v189_v10, 0.0  ;;  %v199_v21 = vld [vmem:[%s2971_s25 + $0xb8] sm:$0xff] }
  0x5d   : > { %v301_v17 = vmax.f32 %v297_v7, %v300_v58  ;;  %v303_v18 = vmax.f32 %v299_v8, %v302_v59  ;;  %v308_v33 = vmax.f32 %v305_v5, %v307_v11  ;;  %v310_v34 = vmax.f32 %v306_v6, %v309_v14 }
  0x5e   : > { %v315_v36 = vsel %vm208_vm0, %v189_v10, -inf  ;;  %v221_v38 = vadd.f32 %v3008_v24, %v219_v22  ;;  %v250_v40 = vadd.f32 %v249_v4, %v248_v26  ;;  %v317_v42 = vsel %vm208_vm0, %v191_v13, -inf }
  0x5f   : > { %v3076_v37 = vmax.f32 %v301_v17, %v303_v18  ;;  %v253_v43 = vsel %vm208_vm0, %v191_v13, 0.0  ;;  %v312_v44 = vmax.f32 %v308_v33, %v311_v15  ;;  %v314_v45 = vmax.f32 %v310_v34, %v313_v16 }
  0x60   : > { %v319_v46 = vsel %vm208_vm0, %v193_v23, -inf  ;;  %v223_v48 = vadd.f32 %v3011_v25, %v221_v38  ;;  %v252_v49 = vadd.f32 %v251_v27, %v250_v40  ;;  %v321_v24 = vsel %vm208_vm0, %v195_v20, -inf }
  0x61   : > { %v367_v47 = vrot.slane %v3076_v37, 5  ;;  %v255_v52 = vsel %vm208_vm0, %v193_v23, 0.0  ;;  %v316_v53 = vmax.f32 %v312_v44, %v315_v36  ;;  %v318_v54 = vmax.f32 %v314_v45, %v317_v42 }
  0x62   : > { %v323_v55 = vsel %vm208_vm0, %v197_v39, -inf  ;;  %v225_v57 = vadd.f32 %v3025_v31, %v223_v48  ;;  %v254_v58 = vadd.f32 %v253_v43, %v252_v49  ;;  %v325_v25 = vsel %vm208_vm0, %v199_v21, -inf }
  0x63   : > { %v372_v56 = vsel %vm338_vm1, 0.0, %v367_v47  ;;  %v228_v59 = vsel %vm208_vm0, %v3001_v19, 0.0  ;;  %v257_v62 = vsel %vm208_vm0, %v195_v20, 0.0  ;;  %v320_v63 = vmax.f32 %v316_v53, %v319_v46 }
  0x64   : > { %376 = vrot.lane.b32.xlu1 %v372_v56, %s2813_s20  ;;  %v322_v0 = vmax.f32 %v318_v54, %v321_v24  ;;  %v256_v1 = vadd.f32 %v255_v52, %v254_v58  ;;  %v327_v2 = vsel %vm208_vm0, %v201_v50, -inf  ;;  %v329_v31 = vsel %vm208_vm0, %v203_v51, -inf }
  0x65   : > { %v227_v3 = vadd.f32 %v3028_v32, %v225_v57  ;;  %v259_v4 = vsel %vm208_vm0, %v197_v39, 0.0  ;;  %v324_v5 = vmax.f32 %v320_v63, %v323_v55  ;;  %v230_v6 = vsel %vm208_vm0, %v3016_v28, 0.0 }
  0x66   : > { %v326_v19 = vmax.f32 %v322_v0, %v325_v25  ;;  %v331_v7 = vsel %vm208_vm0, %v205_v60, -inf  ;;  %v333_v8 = vsel %vm208_vm0, %v207_v61, -inf  ;;  %v258_v10 = vadd.f32 %v257_v62, %v256_v1 }
  0x67   : > { %v229_v9 = vadd.f32 %v228_v59, %v227_v3  ;;  %v328_v12 = vmax.f32 %v324_v5, %v327_v2  ;;  %v232_v11 = vsel %vm208_vm0, %v3019_v29, 0.0  ;;  %v261_v32 = vsel %vm208_vm0, %v199_v21, 0.0 }
  0x68   : > { %v330_v13 = vmax.f32 %v326_v19, %v329_v31  ;;  %v260_v15 = vadd.f32 %v259_v4, %v258_v10  ;;  %v234_v28 = vsel %vm208_vm0, %v3022_v30, 0.0  ;;  %v263_v18 = vsel %vm208_vm0, %v201_v50, 0.0 }
  0x69   : > { %v231_v14 = vadd.f32 %v230_v6, %v229_v9  ;;  %v332_v16 = vmax.f32 %v328_v12, %v331_v7  ;;  %v236_v20 = vsel %vm208_vm0, %v3031_v35, 0.0  ;;  %v265_v27 = vsel %vm208_vm0, %v203_v51, 0.0 }
  0x6a   : > { %v334_v17 = vmax.f32 %v330_v13, %v333_v8  ;;  %v262_v23 = vadd.f32 %v261_v32, %v260_v15  ;;  %v238_v36 = vsel %vm208_vm0, %v3040_v41, 0.0  ;;  %v267_v37 = vsel %vm208_vm0, %v205_v60, 0.0 }
  0x6b   : > { %v233_v22 = vadd.f32 %v232_v11, %v231_v14  ;;  %v269_v42 = vsel %vm208_vm0, %v207_v61, 0.0  ;;  %vm357_vm2 = vcmask 23552   ;;  %vm361_vm3 = vcmask 154624  }
  0x6c   : > { %v335_v26 = vmax.f32 %v332_v16, %v334_v17  ;;  %v264_v33 = vadd.f32 %v263_v18, %v262_v23  ;;  %v418_v50 = vstv %s3131_s23  ;;  %v446_v54 = vstv %s3133_s29  ;;  %s2819_s23 = smov 122   ;;  %s2504_s29 = sld [smem:[#allocation6 + $0x3e]] }
  0x6d   : > { %v235_v29 = vadd.f32 %v234_v28, %v233_v22  ;;  %v474_v56 = vstv %s3136_s7  ;;  %v502_v58 = vstv %s3144_s16  ;;  %v530_v63 = vstv %s3149_s26  ;;  %s2508_s7 = sld [smem:[#allocation6 + $0x40]]  ;;  %s2510_s16 = sld [smem:[#allocation6 + $0x41]] }
  0x6e   : > { %v368_v34 = vrot.slane %v335_v26, 5  ;;  %v266_v30 = vadd.f32 %v265_v27, %v264_v33  ;;  %v628_v0 = vstv %s2494_s30  ;;  %v558_v2 = vstv %s3153_s28  ;;  %s2512_s26 = sld [smem:[#allocation6 + $0x42]]  ;;  %s2514_s30 = sld [smem:[#allocation6 + $0x43]] }
  0x6f   : > { %v237_v38 = vadd.f32 %v236_v20, %v235_v29  ;;  %v670_v19 = vstv %s2496_s3  ;;  %v712_v10 = vstv %s2498_s5  ;;  %vm580_vm4 = vcmask 1046528   ;;  %s2516_s28 = sld [smem:[#allocation6 + $0x44]]  ;;  %s2518_s3 = sld [smem:[#allocation6 + $0x45]] }
  0x70   : > { %v369_v39 = vsel %vm338_vm1, %v367_v47, %v368_v34  ;;  %v373_v40 = vsel %vm338_vm1, %v368_v34, 0.0  ;;  %v268_v21 = vadd.f32 %v267_v37, %v266_v30  ;;  %v754_v23 = vstv %s2500_s8  ;;  %s3275_s5 = sld [smem:[#allocation6 + $0x1]]  ;;  %s3282_s8 = sld [smem:[#allocation6 + $0x2]] }
  0x71   : > { %378 = vrot.lane.b32.xlu0 %v369_v39, %s2813_s20  ;;  %380 = vrot.lane.b32.xlu1 %v373_v40, %s2813_s20  ;;  %v239_v35 = vadd.f32 %v238_v36, %v237_v38  ;;  %vm867_vm5 = vcmask 1045504   ;;  %vm1154_vm6 = vcmask 1044480   ;;  %vm1441_vm7 = vcmask 1043456  }
  0x72   : > { %v270_v44 = vadd.f32 %v269_v42, %v268_v21  ;;  %vm2014_vm8 = vcmask 1041408  }
  0x73   : > { %v272_v43 = vmul.f32 0.0625, %v239_v35 }
  0x74   : > { %v273_v41 = vmul.f32 0.0625, %v270_v44 }
  0x75   : > { %v339_v45 = vrot.slane %v272_v43, 5 }
  0x76   : > { %v340_v48 = vrot.slane %v273_v41, 5  ;;  %v838_v41 = vstv %s2504_s29  ;;  %s3298_s29 = sld [smem:[#allocation6 + $0x4]] }
  0x77   : > { %v344_v46 = vsel %vm338_vm1, 0.0, %v339_v45 }
  0x78   : > { %348 = vrot.lane.b32.xlu0 %v344_v46, %s2813_s20  ;;  %v341_v47 = vsel %vm338_vm1, %v339_v45, %v340_v48  ;;  %v345_v49 = vsel %vm338_vm1, %v340_v48, 0.0 }
  0x79   : > { %352 = vrot.lane.b32.xlu1 %v345_v49, %s2813_s20 }
  0x7c   : > { %350 = vrot.lane.b32.xlu0 %v341_v47, %s2813_s20  ;;  %s2502_s20 = sld [smem:[#allocation6 + $0x3d]] }
  0x82   : > { %v796_v38 = vstv %s2502_s20  ;;  %s3290_s20 = sld [smem:[#allocation6 + $0x3]] }
  0xd6   : > { %v377_v24 = vpop.permute.xlu1 %376 }
  0xd7   : > { %v385_v51 = vsel %vm357_vm2, 0.0, %v377_v24 }
  0xd8   : > { %v3140_v52 = vsel %vm361_vm3, %v385_v51, 0.0 }
  0xd9   : > { %v419_v53 = vmul.f32 %v418_v50, %v3140_v52  ;;  %v447_v55 = vmul.f32 %v446_v54, %v3140_v52  ;;  %v475_v57 = vmul.f32 %v474_v56, %v3140_v52  ;;  %v503_v61 = vmul.f32 %v502_v58, %v3140_v52 }
  0xda   : > { %v531_v1 = vmul.f32 %v530_v63, %v3140_v52  ;;  %v629_v5 = vmul.f32 %v628_v0, %v3140_v52  ;;  %v559_v8 = vmul.f32 %v558_v2, %v3140_v52  ;;  %v671_v9 = vmul.f32 %v670_v19, %v3140_v52 }
  0xdb   : > { %423 = vrot.lane.b32.xlu0 %v419_v53, %s2814_s17  ;;  %v713_v22 = vmul.f32 %v712_v10, %v3140_v52  ;;  %v755_v37 = vmul.f32 %v754_v23, %v3140_v52  ;;  %v797_v45 = vmul.f32 %v796_v38, %v3140_v52  ;;  %v839_v51 = vmul.f32 %v838_v41, %v3140_v52 }
  0xdc   : > { %v635_v14 = vrot.slane %v629_v5, 1  ;;  %v677_v18 = vrot.slane %v671_v9, 1  ;;  %v915_v53 = vstv %s2508_s7  ;;  %s3306_s7 = sld [smem:[#allocation6 + $0x5]] }
  0xdd   : > { %v719_v36 = vrot.slane %v713_v22, 1  ;;  %v761_v44 = vrot.slane %v755_v37, 1 }
  0xdf   : > { %451 = vrot.lane.b32.xlu0 %v447_v55, %s2815_s27 }
  0xe3   : > { %v379_v25 = vpop.permute.xlu0 %378  ;;  %479 = vrot.lane.b32.xlu0 %v475_v57, %s2816_s4  ;;  %v381_v12 = vpop.permute.xlu1 %380 }
  0xe4   : > { %v386_v59 = vsel %vm357_vm2, 0.0, %v379_v25  ;;  %v387_v28 = vsel %vm357_vm2, 0.0, %v381_v12 }
  0xe5   : > { %v3159_v60 = vsel %vm361_vm3, %v386_v59, 0.0  ;;  %v3202_v33 = vsel %vm361_vm3, %v387_v28, 0.0 }
  0xe6   : > { %v420_v62 = vmul.f32 %v418_v50, %v3159_v60  ;;  %v448_v31 = vmul.f32 %v446_v54, %v3159_v60  ;;  %v3170_v4 = vmul.f32 %v628_v0, %v3159_v60  ;;  %v476_v13 = vmul.f32 %v474_v56, %v3159_v60 }
  0xe7   : > { %507 = vrot.lane.b32.xlu0 %v503_v61, %s2817_s6  ;;  %v3184_v15 = vmul.f32 %v670_v19, %v3159_v60  ;;  %v504_v26 = vmul.f32 %v502_v58, %v3159_v60  ;;  %v3198_v29 = vmul.f32 %v712_v10, %v3159_v60  ;;  %v532_v30 = vmul.f32 %v530_v63, %v3159_v60 }
  0xe8   : > { %425 = vrot.lane.b32.xlu1 %v420_v62, %s2814_s17  ;;  %v636_v32 = vrot.slane %v3170_v4, 1  ;;  %v3210_v42 = vmul.f32 %v754_v23, %v3159_v60  ;;  %v631_v35 = vmul.f32 %v628_v0, %v3202_v33  ;;  %v560_v46 = vmul.f32 %v558_v2, %v3159_v60 }
  0xe9   : > { %v678_v27 = vrot.slane %v3184_v15, 1  ;;  %v720_v40 = vrot.slane %v3198_v29, 1  ;;  %v798_v49 = vmul.f32 %v796_v38, %v3159_v60  ;;  %v673_v50 = vmul.f32 %v670_v19, %v3202_v33 }
  0xea   : > { %v349_v3 = vpop.permute.xlu0 %348  ;;  %v637_v20 = vsel %vm580_vm4, %v635_v14, %v636_v32  ;;  %v762_v47 = vrot.slane %v3210_v42, 1  ;;  %v638_v24 = vrot.slane %v631_v35, 1  ;;  %v803_v56 = vrot.slane %v797_v45, 1 }
  0xeb   : > { %v358_v6 = vsel %vm357_vm2, 0.0, %v349_v3  ;;  %535 = vrot.lane.b32.xlu0 %v531_v1, %s2818_s24  ;;  %v353_v34 = vpop.permute.xlu1 %352  ;;  %v679_v39 = vsel %vm580_vm4, %v677_v18, %v678_v27  ;;  %v721_v48 = vsel %vm580_vm4, %v719_v36, %v720_v40  ;;  %v804_v55 = vrot.slane %v798_v49, 1 }
  0xec   : > { %453 = vrot.lane.b32.xlu1 %v448_v31, %s2815_s27  ;;  %v3177_v7 = vsel %vm361_vm3, %v358_v6, 0.0  ;;  %v360_v21 = vsel %vm357_vm2, 0.0, %v353_v34  ;;  %v763_v54 = vsel %vm580_vm4, %v761_v44, %v762_v47  ;;  %v3230_v57 = vmul.f32 %v838_v41, %v3159_v60 }
  0xed   : > { %v3217_v43 = vsel %vm361_vm3, %v360_v21, 0.0  ;;  %v639_v58 = vsel %vm580_vm4, %v636_v32, %v638_v24  ;;  %v680_v25 = vrot.slane %v673_v50, 1  ;;  %v715_v59 = vmul.f32 %v712_v10, %v3202_v33 }
  0xee   : > { %v351_v11 = vpop.permute.xlu0 %350  ;;  %v916_v61 = vmul.f32 %v915_v53, %v3140_v52  ;;  %v957_v62 = vstv %s2510_s16  ;;  %v805_v63 = vsel %vm580_vm4, %v803_v56, %v804_v55  ;;  %v846_v0 = vrot.slane %v3230_v57, 1  ;;  %s2493_s16 = sld [smem:[#allocation6 + $0x8]] }
  0xef   : > { %v359_v16 = vsel %vm357_vm2, 0.0, %v351_v11  ;;  %563 = vrot.lane.b32.xlu0 %v559_v8, %s2819_s23  ;;  %v845_v1 = vrot.slane %v839_v51, 1  ;;  %v917_v2 = vmul.f32 %v915_v53, %v3159_v60  ;;  %v681_v31 = vsel %vm580_vm4, %v678_v27, %v680_v25 }
  0xf0   : > { %481 = vrot.lane.b32.xlu1 %v476_v13, %s2816_s4  ;;  %v3190_v17 = vsel %vm361_vm3, %v359_v16, 0.0  ;;  %v722_v3 = vrot.slane %v715_v59, 1  ;;  %v757_v4 = vmul.f32 %v754_v23, %v3202_v33  ;;  %v958_v5 = vmul.f32 %v957_v62, %v3140_v52 }
  0xf1   : > { %v847_v19 = vsel %vm580_vm4, %v845_v1, %v846_v0  ;;  %v923_v6 = vrot.slane %v917_v2, 2  ;;  %v922_v8 = vrot.slane %v916_v61, 2  ;;  %v959_v9 = vmul.f32 %v957_v62, %v3159_v60 }
  0xf2   : > { %v723_v10 = vsel %vm580_vm4, %v720_v40, %v722_v3  ;;  %v764_v12 = vrot.slane %v757_v4, 1  ;;  %v799_v13 = vmul.f32 %v796_v38, %v3202_v33  ;;  %v999_v11 = vstv %s2512_s26  ;;  %s3313_s26 = sld [smem:[#allocation6 + $0x6]] }
  0xf3   : > { %640 = vrot.lane.b32.xlu0 %v637_v20, %s2814_s17  ;;  %v964_v32 = vrot.slane %v958_v5, 2  ;;  %v1041_v14 = vstv %s2514_s30  ;;  %v924_v15 = vsel %vm867_vm5, %v922_v8, %v923_v6  ;;  %v965_v16 = vrot.slane %v959_v9, 2  ;;  %s2495_s30 = sld [smem:[#allocation6 + $0x9]] }
  0xf4   : > { %509 = vrot.lane.b32.xlu1 %v504_v26, %s2817_s6  ;;  %v1001_v28 = vmul.f32 %v999_v11, %v3159_v60  ;;  %v1000_v18 = vmul.f32 %v999_v11, %v3140_v52  ;;  %v765_v22 = vsel %vm580_vm4, %v762_v47, %v764_v12  ;;  %v806_v23 = vrot.slane %v799_v13, 1 }
  0xf5   : > { %v841_v26 = vmul.f32 %v838_v41, %v3202_v33  ;;  %v1042_v20 = vmul.f32 %v1041_v14, %v3140_v52  ;;  %v1083_v27 = vstv %s2516_s28  ;;  %v966_v29 = vsel %vm867_vm5, %v964_v32, %v965_v16  ;;  %s2497_s28 = sld [smem:[#allocation6 + $0xa]] }
  0xf6   : > { %v1007_v34 = vrot.slane %v1001_v28, 2  ;;  %v1006_v36 = vrot.slane %v1000_v18, 2  ;;  %v1043_v37 = vmul.f32 %v1041_v14, %v3159_v60  ;;  %v807_v38 = vsel %vm580_vm4, %v804_v55, %v806_v23 }
  0xf7   : > { %682 = vrot.lane.b32.xlu0 %v679_v39, %s2815_s27  ;;  %v918_v39 = vmul.f32 %v915_v53, %v3202_v33  ;;  %v1084_v40 = vmul.f32 %v1083_v27, %v3140_v52  ;;  %v1125_v42 = vstv %s2518_s3  ;;  %v1048_v44 = vrot.slane %v1042_v20, 2  ;;  %s2499_s3 = sld [smem:[#allocation6 + $0xb]] }
  0xf8   : > { %537 = vrot.lane.b32.xlu1 %v532_v30, %s2818_s24  ;;  %v848_v30 = vrot.slane %v841_v26, 1  ;;  %v1008_v35 = vsel %vm867_vm5, %v1006_v36, %v1007_v34  ;;  %v1049_v21 = vrot.slane %v1043_v37, 2  ;;  %v1085_v45 = vmul.f32 %v1083_v27, %v3159_v60 }
  0xf9   : > { %v1126_v47 = vmul.f32 %v1125_v42, %v3140_v52  ;;  %v1090_v50 = vrot.slane %v1084_v40, 2  ;;  %v1127_v51 = vmul.f32 %v1125_v42, %v3159_v60  ;;  %v1002_v55 = vmul.f32 %v999_v11, %v3202_v33 }
  0xfa   : > { %v849_v41 = vsel %vm580_vm4, %v846_v0, %v848_v30  ;;  %v1050_v49 = vsel %vm867_vm5, %v1048_v44, %v1049_v21  ;;  %v1091_v24 = vrot.slane %v1085_v45, 2  ;;  %v1044_v61 = vmul.f32 %v1041_v14, %v3202_v33 }
  0xfb   : > { %724 = vrot.lane.b32.xlu0 %v721_v48, %s2816_s4  ;;  %v960_v48 = vmul.f32 %v957_v62, %v3202_v33  ;;  %v1133_v57 = vrot.slane %v1127_v51, 2  ;;  %v1009_v59 = vrot.slane %v1002_v55, 2  ;;  %v1086_v2 = vmul.f32 %v1083_v27, %v3202_v33 }
  0xfc   : > { %565 = vrot.lane.b32.xlu1 %v560_v46, %s2819_s23  ;;  %v925_v46 = vrot.slane %v918_v39, 2  ;;  %v1092_v56 = vsel %vm867_vm5, %v1090_v50, %v1091_v24  ;;  %v1051_v1 = vrot.slane %v1044_v61, 2  ;;  %v433_v3 = vstv %s3282_s8  ;;  %s2503_s8 = sld [smem:[#allocation6 + $0xd]] }
  0xfd   : > { %v1010_v0 = vsel %vm867_vm5, %v1007_v34, %v1009_v59  ;;  %v1093_v5 = vrot.slane %v1086_v2, 2  ;;  %v461_v8 = vstv %s3290_s20  ;;  %v489_v13 = vstv %s3298_s29  ;;  %s2507_s20 = sld [smem:[#allocation6 + $0xf]]  ;;  %s2509_s29 = sld [smem:[#allocation6 + $0x10]] }
  0xfe   : > { %v926_v53 = vsel %vm867_vm5, %v923_v6, %v925_v46  ;;  %v1052_v4 = vsel %vm867_vm5, %v1049_v21, %v1051_v1  ;;  %v434_v6 = vmul.f32 %v433_v3, %v3177_v7  ;;  %v462_v12 = vmul.f32 %v461_v8, %v3177_v7 }
  0xff   : > { %766 = vrot.lane.b32.xlu0 %v763_v54, %s2817_s6  ;;  %v967_v54 = vrot.slane %v960_v48, 2  ;;  %v1094_v9 = vsel %vm867_vm5, %v1091_v24, %v1093_v5  ;;  %v490_v14 = vmul.f32 %v489_v13, %v3177_v7  ;;  %v435_v18 = vmul.f32 %v433_v3, %v3190_v17 }
 0x100   : > { %642 = vrot.lane.b32.xlu1 %v639_v58, %s2814_s17  ;;  %v1132_v58 = vrot.slane %v1126_v47, 2  ;;  %v650_v20 = vstv %s2495_s30  ;;  %v463_v27 = vmul.f32 %v461_v8, %v3190_v17  ;;  %v692_v34 = vstv %s2497_s28  ;;  %s2517_s30 = sld [smem:[#allocation6 + $0x14]]  ;;  %s2521_s28 = sld [smem:[#allocation6 + $0x16]] }
 0x101   : > { %v968_v25 = vsel %vm867_vm5, %v965_v16, %v967_v54  ;;  %v608_v16 = vstv %s2493_s16  ;;  %v652_v30 = vmul.f32 %v650_v20, %v3190_v17  ;;  %v693_v39 = vmul.f32 %v692_v34, %v3177_v7  ;;  %s2513_s16 = sld [smem:[#allocation6 + $0x12]] }
 0x102   : > { %v1134_v62 = vsel %vm867_vm5, %v1132_v58, %v1133_v57  ;;  %v609_v23 = vmul.f32 %v608_v16, %v3177_v7  ;;  %v610_v26 = vmul.f32 %v608_v16, %v3190_v17  ;;  %v3338_v40 = vmul.f32 %v692_v34, %v3190_v17 }
 0x103   : > { %808 = vrot.lane.b32.xlu0 %v805_v63, %s2818_s24  ;;  %v405_v63 = vstv %s3275_s5  ;;  %s2501_s5 = sld [smem:[#allocation6 + $0xc]]  ;;  %v658_v44 = vrot.slane %v652_v30, 1  ;;  %v734_v45 = vstv %s2499_s3  ;;  %v611_v50 = vmul.f32 %v608_v16, %v3217_v43  ;;  %s2522_s3 = sld [smem:[#allocation6 + $0x47]] }
 0x104   : > { %684 = vrot.lane.b32.xlu1 %v681_v31, %s2815_s27  ;;  %v406_v31 = vmul.f32 %v405_v63, %v3177_v7  ;;  %v407_v32 = vmul.f32 %v405_v63, %v3190_v17  ;;  %v615_v36 = vrot.slane %v609_v23, 1  ;;  %v616_v37 = vrot.slane %v610_v26, 1 }
 0x105   : > { %v700_v46 = vrot.slane %v3338_v40, 1  ;;  %v3349_v24 = vmul.f32 %v734_v45, %v3190_v17  ;;  %v818_v55 = vstv %s2503_s8  ;;  %v618_v59 = vrot.slane %v611_v50, 1  ;;  %s2524_s8 = sld [smem:[#allocation6 + $0x48]] }
 0x106   : > { %v653_v61 = vmul.f32 %v650_v20, %v3217_v43  ;;  %v3366_v63 = vmul.f32 %v818_v55, %v3190_v17  ;;  %v895_v5 = vstv %s2507_s20  ;;  %s2525_s20 = sld [smem:[#allocation6 + $0x18]] }
 0x107   : > { %850 = vrot.lane.b32.xlu0 %v847_v19, %s2819_s23  ;;  %v1128_v19 = vmul.f32 %v1125_v42, %v3202_v33  ;;  %v491_v42 = vmul.f32 %v489_v13, %v3190_v17 }
 0x108   : > { %726 = vrot.lane.b32.xlu1 %v723_v10, %s2816_s4  ;;  %v660_v3 = vrot.slane %v653_v61, 1 }
 0x109   : > { %v1135_v10 = vrot.slane %v1128_v19, 2  ;;  %v776_v51 = vstv %s2501_s5  ;;  %s2523_s5 = sld [smem:[#allocation6 + $0x17]] }
 0x10a   : > { %v777_v58 = vmul.f32 %v776_v51, %v3177_v7 }
 0x10b   : > { %927 = vrot.lane.b32.xlu0 %v924_v15, %s2814_s17  ;;  %v1136_v11 = vsel %vm867_vm5, %v1133_v57, %v1135_v10  ;;  %v517_v15 = vstv %s3306_s7  ;;  %v742_v57 = vrot.slane %v3349_v24, 1  ;;  %s2511_s7 = sld [smem:[#allocation6 + $0x11]]  ;;  %v3378_v10 = vmul.f32 %v895_v5, %v3190_v17 }
 0x10c   : > { %768 = vrot.lane.b32.xlu1 %v765_v22, %s2817_s6  ;;  %v518_v28 = vmul.f32 %v517_v15, %v3177_v7  ;;  %v545_v22 = vstv %s3313_s26  ;;  %v519_v48 = vmul.f32 %v517_v15, %v3190_v17  ;;  %v783_v1 = vrot.slane %v777_v58, 1  ;;  %s2515_s26 = sld [smem:[#allocation6 + $0x13]] }
 0x10d   : > { %v898_v24 = vmul.f32 %v895_v5, %v3217_v43 }
 0x10f   : > { %969 = vrot.lane.b32.xlu0 %v966_v29, %s2815_s27  ;;  %v546_v29 = vmul.f32 %v545_v22, %v3177_v7  ;;  %v905_v61 = vrot.slane %v898_v24, 2 }
 0x110   : > { %810 = vrot.lane.b32.xlu1 %v807_v38, %s2818_s24  ;;  %v651_v38 = vmul.f32 %v650_v20, %v3177_v7 }
 0x111   : > { %v979_v16 = vstv %s2511_s7  ;;  %s2527_s7 = sld [smem:[#allocation6 + $0x19]] }
 0x112   : > { %v657_v21 = vrot.slane %v651_v38, 1  ;;  %v1063_v50 = vstv %s2515_s26  ;;  %s2529_s26 = sld [smem:[#allocation6 + $0x1a]] }
 0x113   : > { %1011 = vrot.lane.b32.xlu0 %v1008_v35, %s2816_s4  ;;  %v617_v35 = vsel %vm580_vm4, %v615_v36, %v616_v37  ;;  %v3400_v36 = vmul.f32 %v979_v16, %v3190_v17  ;;  %v1064_v58 = vmul.f32 %v1063_v50, %v3177_v7 }
 0x114   : > { %852 = vrot.lane.b32.xlu1 %v849_v41, %s2819_s23  ;;  %v699_v41 = vrot.slane %v693_v39, 1  ;;  %v659_v47 = vsel %vm580_vm4, %v657_v21, %v658_v44 }
 0x116   : > { %v701_v54 = vsel %vm580_vm4, %v699_v41, %v700_v46 }
 0x117   : > { %1053 = vrot.lane.b32.xlu0 %v1050_v49, %s2817_s6  ;;  %v735_v49 = vmul.f32 %v734_v45, %v3177_v7 }
 0x118   : > { %929 = vrot.lane.b32.xlu1 %v926_v53, %s2814_s17  ;;  %v547_v53 = vmul.f32 %v545_v22, %v3190_v17 }
 0x11b   : > { %1095 = vrot.lane.b32.xlu0 %v1092_v56, %s2818_s24  ;;  %v741_v56 = vrot.slane %v735_v49, 1 }
 0x11c   : > { %971 = vrot.lane.b32.xlu1 %v968_v25, %s2815_s27  ;;  %v3359_v25 = vmul.f32 %v776_v51, %v3190_v17 }
 0x11e   : > { %v784_v2 = vrot.slane %v3359_v25, 1  ;;  %v3430_v25 = vmul.f32 %v1063_v50, %v3190_v17 }
 0x11f   : > { %1137 = vrot.lane.b32.xlu0 %v1134_v62, %s2819_s23  ;;  %v819_v62 = vmul.f32 %v818_v55, %v3177_v7 }
 0x120   : > { %1013 = vrot.lane.b32.xlu1 %v1010_v0, %s2816_s4  ;;  %v743_v0 = vsel %vm580_vm4, %v741_v56, %v742_v57  ;;  %v785_v8 = vsel %vm580_vm4, %v783_v1, %v784_v2 }
 0x121   : > { %v825_v19 = vrot.slane %v819_v62, 1 }
 0x123   : > { %410 = vrot.lane.b32.xlu0 %v406_v31, %s2814_s17  ;;  %v619_v31 = vsel %vm580_vm4, %v616_v37, %v618_v59 }
 0x124   : > { %1055 = vrot.lane.b32.xlu1 %v1052_v4, %s2817_s6  ;;  %v695_v4 = vmul.f32 %v692_v34, %v3217_v43  ;;  %v980_v34 = vmul.f32 %v979_v16, %v3177_v7 }
 0x126   : > { %v702_v13 = vrot.slane %v695_v4, 1 }
 0x127   : > { %438 = vrot.lane.b32.xlu0 %v434_v6, %s2815_s27  ;;  %v826_v6 = vrot.slane %v3366_v63, 1 }
 0x128   : > { %1097 = vrot.lane.b32.xlu1 %v1094_v9, %s2818_s24  ;;  %v896_v9 = vmul.f32 %v895_v5, %v3177_v7  ;;  %v703_v26 = vsel %vm580_vm4, %v700_v46, %v702_v13 }
 0x129   : > { %v827_v15 = vsel %vm580_vm4, %v825_v19, %v826_v6 }
 0x12b   : > { %466 = vrot.lane.b32.xlu0 %v462_v12, %s2816_s4  ;;  %v661_v12 = vsel %vm580_vm4, %v658_v44, %v660_v3  ;;  %v986_v44 = vrot.slane %v980_v34, 2  ;;  %v1071_v3 = vrot.slane %v3430_v25, 2 }
 0x12c   : > { %1139 = vrot.lane.b32.xlu1 %v1136_v11, %s2819_s23  ;;  %v737_v11 = vmul.f32 %v734_v45, %v3217_v43  ;;  %v987_v45 = vrot.slane %v3400_v36, 2 }
 0x12e   : > { %v744_v20 = vrot.slane %v737_v11, 1 }
 0x12f   : > { %494 = vrot.lane.b32.xlu0 %v490_v14, %s2817_s6 }
 0x130   : > { %412 = vrot.lane.b32.xlu1 %v407_v32, %s2814_s17  ;;  %v937_v32 = vstv %s2509_s29  ;;  %v745_v39 = vsel %vm580_vm4, %v742_v57, %v744_v20  ;;  %s2526_s29 = sld [smem:[#allocation6 + $0x49]] }
 0x131   : > { %v938_v22 = vmul.f32 %v937_v32, %v3177_v7  ;;  %v3390_v23 = vmul.f32 %v937_v32, %v3190_v17  ;;  %v940_v62 = vmul.f32 %v937_v32, %v3217_v43 }
 0x133   : > { %522 = vrot.lane.b32.xlu0 %v518_v28, %s2818_s24  ;;  %v902_v28 = vrot.slane %v896_v9, 2  ;;  %v944_v38 = vrot.slane %v938_v22, 2  ;;  %v945_v30 = vrot.slane %v3390_v23, 2  ;;  %v947_v19 = vrot.slane %v940_v62, 2 }
 0x134   : > { %440 = vrot.lane.b32.xlu1 %v435_v18, %s2815_s27  ;;  %v903_v18 = vrot.slane %v3378_v10, 2 }
 0x135   : > { %v946_v41 = vsel %vm867_vm5, %v944_v38, %v945_v30 }
 0x136   : > { %v904_v37 = vsel %vm867_vm5, %v902_v28, %v903_v18  ;;  %v906_v5 = vsel %vm867_vm5, %v903_v18, %v905_v61  ;;  %v948_v28 = vsel %vm867_vm5, %v945_v30, %v947_v19 }
 0x137   : > { %550 = vrot.lane.b32.xlu0 %v546_v29, %s2819_s23 }
 0x138   : > { %468 = vrot.lane.b32.xlu1 %v463_v27, %s2816_s4  ;;  %v779_v27 = vmul.f32 %v776_v51, %v3217_v43 }
 0x13a   : > { %v786_v40 = vrot.slane %v779_v27, 1 }
 0x13b   : > { %620 = vrot.lane.b32.xlu0 %v617_v35, %s2814_s17  ;;  %v1021_v35 = vstv %s2513_s16  ;;  %s2528_s16 = sld [smem:[#allocation6 + $0x4a]] }
 0x13c   : > { %496 = vrot.lane.b32.xlu1 %v491_v42, %s2817_s6  ;;  %v821_v42 = vmul.f32 %v818_v55, %v3217_v43  ;;  %v1022_v46 = vmul.f32 %v1021_v35, %v3177_v7  ;;  %v1024_v22 = vmul.f32 %v1021_v35, %v3217_v43 }
 0x13e   : > { %v828_v49 = vrot.slane %v821_v42, 1  ;;  %v1028_v56 = vrot.slane %v1022_v46, 2  ;;  %v1031_v30 = vrot.slane %v1024_v22, 2 }
 0x13f   : > { %662 = vrot.lane.b32.xlu0 %v659_v47, %s2815_s27  ;;  %v787_v47 = vsel %vm580_vm4, %v784_v2, %v786_v40  ;;  %v1224_v40 = vstv %s2523_s5  ;;  %s3606_s5 = sld [smem:[#allocation6]] }
 0x140   : > { %524 = vrot.lane.b32.xlu1 %v519_v48, %s2818_s24  ;;  %v3414_v48 = vmul.f32 %v1021_v35, %v3190_v17  ;;  %v829_v59 = vsel %vm580_vm4, %v826_v6, %v828_v49  ;;  %v982_v6 = vmul.f32 %v979_v16, %v3217_v43 }
 0x142   : > { %v1029_v57 = vrot.slane %v3414_v48, 2  ;;  %v989_v18 = vrot.slane %v982_v6, 2  ;;  %v1225_v48 = vmul.f32 %v1224_v40, %v3177_v7 }
 0x143   : > { %704 = vrot.lane.b32.xlu0 %v701_v54, %s2816_s4  ;;  %v3423_v54 = vstv %s2517_s30  ;;  %s2530_s30 = sld [smem:[#allocation6 + $0x4b]] }
 0x144   : > { %552 = vrot.lane.b32.xlu1 %v547_v53, %s2819_s23  ;;  %v988_v53 = vsel %vm867_vm5, %v986_v44, %v987_v45  ;;  %v1030_v2 = vsel %vm867_vm5, %v1028_v56, %v1029_v57  ;;  %v3446_v4 = vmul.f32 %v3423_v54, %v3190_v17  ;;  %v990_v38 = vsel %vm867_vm5, %v987_v45, %v989_v18 }
 0x145   : > { %v3486_v44 = vstv %s2524_s8  ;;  %v1032_v49 = vsel %vm867_vm5, %v1029_v57, %v1031_v30  ;;  %v1308_v30 = vstv %s2527_s7  ;;  %s3608_s8 = sld [smem:[#allocation6 + $0x31]]  ;;  %s3668_s7 = sld [smem:[#allocation6 + $0x1e]] }
 0x146   : > { %v1113_v32 = vrot.slane %v3446_v4, 2  ;;  %v1245_v56 = vmul.f32 %v3486_v44, %v3140_v52  ;;  %v3511_v61 = vmul.f32 %v3486_v44, %v3159_v60 }
 0x147   : > { %746 = vrot.lane.b32.xlu0 %v743_v0, %s2817_s6  ;;  %v1106_v0 = vmul.f32 %v3423_v54, %v3177_v7 }
 0x148   : > { %622 = vrot.lane.b32.xlu1 %v619_v31, %s2814_s17  ;;  %v1070_v31 = vrot.slane %v1064_v58, 2  ;;  %v1251_v4 = vrot.slane %v1245_v56, 3  ;;  %v1247_v56 = vmul.f32 %v3486_v44, %v3202_v33 }
 0x149   : > { %v1112_v10 = vrot.slane %v1106_v0, 2 }
 0x14a   : > { %v1072_v11 = vsel %vm867_vm5, %v1070_v31, %v1071_v3 }
 0x14b   : > { %788 = vrot.lane.b32.xlu0 %v785_v8, %s2818_s24  ;;  %v1182_v8 = vstv %s2521_s28  ;;  %v1114_v27 = vsel %vm867_vm5, %v1112_v10, %v1113_v32  ;;  %s2531_s28 = sld [smem:[#allocation6 + $0x1b]] }
 0x14c   : > { %664 = vrot.lane.b32.xlu1 %v661_v12, %s2815_s27  ;;  %v3454_v12 = vstv %s2522_s3  ;;  %v3462_v16 = vmul.f32 %v1182_v8, %v3190_v17  ;;  %v1185_v0 = vmul.f32 %v1182_v8, %v3217_v43  ;;  %s2532_s3 = sld [smem:[#allocation6 + $0x4c]] }
 0x14d   : > { %v3384_v14 = vpop.permute.xlu0 %423 }
 0x14e   : > { %v1190_v36 = vrot.slane %v3462_v16, 3  ;;  %v1205_v16 = vmul.f32 %v3454_v12, %v3202_v33 }
 0x14f   : > { %830 = vrot.lane.b32.xlu0 %v827_v15, %s2819_s23  ;;  %v1183_v15 = vmul.f32 %v1182_v8, %v3177_v7 }
 0x150   : > { %706 = vrot.lane.b32.xlu1 %v703_v26, %s2816_s4  ;;  %v1203_v26 = vmul.f32 %v3454_v12, %v3140_v52 }
 0x151   : > { %v3396_v29 = vpop.permute.xlu0 %451  ;;  %v1189_v34 = vrot.slane %v1183_v15, 3  ;;  %v1192_v15 = vrot.slane %v1185_v0, 3 }
 0x152   : > { %v1209_v35 = vrot.slane %v1203_v26, 3 }
 0x153   : > { %907 = vrot.lane.b32.xlu0 %v904_v37, %s2814_s17  ;;  %v3478_v37 = vmul.f32 %v3454_v12, %v3159_v60  ;;  %v1191_v45 = vsel %vm1154_vm6, %v1189_v34, %v1190_v36  ;;  %v1193_v12 = vsel %vm1154_vm6, %v1190_v36, %v1192_v15  ;;  %v3585_v15 = vstv %s2530_s30  ;;  %s3721_s30 = sld [smem:[#allocation6 + $0x1f]] }
 0x154   : > { %748 = vrot.lane.b32.xlu1 %v745_v39, %s2817_s6  ;;  %v1066_v39 = vmul.f32 %v1063_v50, %v3217_v43  ;;  %v1108_v50 = vmul.f32 %v3423_v54, %v3217_v43 }
 0x155   : > { %v3408_v21 = vpop.permute.xlu0 %479  ;;  %v1210_v46 = vrot.slane %v3478_v37, 3  ;;  %v1212_v37 = vrot.slane %v1205_v16, 3 }
 0x156   : > { %v1073_v24 = vrot.slane %v1066_v39, 2  ;;  %v1115_v62 = vrot.slane %v1108_v50, 2 }
 0x157   : > { %949 = vrot.lane.b32.xlu0 %v946_v41, %s2815_s27  ;;  %v1211_v25 = vsel %vm1154_vm6, %v1209_v35, %v1210_v46 }
 0x158   : > { %790 = vrot.lane.b32.xlu1 %v787_v47, %s2818_s24  ;;  %v3494_v47 = vmul.f32 %v1224_v40, %v3190_v17  ;;  %v1074_v54 = vsel %vm867_vm5, %v1071_v3, %v1073_v24  ;;  %v1252_v3 = vrot.slane %v3511_v61, 3  ;;  %v1213_v24 = vsel %vm1154_vm6, %v1210_v46, %v1212_v37 }
 0x159   : > { %v3420_v51 = vpop.permute.xlu0 %507 }
 0x15a   : > { %v3425_v55 = vpop.permute.xlu1 %425  ;;  %v1232_v57 = vrot.slane %v3494_v47, 3  ;;  %v1253_v26 = vsel %vm1154_vm6, %v1251_v4, %v1252_v3  ;;  %v1254_v4 = vrot.slane %v1247_v56, 3  ;;  %v1311_v56 = vmul.f32 %v1308_v30, %v3217_v43 }
 0x15b   : > { %991 = vrot.lane.b32.xlu0 %v988_v53, %s2816_s4 }
 0x15c   : > { %832 = vrot.lane.b32.xlu1 %v829_v59, %s2819_s23  ;;  %v1231_v59 = vrot.slane %v1225_v48, 3 }
 0x15d   : > { %v3436_v63 = vpop.permute.xlu0 %535 }
 0x15e   : > { %v3440_v1 = vpop.permute.xlu1 %453  ;;  %v1233_v6 = vsel %vm1154_vm6, %v1231_v59, %v1232_v57 }
 0x15f   : > { %1033 = vrot.lane.b32.xlu0 %v1030_v2, %s2817_s6  ;;  %v1266_v2 = vstv %s2525_s20  ;;  %s2535_s20 = sld [smem:[#allocation6 + $0x1d]] }
 0x160   : > { %909 = vrot.lane.b32.xlu1 %v906_v5, %s2814_s17  ;;  %v3519_v5 = vstv %s2526_s29  ;;  %v1267_v8 = vmul.f32 %v1266_v2, %v3177_v7  ;;  %v3527_v10 = vmul.f32 %v1266_v2, %v3190_v17  ;;  %s3628_s29 = sld [smem:[#allocation6 + $0x4e]] }
 0x161   : > { %v3452_v9 = vpop.permute.xlu0 %563  ;;  %v1287_v18 = vmul.f32 %v3519_v5, %v3140_v52  ;;  %v3544_v34 = vmul.f32 %v3519_v5, %v3159_v60 }
 0x162   : > { %v3456_v13 = vpop.permute.xlu1 %481 }
 0x163   : > { %1075 = vrot.lane.b32.xlu0 %v1072_v11, %s2818_s24  ;;  %v1116_v11 = vsel %vm867_vm5, %v1113_v32, %v1115_v62  ;;  %v1274_v32 = vrot.slane %v3527_v10, 3  ;;  %v1293_v35 = vrot.slane %v1287_v18, 3  ;;  %v1294_v36 = vrot.slane %v3544_v34, 3 }
 0x164   : > { %951 = vrot.lane.b32.xlu1 %v948_v28, %s2815_s27 }
 0x165   : > { %v3468_v23 = vpop.permute.xlu0 %640 }
 0x166   : > { %v3472_v20 = vpop.permute.xlu1 %509 }
 0x167   : > { %1117 = vrot.lane.b32.xlu0 %v1114_v27, %s2819_s23  ;;  %v1273_v27 = vrot.slane %v1267_v8, 3  ;;  %v1350_v8 = vstv %s2529_s26  ;;  %s3719_s26 = sld [smem:[#allocation6 + $0x38]] }
 0x168   : > { %993 = vrot.lane.b32.xlu1 %v990_v38, %s2816_s4  ;;  %v1227_v38 = vmul.f32 %v1224_v40, %v3217_v43  ;;  %v1309_v40 = vmul.f32 %v1308_v30, %v3177_v7  ;;  %v1351_v18 = vmul.f32 %v1350_v8, %v3177_v7 }
 0x169   : > { %v3484_v42 = vpop.permute.xlu0 %682  ;;  %v1275_v47 = vsel %vm1154_vm6, %v1273_v27, %v1274_v32  ;;  %v1255_v27 = vsel %vm1154_vm6, %v1252_v3, %v1254_v4 }
 0x16a   : > { %v3488_v41 = vpop.permute.xlu1 %537  ;;  %v1234_v50 = vrot.slane %v1227_v38, 3  ;;  %v1315_v62 = vrot.slane %v1309_v40, 3  ;;  %v1371_v38 = vmul.f32 %v3585_v15, %v3140_v52  ;;  %v3618_v40 = vmul.f32 %v3585_v15, %v3159_v60 }
 0x16b   : > { %1194 = vrot.lane.b32.xlu0 %v1191_v45, %s2814_s17  ;;  %v3552_v45 = vstv %s2528_s16  ;;  %s3674_s16 = sld [smem:[#allocation6 + $0x4f]] }
 0x16c   : > { %1035 = vrot.lane.b32.xlu1 %v1032_v49, %s2817_s6  ;;  %v3560_v49 = vmul.f32 %v1308_v30, %v3190_v17  ;;  %v1329_v59 = vmul.f32 %v3552_v45, %v3140_v52  ;;  %v3577_v0 = vmul.f32 %v3552_v45, %v3159_v60  ;;  %v1235_v44 = vsel %vm1154_vm6, %v1232_v57, %v1234_v50 }
 0x16d   : > { %v3501_v53 = vpop.permute.xlu0 %724  ;;  %v4846_v30 = vrot.slane %v3618_v40, 3 }
 0x16e   : > { %v3505_v58 = vpop.permute.xlu1 %565  ;;  %v1316_v46 = vrot.slane %v3560_v49, 3 }
 0x16f   : > { %1214 = vrot.lane.b32.xlu0 %v1211_v25, %s2814_s17 }
 0x170   : > { %1077 = vrot.lane.b32.xlu1 %v1074_v54, %s2818_s24  ;;  %v1295_v54 = vsel %vm1154_vm6, %v1293_v35, %v1294_v36  ;;  %v1317_v57 = vsel %vm1154_vm6, %v1315_v62, %v1316_v46  ;;  %v1377_v62 = vrot.slane %v1371_v38, 3  ;;  %v4845_v38 = vstv %s3608_s8 }
 0x171   : > { %v3517_v31 = vpop.permute.xlu0 %766  ;;  %v399_v49 = vmul.f32 %v4845_v38, %v3140_v52 }
 0x172   : > { %v3521_v19 = vpop.permute.xlu1 %642 }
 0x173   : > { %1236 = vrot.lane.b32.xlu0 %v1233_v6, %s2815_s27  ;;  %v1269_v6 = vmul.f32 %v1266_v2, %v3217_v43  ;;  %v1336_v2 = vrot.slane %v3577_v0, 3 }
 0x174   : > { %1119 = vrot.lane.b32.xlu1 %v1116_v11, %s2819_s23  ;;  %v1335_v11 = vrot.slane %v1329_v59, 3  ;;  %v1392_v59 = vstv %s2531_s28  ;;  %s3728_s28 = sld [smem:[#allocation6 + $0x50]] }
 0x175   : > { %v3534_v28 = vpop.permute.xlu0 %808  ;;  %v1276_v34 = vrot.slane %v1269_v6, 3  ;;  %v1393_v6 = vmul.f32 %v1392_v59, %v3177_v7 }
 0x176   : > { %v3538_v22 = vpop.permute.xlu1 %684  ;;  %v1337_v3 = vsel %vm1154_vm6, %v1335_v11, %v1336_v2  ;;  %v3638_v11 = vmul.f32 %v1392_v59, %v3190_v17 }
 0x177   : > { %1256 = vrot.lane.b32.xlu0 %v1253_v26, %s2815_s27  ;;  %v3595_v26 = vmul.f32 %v1350_v8, %v3190_v17 }
 0x178   : > { %1196 = vrot.lane.b32.xlu1 %v1193_v12, %s2814_s17  ;;  %v1289_v12 = vmul.f32 %v3519_v5, %v3202_v33  ;;  %v1357_v5 = vrot.slane %v1351_v18, 3  ;;  %v1318_v18 = vrot.slane %v1311_v56, 3 }
 0x179   : > { %v3550_v39 = vpop.permute.xlu0 %850 }
 0x17a   : > { %v3554_v48 = vpop.permute.xlu1 %726  ;;  %v1296_v50 = vrot.slane %v1289_v12, 3  ;;  %v4844_v12 = vstv %s3606_s5  ;;  %v1319_v56 = vsel %vm1154_vm6, %v1316_v46, %v1318_v18 }
 0x17b   : > { %1278 = vrot.lane.b32.xlu0 %v1275_v47, %s2816_s4  ;;  %v4843_v47 = vrot.slane %v3595_v26, 3 }
 0x17c   : > { %1216 = vrot.lane.b32.xlu1 %v1213_v24, %s2814_s17  ;;  %v1277_v24 = vsel %vm1154_vm6, %v1274_v32, %v1276_v34 }
 0x17d   : > { %v3567_v25 = vpop.permute.xlu0 %927  ;;  %v1359_v32 = vsel %vm1154_vm6, %v1357_v5, %v4843_v47  ;;  %v3666_v47 = vstv %s2535_s20  ;;  %s3733_s20 = sld [smem:[#allocation6 + $0x7]] }
 0x17e   : > { %v3571_v61 = vpop.permute.xlu1 %768 }
 0x17f   : > { %1298 = vrot.lane.b32.xlu0 %v1295_v54, %s2816_s4 }
 0x180   : > { %1238 = vrot.lane.b32.xlu1 %v1235_v44, %s2815_s27  ;;  %v3626_v44 = vstv %s2532_s3  ;;  %s3730_s3 = sld [smem:[#allocation6 + $0x51]] }
 0x181   : > { %v3583_v10 = vpop.permute.xlu0 %969 }
 0x182   : > { %v3587_v16 = vpop.permute.xlu1 %810 }
 0x183   : > { %1320 = vrot.lane.b32.xlu0 %v1317_v57, %s2817_s6  ;;  %v1297_v57 = vsel %vm1154_vm6, %v1294_v36, %v1296_v50  ;;  %v1379_v36 = vsel %vm1154_vm6, %v1377_v62, %v4846_v30  ;;  %v3659_v50 = vmul.f32 %v3626_v44, %v3159_v60  ;;  %v394_v62 = vmul.f32 %v4844_v12, %v3177_v7 }
 0x184   : > { %1258 = vrot.lane.b32.xlu1 %v1255_v27, %s2815_s27  ;;  %v1331_v27 = vmul.f32 %v3552_v45, %v3202_v33  ;;  %v1399_v45 = vrot.slane %v1393_v6, 3  ;;  %v3692_v12 = vmul.f32 %v3666_v47, %v3190_v17  ;;  %v1373_v30 = vmul.f32 %v3585_v15, %v3202_v33 }
 0x185   : > { %v3602_v37 = vpop.permute.xlu0 %1011  ;;  %v4864_v15 = vrot.slane %v3659_v50, 3 }
 0x186   : > { %v3610_v35 = vpop.permute.xlu1 %852 }
 0x187   : > { %1340 = vrot.lane.b32.xlu0 %v1337_v3, %s2817_s6  ;;  %v1413_v3 = vmul.f32 %v3626_v44, %v3140_v52 }
 0x188   : > { %1280 = vrot.lane.b32.xlu1 %v1277_v24, %s2816_s4  ;;  %v4847_v24 = vrot.slane %v3638_v11, 3 }
 0x189   : > { %v3624_v54 = vpop.permute.xlu0 %1053  ;;  %v1419_v46 = vrot.slane %v1413_v3, 3 }
 0x18a   : > { %v3630_v4 = vpop.permute.xlu1 %929 }
 0x18b   : > { %1362 = vrot.lane.b32.xlu0 %v1359_v32, %s2818_s24  ;;  %v1338_v32 = vrot.slane %v1331_v27, 3  ;;  %v1401_v27 = vsel %vm1154_vm6, %v1399_v45, %v4847_v24  ;;  %v401_v45 = vadd.f32 %v399_v49, %v394_v62  ;;  %v1395_v24 = vmul.f32 %v1392_v59, %v3217_v43 }
 0x18c   : > { %1300 = vrot.lane.b32.xlu1 %v1297_v57, %s2816_s4  ;;  %v1353_v57 = vmul.f32 %v1350_v8, %v3217_v43  ;;  %v1489_v8 = vstv %s3628_s29  ;;  %v4865_v62 = vrot.slane %v3595_v26, 3  ;;  %v1380_v49 = vrot.slane %v1373_v30, 3  ;;  %s3853_s29 = sld [smem:[#allocation6 + $0x52]] }
 0x18d   : > { %v3645_v34 = vpop.permute.xlu0 %1095  ;;  %v1339_v3 = vsel %vm1154_vm6, %v1336_v2, %v1338_v32  ;;  %v1490_v0 = vmul.f32 %v1489_v8, %v3140_v52  ;;  %v1402_v26 = vrot.slane %v1395_v24, 3 }
 0x18e   : > { %v3651_v5 = vpop.permute.xlu1 %971  ;;  %v1360_v38 = vrot.slane %v1353_v57, 3  ;;  %v1421_v57 = vsel %vm1154_vm6, %v1419_v46, %v4864_v15 }
 0x18f   : > { %4860 = vst [vmem:[#allocation11_spill] sm:$0xff] %v3651_v5  ;;  %1382 = vrot.lane.b32.xlu0 %v1379_v36, %s2818_s24 }
 0x190   : > { %1322 = vrot.lane.b32.xlu1 %v1319_v56, %s2817_s6  ;;  %v1470_v56 = vmul.f32 %v3666_v47, %v3177_v7  ;;  %v1361_v59 = vsel %vm1154_vm6, %v4865_v62, %v1360_v38  ;;  %v1415_v62 = vmul.f32 %v3626_v44, %v3202_v33 }
 0x191   : > { %v3676_v6 = vpop.permute.xlu0 %1137 }
 0x192   : > { %4861 = vst [vmem:[#allocation12_spill] sm:$0xff] %v3676_v6  ;;  %v3682_v18 = vpop.permute.xlu1 %1013  ;;  %v3717_v6 = vstv %s3668_s7  ;;  %s3876_s7 = sld [smem:[#allocation6 + $0x3f]] }
 0x193   : > { %4862 = vst [vmem:[#allocation13_spill] sm:$0xff] %v3682_v18  ;;  %1404 = vrot.lane.b32.xlu0 %v1401_v27, %s2819_s23  ;;  %v3703_v18 = vmul.f32 %v1489_v8, %v3159_v60  ;;  %v1476_v27 = vrot.slane %v1470_v56, 4  ;;  %v1496_v56 = vrot.slane %v1490_v0, 4  ;;  %v1512_v24 = vmul.f32 %v3717_v6, %v3177_v7 }
 0x194   : > { %1342 = vrot.lane.b32.xlu1 %v1339_v3, %s2817_s6  ;;  %v4848_v3 = vrot.slane %v3692_v12, 4 }
 0x195   : > { %v411_v36 = vpop.permute.xlu0 %410  ;;  %v4849_v38 = vrot.slane %v3703_v18, 4 }
 0x196   : > { %v3706_v2 = vpop.permute.xlu1 %1055  ;;  %v416_v32 = vadd.f32 %v411_v36, %v401_v45  ;;  %v3726_v36 = vstv %s3674_s16  ;;  %s3901_s16 = sld [smem:[#allocation6 + $0x22]] }
 0x197   : > { %4863 = vst [vmem:[#allocation14_spill] sm:$0xff] %v3706_v2  ;;  %1424 = vrot.lane.b32.xlu0 %v1421_v57, %s2819_s23  ;;  %v4867_v57 = vrot.slane %v3618_v40, 3  ;;  %v4870_v40 = vstv %s3606_s5  ;;  %v3765_v44 = vmul.f32 %v3726_v36, %v3159_v60  ;;  %s3775_s5 = sld [smem:[#allocation6 + $0x20]] }
 0x198   : > { %1364 = vrot.lane.b32.xlu1 %v1361_v59, %s2818_s24  ;;  %v429_v46 = vadd.f32 %v3384_v14, %v416_v32  ;;  %v1478_v14 = vsel %vm1441_vm7, %v1476_v27, %v4848_v3  ;;  %v3742_v32 = vmul.f32 %v3717_v6, %v3190_v17  ;;  %v4868_v27 = vstv %s3608_s8  ;;  %s3836_s8 = sld [smem:[#allocation6 + $0x21]] }
 0x199   : > { %v439_v30 = vpop.permute.xlu0 %438  ;;  %v1381_v0 = vsel %vm1154_vm6, %v4867_v57, %v1380_v49  ;;  %v400_v59 = vmul.f32 %v4868_v27, %v3159_v60  ;;  %v395_v49 = vmul.f32 %v4870_v40, %v3190_v17  ;;  %v1422_v27 = vrot.slane %v1415_v62, 3 }
 0x19a   : > { %v3735_v45 = vpop.permute.xlu1 %1097  ;;  %v444_v15 = vadd.f32 %v439_v30, %v429_v46  ;;  %v4869_v30 = vrot.slane %v3638_v11, 3  ;;  %v1492_v40 = vmul.f32 %v1489_v8, %v3202_v33  ;;  %v3797_v8 = vstv %s3733_s20  ;;  %s4009_s20 = sld [smem:[#allocation6 + $0x25]] }
 0x19b   : > { %4866 = vst [vmem:[#allocation15_spill] sm:$0xff] %v3735_v45  ;;  %1481 = vrot.lane.b32.xlu0 %v1478_v14, %s2814_s17  ;;  %v1532_v14 = vmul.f32 %v3726_v36, %v3140_v52  ;;  %v402_v62 = vadd.f32 %v400_v59, %v395_v49  ;;  %v4872_v2 = vrot.slane %v3742_v32, 4  ;;  %v4873_v49 = vrot.slane %v3659_v50, 3 }
 0x19c   : > { %1384 = vrot.lane.b32.xlu1 %v1381_v0, %s2818_s24  ;;  %v457_v46 = vadd.f32 %v3396_v29, %v444_v15  ;;  %v1403_v3 = vsel %vm1154_vm6, %v4869_v30, %v1402_v26  ;;  %v1498_v26 = vsel %vm1441_vm7, %v1496_v56, %v4849_v38  ;;  %v1518_v0 = vrot.slane %v1512_v24, 4 }
 0x19d   : > { %v467_v57 = vpop.permute.xlu0 %466  ;;  %v1472_v30 = vmul.f32 %v3666_v47, %v3217_v43  ;;  %v3790_v24 = vstv %s3728_s28  ;;  %v1538_v15 = vrot.slane %v1532_v14, 4  ;;  %v1423_v14 = vsel %vm1154_vm6, %v4873_v49, %v1422_v27  ;;  %s3943_s28 = sld [smem:[#allocation6 + $0xe]] }
 0x19e   : > { %v3769_v29 = vpop.permute.xlu1 %1139  ;;  %v472_v11 = vadd.f32 %v467_v57, %v457_v46  ;;  %v3787_v46 = vstv %s3719_s26  ;;  %v3793_v57 = vstv %s3730_s3  ;;  %v1499_v5 = vrot.slane %v1492_v40, 4  ;;  %s3909_s26 = sld [smem:[#allocation6 + $0x53]]  ;;  %s3959_s3 = sld [smem:[#allocation6 + $0x24]] }
 0x19f   : > { %4871 = vst [vmem:[#allocation16_spill] sm:$0xff] %v3769_v29  ;;  %1501 = vrot.lane.b32.xlu0 %v1498_v26, %s2814_s17  ;;  %v3782_v29 = vstv %s3721_s30  ;;  %v1479_v47 = vrot.slane %v1472_v30, 4  ;;  %v574_v50 = vmul.f32 %v3797_v8, %v3177_v7  ;;  %v4874_v40 = vrot.slane %v3765_v44, 4  ;;  %s3928_s30 = sld [smem:[#allocation6 + $0x55]] }
 0x1a0   : > { %1406 = vrot.lane.b32.xlu1 %v1403_v3, %s2819_s23  ;;  %v485_v56 = vadd.f32 %v3408_v21, %v472_v11  ;;  %v1520_v3 = vsel %vm1441_vm7, %v1518_v0, %v4872_v2  ;;  %v3804_v21 = vmul.f32 %v3782_v29, %v3190_v17  ;;  %v1554_v11 = vmul.f32 %v3782_v29, %v3177_v7 }
 0x1a1   : > { %v495_v38 = vpop.permute.xlu0 %494  ;;  %v3818_v0 = vmul.f32 %v3797_v8, %v3190_v17  ;;  %v3834_v49 = vstv %s3775_s5  ;;  %s4028_s5 = sld [smem:[#allocation6 + $0x56]] }
 0x1a2   : > { %v413_v26 = vpop.permute.xlu1 %412  ;;  %v500_v45 = vadd.f32 %v495_v38, %v485_v56  ;;  %v1514_v38 = vmul.f32 %v3717_v6, %v3217_v43  ;;  %v1540_v56 = vsel %vm1441_vm7, %v1538_v15, %v4874_v40  ;;  %v1574_v6 = vmul.f32 %v3790_v24, %v3140_v52 }
 0x1a3   : > { %v417_v59 = vadd.f32 %v413_v26, %v402_v62  ;;  %1523 = vrot.lane.b32.xlu0 %v1520_v3, %s2815_s27  ;;  %v1561_v26 = vrot.slane %v3804_v21, 4  ;;  %v1560_v3 = vrot.slane %v1554_v11, 4 }
 0x1a4   : > { %1426 = vrot.lane.b32.xlu1 %v1423_v14, %s2819_s23  ;;  %v513_v2 = vadd.f32 %v3420_v51, %v500_v45  ;;  %v3828_v51 = vmul.f32 %v3790_v24, %v3159_v60  ;;  %v3844_v14 = vmul.f32 %v3787_v46, %v3159_v60  ;;  %v3966_v21 = vstv %s3909_s26  ;;  %s4140_s26 = sld [smem:[#allocation6 + $0x15]] }
 0x1a5   : > { %v430_v27 = vadd.f32 %v3425_v55, %v417_v59  ;;  %v523_v30 = vpop.permute.xlu0 %522  ;;  %v4875_v59 = vrot.slane %v3692_v12, 4 }
 0x1a6   : > { %v441_v45 = vpop.permute.xlu1 %440  ;;  %v528_v62 = vadd.f32 %v523_v30, %v513_v2  ;;  %v591_v2 = vmul.f32 %v3787_v46, %v3140_v52  ;;  %v581_v30 = vrot.slane %v574_v50, 1  ;;  %v1562_v50 = vsel %vm1441_vm7, %v1560_v3, %v1561_v26 }
 0x1a7   : > { %v445_v55 = vadd.f32 %v441_v45, %v430_v27  ;;  %v1480_v15 = vsel %vm1441_vm7, %v4875_v59, %v1479_v47  ;;  %1543 = vrot.lane.b32.xlu0 %v1540_v56, %s2815_s27  ;;  %v1534_v27 = vmul.f32 %v3726_v36, %v3202_v33  ;;  %v1580_v45 = vrot.slane %v1574_v6, 4 }
 0x1a8   : > { %1483 = vrot.lane.b32.xlu1 %v1480_v15, %s2814_s17  ;;  %v541_v11 = vadd.f32 %v3436_v63, %v528_v62  ;;  %v3859_v59 = vmul.f32 %v3834_v49, %v3190_v17  ;;  %v4876_v63 = vrot.slane %v3703_v18, 4  ;;  %v1521_v56 = vrot.slane %v1514_v38, 4 }
 0x1a9   : > { %v458_v47 = vadd.f32 %v3440_v1, %v445_v55  ;;  %v551_v40 = vpop.permute.xlu0 %550  ;;  %v1596_v1 = vmul.f32 %v3834_v49, %v3177_v7  ;;  %v598_v6 = vrot.slane %v3844_v14, 1  ;;  %v597_v12 = vrot.slane %v591_v2, 1 }
 0x1aa   : > { %v469_v15 = vpop.permute.xlu1 %468  ;;  %v1500_v36 = vsel %vm1441_vm7, %v4876_v63, %v1499_v5  ;;  %v556_v62 = vadd.f32 %v551_v40, %v541_v11  ;;  %v1541_v18 = vrot.slane %v1534_v27, 4  ;;  %v4877_v5 = vrot.slane %v3818_v0, 1 }
 0x1ab   : > { %v473_v55 = vadd.f32 %v469_v15, %v458_v47  ;;  %1565 = vrot.lane.b32.xlu0 %v1562_v50, %s2816_s4  ;;  %v4878_v40 = vrot.slane %v3828_v51, 4  ;;  %v1603_v15 = vrot.slane %v3859_v59, 4  ;;  %v3885_v27 = vmul.f32 %v3793_v57, %v3159_v60 }
 0x1ac   : > { %1503 = vrot.lane.b32.xlu1 %v1500_v36, %s2814_s17  ;;  %v583_v11 = vsel %vm580_vm4, %v581_v30, %v4877_v5  ;;  %v569_v3 = vadd.f32 %v3452_v9, %v556_v62  ;;  %v1602_v36 = vrot.slane %v1596_v1, 4  ;;  %v1616_v9 = vmul.f32 %v3793_v57, %v3140_v52 }
 0x1ad   : > { %v486_v47 = vadd.f32 %v3456_v13, %v473_v55  ;;  %v621_v38 = vpop.permute.xlu0 %620  ;;  %v1582_v2 = vsel %vm1441_vm7, %v1580_v45, %v4878_v40  ;;  %v3890_v62 = vstv %s3836_s8  ;;  %v4879_v50 = vrot.slane %v3742_v32, 4  ;;  %s4071_s8 = sld [smem:[#allocation6 + $0x26]] }
 0x1ae   : > { %v497_v63 = vpop.permute.xlu1 %496  ;;  %v588_v30 = vadd.f32 %v583_v11, %v569_v3  ;;  %v599_v55 = vsel %vm580_vm4, %v597_v12, %v598_v6  ;;  %v1556_v5 = vmul.f32 %v3782_v29, %v3217_v43  ;;  %v576_v1 = vmul.f32 %v3797_v8, %v3217_v43 }
 0x1af   : > { %v501_v13 = vadd.f32 %v497_v63, %v486_v47  ;;  %v1522_v45 = vsel %vm1441_vm7, %v4879_v50, %v1521_v56  ;;  %1585 = vrot.lane.b32.xlu0 %v1582_v2, %s2816_s4  ;;  %v3907_v32 = vstv %s3853_s29  ;;  %v1576_v12 = vmul.f32 %v3790_v24, %v3202_v33  ;;  %s4091_s29 = sld [smem:[#allocation6 + $0x57]] }
 0x1b0   : > { %1525 = vrot.lane.b32.xlu1 %v1522_v45, %s2815_s27  ;;  %v604_v11 = vadd.f32 %v599_v55, %v588_v30  ;;  %v3916_v3 = vmul.f32 %v3890_v62, %v3190_v17  ;;  %v1638_v47 = vmul.f32 %v3890_v62, %v3177_v7  ;;  %v1604_v2 = vsel %vm1441_vm7, %v1602_v36, %v1603_v15 }
 0x1b1   : > { %v514_v56 = vadd.f32 %v3472_v20, %v501_v13  ;;  %v663_v29 = vpop.permute.xlu0 %662  ;;  %v1623_v20 = vrot.slane %v3885_v27, 4  ;;  %v1622_v63 = vrot.slane %v1616_v9, 4  ;;  %v4880_v24 = vrot.slane %v3765_v44, 4 }
 0x1b2   : > { %v525_v8 = vpop.permute.xlu1 %524  ;;  %v626_v40 = vadd.f32 %v621_v38, %v604_v11  ;;  %v1563_v50 = vrot.slane %v1556_v5, 4  ;;  %v584_v38 = vrot.slane %v576_v1, 1  ;;  %v593_v45 = vmul.f32 %v3787_v46, %v3202_v33 }
 0x1b3   : > { %v529_v30 = vadd.f32 %v525_v8, %v514_v56  ;;  %v1542_v13 = vsel %vm1441_vm7, %v4880_v24, %v1541_v18  ;;  %1607 = vrot.lane.b32.xlu0 %v1604_v2, %s2817_s6  ;;  %v3935_v55 = vstv %s3876_s7  ;;  %v1645_v18 = vrot.slane %v3916_v3, 4  ;;  %s4107_s7 = sld [smem:[#allocation6 + $0x46]] }
 0x1b4   : > { %1545 = vrot.lane.b32.xlu1 %v1542_v13, %s2815_s27  ;;  %v646_v36 = vadd.f32 %v3468_v23, %v626_v40  ;;  %v1644_v5 = vrot.slane %v1638_v47, 4  ;;  %v3941_v11 = vmul.f32 %v3907_v32, %v3159_v60  ;;  %v1583_v46 = vrot.slane %v1576_v12, 4 }
 0x1b5   : > { %v542_v44 = vadd.f32 %v3488_v41, %v529_v30  ;;  %v705_v9 = vpop.permute.xlu0 %704  ;;  %v1624_v23 = vsel %vm1441_vm7, %v1622_v63, %v1623_v20  ;;  %v1658_v41 = vmul.f32 %v3907_v32, %v3140_v52  ;;  %v1564_v47 = vsel %vm1441_vm7, %v1561_v26, %v1563_v50 }
 0x1b6   : > { %v553_v1 = vpop.permute.xlu1 %552  ;;  %v668_v56 = vadd.f32 %v663_v29, %v646_v36  ;;  %v1598_v40 = vmul.f32 %v3834_v49, %v3217_v43  ;;  %v3957_v2 = vstv %s3901_s16  ;;  %v600_v12 = vrot.slane %v593_v45, 1  ;;  %s4132_s16 = sld [smem:[#allocation6 + $0x27]] }
 0x1b7   : > { %v557_v8 = vadd.f32 %v553_v1, %v542_v44  ;;  %1627 = vrot.lane.b32.xlu0 %v1624_v23, %s2817_s6  ;;  %v1618_v63 = vmul.f32 %v3793_v57, %v3202_v33  ;;  %v4881_v26 = vrot.slane %v3818_v0, 1  ;;  %v1646_v13 = vsel %vm1441_vm7, %v1644_v5, %v1645_v18 }
 0x1b8   : > { %1567 = vrot.lane.b32.xlu1 %v1564_v47, %s2816_s4  ;;  %v688_v29 = vadd.f32 %v3484_v42, %v668_v56  ;;  %v1665_v50 = vrot.slane %v3941_v11, 4  ;;  %v1664_v57 = vrot.slane %v1658_v41, 4  ;;  %v3978_v36 = vmul.f32 %v3957_v2, %v3190_v17 }
 0x1b9   : > { %v585_v49 = vsel %vm580_vm4, %v4881_v26, %v584_v38  ;;  %v570_v30 = vadd.f32 %v3505_v58, %v557_v8  ;;  %v747_v24 = vpop.permute.xlu0 %746  ;;  %v1680_v0 = vmul.f32 %v3957_v2, %v3177_v7  ;;  %v4882_v58 = vrot.slane %v3828_v51, 4 }
 0x1ba   : > { %v623_v42 = vpop.permute.xlu1 %622  ;;  %v710_v45 = vadd.f32 %v705_v9, %v688_v29  ;;  %v1605_v1 = vrot.slane %v1598_v40, 4  ;;  %v3987_v5 = vstv %s3928_s30  ;;  %v601_v9 = vsel %vm580_vm4, %v598_v6, %v600_v12  ;;  %s4152_s30 = sld [smem:[#allocation6 + $0x58]] }
 0x1bb   : > { %v589_v38 = vadd.f32 %v585_v49, %v570_v30  ;;  %v1584_v44 = vsel %vm1441_vm7, %v4882_v58, %v1583_v46  ;;  %1649 = vrot.lane.b32.xlu0 %v1646_v13, %s2818_s24  ;;  %v1625_v23 = vrot.slane %v1618_v63, 4  ;;  %v1640_v41 = vmul.f32 %v3890_v62, %v3217_v43 }
 0x1bc   : > { %1587 = vrot.lane.b32.xlu1 %v1584_v44, %s2816_s4  ;;  %v730_v56 = vadd.f32 %v3501_v53, %v710_v45  ;;  %v3997_v8 = vstv %s3943_s28  ;;  %v4001_v47 = vmul.f32 %v3966_v21, %v3159_v60  ;;  %v1700_v14 = vmul.f32 %v3966_v21, %v3140_v52  ;;  %s4176_s28 = sld [smem:[#allocation6 + $0x28]] }
 0x1bd   : > { %v605_v51 = vadd.f32 %v601_v9, %v589_v38  ;;  %v789_v46 = vpop.permute.xlu0 %788  ;;  %v1666_v53 = vsel %vm1441_vm7, %v1664_v57, %v1665_v50  ;;  %v1687_v62 = vrot.slane %v3978_v36, 4  ;;  %v1686_v12 = vrot.slane %v1680_v0, 4 }
 0x1be   : > { %v665_v6 = vpop.permute.xlu1 %664  ;;  %v752_v40 = vadd.f32 %v747_v24, %v730_v56  ;;  %v1606_v63 = vsel %vm1441_vm7, %v1603_v15, %v1605_v1  ;;  %v1660_v26 = vmul.f32 %v3907_v32, %v3202_v33  ;;  %v4018_v49 = vstv %s3959_s3  ;;  %s4223_s3 = sld [smem:[#allocation6 + $0x59]] }
 0x1bf   : > { %v627_v29 = vadd.f32 %v623_v42, %v605_v51  ;;  %1669 = vrot.lane.b32.xlu0 %v1666_v53, %s2818_s24  ;;  %v1647_v24 = vrot.slane %v1640_v41, 4  ;;  %v4024_v13 = vmul.f32 %v3997_v8, %v3190_v17  ;;  %v861_v59 = vmul.f32 %v3997_v8, %v3177_v7 }
 0x1c0   : > { %1609 = vrot.lane.b32.xlu1 %v1606_v63, %s2817_s6  ;;  %v772_v30 = vadd.f32 %v3517_v31, %v752_v40  ;;  %v1626_v32 = vsel %vm1441_vm7, %v1623_v20, %v1625_v23  ;;  %v1707_v45 = vrot.slane %v4001_v47, 4  ;;  %v1706_v31 = vrot.slane %v1700_v14, 4 }
 0x1c1   : > { %v647_v15 = vadd.f32 %v3521_v19, %v627_v29  ;;  %v831_v42 = vpop.permute.xlu0 %830  ;;  %v1688_v38 = vsel %vm1441_vm7, %v1686_v12, %v1687_v62  ;;  %v4040_v58 = vmul.f32 %v4018_v49, %v3190_v17  ;;  %v1756_v19 = vmul.f32 %v4018_v49, %v3177_v7 }
 0x1c2   : > { %v707_v57 = vpop.permute.xlu1 %706  ;;  %v794_v0 = vadd.f32 %v789_v46, %v772_v30  ;;  %v1667_v44 = vrot.slane %v1660_v26, 4  ;;  %v4046_v20 = vmul.f32 %v3935_v55, %v3159_v60  ;;  %v878_v1 = vmul.f32 %v3935_v55, %v3140_v52 }
 0x1c3   : > { %v669_v27 = vadd.f32 %v665_v6, %v647_v15  ;;  %1691 = vrot.lane.b32.xlu0 %v1688_v38, %s2819_s23  ;;  %v1648_v9 = vsel %vm1441_vm7, %v1645_v18, %v1647_v24  ;;  %v869_v23 = vrot.slane %v4024_v13, 2  ;;  %v868_v41 = vrot.slane %v861_v59, 2 }
 0x1c4   : > { %1629 = vrot.lane.b32.xlu1 %v1626_v32, %s2817_s6  ;;  %v814_v56 = vadd.f32 %v3534_v28, %v794_v0  ;;  %v1708_v14 = vsel %vm1441_vm7, %v1706_v31, %v1707_v45  ;;  %v4063_v6 = vmul.f32 %v3987_v5, %v3159_v60  ;;  %v1776_v3 = vmul.f32 %v3987_v5, %v3140_v52 }
 0x1c5   : > { %v689_v51 = vadd.f32 %v3538_v22, %v669_v27  ;;  %v908_v46 = vpop.permute.xlu0 %907  ;;  %v1763_v40 = vrot.slane %v4040_v58, 5  ;;  %v1762_v53 = vrot.slane %v1756_v19, 5  ;;  %v4069_v12 = vstv %s4009_s20  ;;  %s4247_s20 = sld [smem:[#allocation6 + $0x29]] }
 0x1c6   : > { %v749_v18 = vpop.permute.xlu1 %748  ;;  %v836_v28 = vadd.f32 %v831_v42, %v814_v56  ;;  %v885_v29 = vrot.slane %v4046_v20, 2  ;;  %v884_v63 = vrot.slane %v878_v1, 2  ;;  %v1682_v26 = vmul.f32 %v3957_v2, %v3217_v43 }
 0x1c7   : > { %v711_v22 = vadd.f32 %v707_v57, %v689_v51  ;;  %1711 = vrot.lane.b32.xlu0 %v1708_v14, %s2819_s23  ;;  %v870_v30 = vsel %vm867_vm5, %v868_v41, %v869_v23  ;;  %v4083_v59 = vstv %s4028_s5  ;;  %v1783_v42 = vrot.slane %v4063_v6, 5  ;;  %s4269_s5 = sld [smem:[#allocation6 + $0x5a]] }
 0x1c8   : > { %1651 = vrot.lane.b32.xlu1 %v1648_v9, %s2818_s24  ;;  %v856_v24 = vadd.f32 %v3550_v39, %v836_v28  ;;  %v1782_v31 = vrot.slane %v1776_v3, 5  ;;  %v4089_v2 = vmul.f32 %v4069_v12, %v3190_v17  ;;  %v1668_v0 = vsel %vm1441_vm7, %v1665_v50, %v1667_v44 }
 0x1c9   : > { %v731_v15 = vadd.f32 %v3554_v48, %v711_v22  ;;  %v950_v32 = vpop.permute.xlu0 %949  ;;  %v1764_v48 = vsel %vm338_vm1, %v1762_v53, %v1763_v40  ;;  %v1798_v38 = vmul.f32 %v4069_v12, %v3177_v7  ;;  %v886_v27 = vsel %vm867_vm5, %v884_v63, %v885_v29 }
 0x1ca   : > { %v791_v57 = vpop.permute.xlu1 %790  ;;  %v875_v39 = vadd.f32 %v870_v30, %v856_v24  ;;  %v1689_v1 = vrot.slane %v1682_v26, 4  ;;  %v1702_v11 = vmul.f32 %v3966_v21, %v3202_v33  ;;  %v863_v50 = vmul.f32 %v3997_v8, %v3217_v43 }
 0x1cb   : > { %v753_v19 = vadd.f32 %v749_v18, %v731_v15  ;;  %1767 = vrot.lane.b32.xlu0 %v1764_v48, %s2814_s17  ;;  %v1784_v41 = vsel %vm338_vm1, %v1782_v31, %v1783_v42  ;;  %v1805_v51 = vrot.slane %v4089_v2, 5  ;;  %v4119_v21 = vmul.f32 %v4083_v59, %v3159_v60 }
 0x1cc   : > { %1671 = vrot.lane.b32.xlu1 %v1668_v0, %s2818_s24  ;;  %v891_v44 = vadd.f32 %v886_v27, %v875_v39  ;;  %v1804_v18 = vrot.slane %v1798_v38, 5  ;;  %v1818_v8 = vmul.f32 %v4083_v59, %v3140_v52  ;;  %v4124_v28 = vstv %s4071_s8  ;;  %s4313_s8 = sld [smem:[#allocation6 + $0x2b]] }
 0x1cd   : > { %v773_v9 = vadd.f32 %v3571_v61, %v753_v19  ;;  %v992_v56 = vpop.permute.xlu0 %991  ;;  %v1690_v53 = vsel %vm1441_vm7, %v1687_v62, %v1689_v1  ;;  %v1709_v22 = vrot.slane %v1702_v11, 4  ;;  %v1758_v63 = vmul.f32 %v4018_v49, %v3217_v43 }
 0x1ce   : > { %v833_v14 = vpop.permute.xlu1 %832  ;;  %v913_v3 = vadd.f32 %v908_v46, %v891_v44  ;;  %v871_v46 = vrot.slane %v863_v50, 2  ;;  %v880_v26 = vmul.f32 %v3935_v55, %v3202_v33  ;;  %v1778_v36 = vmul.f32 %v3987_v5, %v3202_v33 }
 0x1cf   : > { %v795_v61 = vadd.f32 %v791_v57, %v773_v9  ;;  %1787 = vrot.lane.b32.xlu0 %v1784_v41, %s2814_s17  ;;  %v4145_v24 = vmul.f32 %v4124_v28, %v3190_v17  ;;  %v1840_v55 = vmul.f32 %v4124_v28, %v3177_v7  ;;  %v4150_v15 = vstv %s4091_s29  ;;  %s4337_s29 = sld [smem:[#allocation6 + $0x5c]] }
 0x1d0   : > { %1693 = vrot.lane.b32.xlu1 %v1690_v53, %s2819_s23  ;;  %v933_v30 = vadd.f32 %v3567_v25, %v913_v3  ;;  %v1806_v5 = vsel %vm338_vm1, %v1804_v18, %v1805_v51  ;;  %v1824_v57 = vrot.slane %v1818_v8, 5  ;;  %v1710_v39 = vsel %vm1441_vm7, %v1707_v45, %v1709_v22 }
 0x1d1   : > { %v815_v62 = vadd.f32 %v3587_v16, %v795_v61  ;;  %v1034_v49 = vpop.permute.xlu0 %1033  ;;  %v1825_v16 = vrot.slane %v4119_v21, 5  ;;  %v1765_v48 = vrot.slane %v1758_v63, 5  ;;  %v4163_v38 = vstv %s4107_s7  ;;  %s4357_s7 = sld [smem:[#allocation6 + $0x2c]] }
 0x1d2   : > { %v910_v25 = vpop.permute.xlu1 %909  ;;  %v955_v31 = vadd.f32 %v950_v32, %v933_v30  ;;  %v872_v32 = vsel %vm867_vm5, %v869_v23, %v871_v46  ;;  %v887_v19 = vrot.slane %v880_v26, 2  ;;  %v1785_v1 = vrot.slane %v1778_v36, 5 }
 0x1d3   : > { %v837_v0 = vadd.f32 %v833_v14, %v815_v62  ;;  %1809 = vrot.lane.b32.xlu0 %v1806_v5, %s2815_s27  ;;  %v1847_v45 = vrot.slane %v4145_v24, 5  ;;  %v1846_v50 = vrot.slane %v1840_v55, 5  ;;  %v4174_v44 = vmul.f32 %v4150_v15, %v3159_v60  ;;  %v4886_v24 = vld [vmem:[#allocation14_spill] sm:$0xff] }
 0x1d4   : > { %1713 = vrot.lane.b32.xlu1 %v1710_v39, %s2819_s23  ;;  %v975_v27 = vadd.f32 %v3583_v10, %v955_v31  ;;  %v1800_v10 = vmul.f32 %v4069_v12, %v3217_v43  ;;  %v1860_v9 = vmul.f32 %v4150_v15, %v3140_v52  ;;  %v1766_v14 = vsel %vm338_vm1, %v1763_v40, %v1765_v48 }
 0x1d5   : > { %v857_v47 = vadd.f32 %v3610_v35, %v837_v0  ;;  %v1076_v11 = vpop.permute.xlu0 %1075  ;;  %v1826_v35 = vsel %vm338_vm1, %v1824_v57, %v1825_v16  ;;  %v1820_v3 = vmul.f32 %v4083_v59, %v3202_v33  ;;  %v888_v12 = vsel %vm867_vm5, %v885_v29, %v887_v19 }
 0x1d6   : > { %v952_v13 = vpop.permute.xlu1 %951  ;;  %v997_v23 = vadd.f32 %v992_v56, %v975_v27  ;;  %v4192_v56 = vstv %s4132_s16  ;;  %v1786_v58 = vsel %vm338_vm1, %v1783_v42, %v1785_v1  ;;  %v4203_v40 = vstv %s4140_s26  ;;  %s4377_s16 = sld [smem:[#allocation6 + $0x5d]] }
 0x1d7   : > { %v876_v41 = vadd.f32 %v872_v32, %v857_v47  ;;  %1829 = vrot.lane.b32.xlu0 %v1826_v35, %s2815_s27  ;;  %v1848_v61 = vsel %vm338_vm1, %v1846_v50, %v1847_v45  ;;  %v1867_v20 = vrot.slane %v4174_v44, 5  ;;  %v4210_v53 = vstv %s4152_s30  ;;  %s4416_s26 = sld [smem:[#allocation6 + $0x2d]]  ;;  %s4432_s30 = sld [smem:[#allocation6 + $0x5e]] }
 0x1d8   : > { %1769 = vrot.lane.b32.xlu1 %v1766_v14, %s2814_s17  ;;  %v1017_v18 = vadd.f32 %v3602_v37, %v997_v23  ;;  %v1866_v63 = vrot.slane %v1860_v9, 5  ;;  %v4214_v37 = vmul.f32 %v4192_v56, %v3190_v17  ;;  %v1882_v6 = vmul.f32 %v4192_v56, %v3177_v7 }
 0x1d9   : > { %v892_v8 = vadd.f32 %v888_v12, %v876_v41  ;;  %v1118_v59 = vpop.permute.xlu0 %1117  ;;  %v1807_v46 = vrot.slane %v1800_v10, 5  ;;  %v1827_v26 = vrot.slane %v1820_v3, 5  ;;  %v4220_v30 = vmul.f32 %v4163_v38, %v3159_v60 }
 0x1da   : > { %v994_v29 = vpop.permute.xlu1 %993  ;;  %v1039_v22 = vadd.f32 %v1034_v49, %v1017_v18  ;;  %v4229_v62 = vmul.f32 %v4203_v40, %v3190_v17  ;;  %v1148_v49 = vmul.f32 %v4203_v40, %v3177_v7  ;;  %v1165_v55 = vmul.f32 %v4163_v38, %v3140_v52 }
 0x1db   : > { %v914_v42 = vadd.f32 %v910_v25, %v892_v8  ;;  %1851 = vrot.lane.b32.xlu0 %v1848_v61, %s2816_s4  ;;  %v4240_v5 = vmul.f32 %v4210_v53, %v3159_v60  ;;  %v4245_v57 = vstv %s4176_s28  ;;  %v1868_v48 = vsel %vm338_vm1, %v1866_v63, %v1867_v20  ;;  %s4456_s28 = sld [smem:[#allocation6 + $0x2e]] }
 0x1dc   : > { %1789 = vrot.lane.b32.xlu1 %v1786_v58, %s2814_s17  ;;  %v1059_v36 = vadd.f32 %v3624_v54, %v1039_v22  ;;  %v1902_v54 = vmul.f32 %v4210_v53, %v3140_v52  ;;  %v1888_v32 = vrot.slane %v1882_v6, 5  ;;  %v1808_v27 = vsel %vm338_vm1, %v1805_v51, %v1807_v46  ;;  %v4885_v22 = vld [vmem:[#allocation13_spill] sm:$0xff] }
 0x1dd   : > { %v934_v25 = vadd.f32 %v3630_v4, %v914_v42  ;;  %v4236_v31 = vpop.permute.xlu0 %1194  ;;  %v1889_v4 = vrot.slane %v4214_v37, 5  ;;  %v1172_v1 = vrot.slane %v4220_v30, 3  ;;  %v1842_v47 = vmul.f32 %v4124_v28, %v3217_v43 }
 0x1de   : > { %v1036_v0 = vpop.permute.xlu1 %1035  ;;  %v1081_v39 = vadd.f32 %v1076_v11, %v1059_v36  ;;  %v1156_v50 = vrot.slane %v4229_v62, 3  ;;  %v1155_v23 = vrot.slane %v1148_v49, 3  ;;  %v1171_v10 = vrot.slane %v1165_v55, 3 }
 0x1df   : > { %v956_v19 = vadd.f32 %v952_v13, %v934_v25  ;;  %1871 = vrot.lane.b32.xlu0 %v1868_v48, %s2816_s4  ;;  %v4883_v13 = vld [vmem:[#allocation11_spill] sm:$0xff]  ;;  %v1909_v51 = vrot.slane %v4240_v5, 5  ;;  %v1908_v9 = vrot.slane %v1902_v54, 5  ;;  %v4267_v28 = vmul.f32 %v4245_v57, %v3190_v17 }
 0x1e0   : > { %1811 = vrot.lane.b32.xlu1 %v1808_v27, %s2815_s27  ;;  %v1101_v11 = vadd.f32 %v3645_v34, %v1081_v39  ;;  %v1828_v34 = vsel %vm338_vm1, %v1825_v16, %v1827_v26  ;;  %v1890_v3 = vsel %vm338_vm1, %v1888_v32, %v1889_v4  ;;  %v1924_v12 = vmul.f32 %v4245_v57, %v3177_v7 }
 0x1e1   : > { %v976_v2 = vadd.f32 %v4883_v13, %v956_v19  ;;  %v1215_v35 = vpop.permute.xlu0 %1214  ;;  %v1849_v58 = vrot.slane %v1842_v47, 5  ;;  %v1862_v8 = vmul.f32 %v4150_v15, %v3202_v33  ;;  %v4283_v61 = vstv %s4223_s3  ;;  %s2570_s3 = sld [smem:[#allocation6 + $0x5f]] }
 0x1e2   : > { %v1078_v41 = vpop.permute.xlu1 %1077  ;;  %v1123_v14 = vadd.f32 %v1118_v59, %v1101_v11  ;;  %v1157_v21 = vsel %vm1154_vm6, %v1155_v23, %v1156_v50  ;;  %v1173_v16 = vsel %vm1154_vm6, %v1171_v10, %v1172_v1  ;;  %v4884_v59 = vld [vmem:[#allocation12_spill] sm:$0xff]  ;;  %v1910_v15 = vsel %vm338_vm1, %v1908_v9, %v1909_v51 }
 0x1e3   : > { %v998_v18 = vadd.f32 %v994_v29, %v976_v2  ;;  %1893 = vrot.lane.b32.xlu0 %v1890_v3, %s2817_s6  ;;  %v1931_v42 = vrot.slane %v4267_v28, 5  ;;  %v4299_v46 = vstv %s4247_s20  ;;  %v1930_v49 = vrot.slane %v1924_v12, 5  ;;  %s4495_s20 = sld [smem:[#allocation6 + $0x2f]] }
 0x1e4   : > { %1831 = vrot.lane.b32.xlu1 %v1828_v34, %s2815_s27  ;;  %v1143_v29 = vadd.f32 %v4884_v59, %v1123_v14  ;;  %v4303_v55 = vmul.f32 %v4283_v61, %v3159_v60  ;;  %v1944_v25 = vmul.f32 %v4283_v61, %v3140_v52  ;;  %v1850_v39 = vsel %vm338_vm1, %v1847_v45, %v1849_v58  ;;  %v4887_v58 = vld [vmem:[#allocation15_spill] sm:$0xff] }
 0x1e5   : > { %v1018_v63 = vadd.f32 %v4885_v22, %v998_v18  ;;  %v1237_v6 = vpop.permute.xlu0 %1236  ;;  %v1869_v48 = vrot.slane %v1862_v8, 5  ;;  %v1884_v32 = vmul.f32 %v4192_v56, %v3217_v43  ;;  %v1150_v19 = vmul.f32 %v4203_v40, %v3217_v43 }
 0x1e6   : > { %v1120_v26 = vpop.permute.xlu1 %1119  ;;  %v1162_v36 = vadd.f32 %v1157_v21, %v1143_v29  ;;  %v1904_v47 = vmul.f32 %v4210_v53, %v3202_v33  ;;  %v1966_v11 = vmul.f32 %v4299_v46, %v3177_v7  ;;  %v4328_v23 = vstv %s4269_s5  ;;  %s2572_s5 = sld [smem:[#allocation6 + $0x60]] }
 0x1e7   : > { %v1040_v54 = vadd.f32 %v1036_v0, %v1018_v63  ;;  %1913 = vrot.lane.b32.xlu0 %v1910_v15, %s2817_s6  ;;  %v4320_v0 = vmul.f32 %v4299_v46, %v3190_v17  ;;  %v1932_v13 = vsel %vm338_vm1, %v1930_v49, %v1931_v42  ;;  %v1951_v2 = vrot.slane %v4303_v55, 5  ;;  %v4888_v49 = vld [vmem:[#allocation16_spill] sm:$0xff] }
 0x1e8   : > { %v1178_v27 = vadd.f32 %v1173_v16, %v1162_v36  ;;  %1853 = vrot.lane.b32.xlu1 %v1850_v39, %s2816_s4  ;;  %v1950_v9 = vrot.slane %v1944_v25, 5  ;;  %v1870_v34 = vsel %vm338_vm1, %v1867_v20, %v1869_v48  ;;  %v1891_v14 = vrot.slane %v1884_v32, 5 }
 0x1e9   : > { %v1060_v45 = vadd.f32 %v4886_v24, %v1040_v54  ;;  %v1257_v56 = vpop.permute.xlu0 %1256  ;;  %v1158_v3 = vrot.slane %v1150_v19, 3  ;;  %v1973_v18 = vrot.slane %v4320_v0, 5  ;;  %v1972_v21 = vrot.slane %v1966_v11, 5 }
 0x1ea   : > { %v4330_v10 = vpop.permute.xlu1 %1196  ;;  %v1200_v40 = vadd.f32 %v4236_v31, %v1178_v27  ;;  %v1167_v31 = vmul.f32 %v4163_v38, %v3202_v33  ;;  %v4350_v44 = vmul.f32 %v4328_v23, %v3159_v60  ;;  %v1986_v20 = vmul.f32 %v4328_v23, %v3140_v52 }
 0x1eb   : > { %v1082_v53 = vadd.f32 %v1078_v41, %v1060_v45  ;;  %1935 = vrot.lane.b32.xlu0 %v1932_v13, %s2818_s24  ;;  %v1911_v38 = vrot.slane %v1904_v47, 5  ;;  %v1892_v22 = vsel %vm338_vm1, %v1889_v4, %v1891_v14  ;;  %v1926_v63 = vmul.f32 %v4245_v57, %v3217_v43 }
 0x1ec   : > { %1873 = vrot.lane.b32.xlu1 %v1870_v34, %s2816_s4  ;;  %v1220_v12 = vadd.f32 %v1215_v35, %v1200_v40  ;;  %v1952_v35 = vsel %vm338_vm1, %v1950_v9, %v1951_v2  ;;  %v4366_v15 = vstv %s4313_s8  ;;  %v1174_v36 = vrot.slane %v1167_v31, 3  ;;  %s2573_s8 = sld [smem:[#allocation6 + $0x30]] }
 0x1ed   : > { %v1102_v8 = vadd.f32 %v4887_v58, %v1082_v53  ;;  %v1279_v41 = vpop.permute.xlu0 %1278  ;;  %v1974_v57 = vsel %vm338_vm1, %v1972_v21, %v1973_v18  ;;  %v1993_v4 = vrot.slane %v4350_v44, 5  ;;  %v1992_v54 = vrot.slane %v1986_v20, 5 }
 0x1ee   : > { %v1217_v16 = vpop.permute.xlu1 %1216  ;;  %v1242_v59 = vadd.f32 %v1237_v6, %v1220_v12  ;;  %v1159_v6 = vsel %vm1154_vm6, %v1156_v50, %v1158_v3  ;;  %v4381_v50 = vmul.f32 %v4366_v15, %v3190_v17  ;;  %v2043_v48 = vmul.f32 %v4366_v15, %v3177_v7 }
 0x1ef   : > { %v1124_v29 = vadd.f32 %v1120_v26, %v1102_v8  ;;  %1955 = vrot.lane.b32.xlu0 %v1952_v35, %s2818_s24  ;;  %v4386_v32 = vstv %s4337_s29  ;;  %v1912_v27 = vsel %vm338_vm1, %v1909_v51, %v1911_v38  ;;  %v1933_v24 = vrot.slane %v1926_v63, 5  ;;  %s2574_s29 = sld [smem:[#allocation6 + $0x61]] }
 0x1f0   : > { %1895 = vrot.lane.b32.xlu1 %v1892_v22, %s2817_s6  ;;  %v1262_v26 = vadd.f32 %v1257_v56, %v1242_v59  ;;  %v1946_v45 = vmul.f32 %v4283_v61, %v3202_v33  ;;  %v1175_v47 = vsel %vm1154_vm6, %v1172_v1, %v1174_v36  ;;  %v1994_v5 = vsel %vm338_vm1, %v1992_v54, %v1993_v4 }
 0x1f1   : > { %v1144_v37 = vadd.f32 %v4888_v49, %v1124_v29  ;;  %v1299_v25 = vpop.permute.xlu0 %1298  ;;  %v4403_v51 = vmul.f32 %v4386_v32, %v3159_v60  ;;  %v2063_v61 = vmul.f32 %v4386_v32, %v3140_v52  ;;  %v2050_v1 = vrot.slane %v4381_v50, 6 }
 0x1f2   : > { %v1239_v39 = vpop.permute.xlu1 %1238  ;;  %v1284_v62 = vadd.f32 %v1279_v41, %v1262_v26  ;;  %v2049_v9 = vrot.slane %v2043_v48, 6  ;;  %v2084_v53 = vstv %s4357_s7  ;;  %v1934_v14 = vsel %vm338_vm1, %v1931_v42, %v1933_v24  ;;  %s2534_s7 = sld [smem:[#allocation6 + $0x4d]] }
 0x1f3   : > { %v1163_v19 = vadd.f32 %v1159_v6, %v1144_v37  ;;  %1977 = vrot.lane.b32.xlu0 %v1974_v57, %s2819_s23  ;;  %v1953_v3 = vrot.slane %v1946_v45, 5  ;;  %v1968_v31 = vmul.f32 %v4299_v46, %v3217_v43  ;;  %v1988_v12 = vmul.f32 %v4328_v23, %v3202_v33 }
 0x1f4   : > { %1915 = vrot.lane.b32.xlu1 %v1912_v27, %s2817_s6  ;;  %v1304_v56 = vadd.f32 %v1299_v25, %v1284_v62  ;;  %v4422_v28 = vmul.f32 %v2084_v53, %v3190_v17  ;;  %v2085_v42 = vmul.f32 %v2084_v53, %v3177_v7  ;;  %v4426_v8 = vstv %s4377_s16 }
 0x1f5   : > { %v1179_v11 = vadd.f32 %v1175_v47, %v1163_v19  ;;  %v1321_v40 = vpop.permute.xlu0 %1320  ;;  %v2051_v21 = vsel %vm2014_vm8, %v2049_v9, %v2050_v1  ;;  %v2070_v20 = vrot.slane %v4403_v51, 6  ;;  %v2069_v59 = vrot.slane %v2063_v61, 6 }
 0x1f6   : > { %v1259_v13 = vpop.permute.xlu1 %1258  ;;  %v1326_v30 = vadd.f32 %v1321_v40, %v1304_v56  ;;  %v1975_v38 = vrot.slane %v1968_v31, 5  ;;  %v4441_v35 = vmul.f32 %v4426_v8, %v3159_v60  ;;  %v2092_v63 = vrot.slane %v4422_v28, 6 }
 0x1f7   : > { %v1201_v34 = vadd.f32 %v4330_v10, %v1179_v11  ;;  %1997 = vrot.lane.b32.xlu0 %v1994_v5, %s2819_s23  ;;  %v2091_v6 = vrot.slane %v2085_v42, 6  ;;  %v2105_v55 = vmul.f32 %v4426_v8, %v3140_v52  ;;  %v2071_v49 = vsel %vm2014_vm8, %v2069_v59, %v2070_v20 }
 0x1f8   : > { %1937 = vrot.lane.b32.xlu1 %v1934_v14, %s2818_s24  ;;  %v1976_v25 = vsel %vm338_vm1, %v1973_v18, %v1975_v38  ;;  %v2045_v57 = vmul.f32 %v4366_v15, %v3217_v43  ;;  %v2126_v54 = vstv %s4416_s26  ;;  %v2112_v19 = vrot.slane %v4441_v35, 6 }
 0x1f9   : > { %v1221_v58 = vadd.f32 %v1217_v16, %v1201_v34  ;;  %v1341_v10 = vpop.permute.xlu0 %1340  ;;  %v1954_v16 = vsel %vm338_vm1, %v1951_v2, %v1953_v3  ;;  %v1995_v2 = vrot.slane %v1988_v12, 5  ;;  %v2093_v48 = vsel %vm2014_vm8, %v2091_v6, %v2092_v63 }
 0x1fa   : > { %v1281_v46 = vpop.permute.xlu1 %1280  ;;  %v1346_v41 = vadd.f32 %v1341_v10, %v1326_v30  ;;  %v2111_v0 = vrot.slane %v2105_v55, 6  ;;  %v4464_v15 = vmul.f32 %v2126_v54, %v3190_v17  ;;  %v2127_v24 = vmul.f32 %v2126_v54, %v3177_v7 }
 0x1fb   : > { %v1243_v23 = vadd.f32 %v1239_v39, %v1221_v58  ;;  %2054 = vrot.lane.b32.xlu0 %v2051_v21, %s2814_s17  ;;  %v4468_v45 = vstv %s4432_s30  ;;  %v1996_v56 = vsel %vm338_vm1, %v1993_v4, %v1995_v2  ;;  %v2052_v11 = vrot.slane %v2045_v57, 6 }
 0x1fc   : > { %1957 = vrot.lane.b32.xlu1 %v1954_v16, %s2818_s24  ;;  %v2065_v40 = vmul.f32 %v4386_v32, %v3202_v33  ;;  %v2087_v5 = vmul.f32 %v2084_v53, %v3217_v43  ;;  %v2113_v4 = vsel %vm2014_vm8, %v2111_v0, %v2112_v19  ;;  %v2134_v30 = vrot.slane %v4464_v15, 6 }
 0x1fd   : > { %v1263_v29 = vadd.f32 %v1259_v13, %v1243_v23  ;;  %v1363_v22 = vpop.permute.xlu0 %1362  ;;  %v4482_v13 = vmul.f32 %v4468_v45, %v3159_v60  ;;  %v2133_v32 = vrot.slane %v2127_v24, 6  ;;  %v2147_v9 = vmul.f32 %v4468_v45, %v3140_v52 }
 0x1fe   : > { %v1301_v36 = vpop.permute.xlu1 %1300  ;;  %v1368_v26 = vadd.f32 %v1363_v22, %v1346_v41  ;;  %v2053_v53 = vsel %vm2014_vm8, %v2050_v1, %v2052_v11  ;;  %v2072_v14 = vrot.slane %v2065_v40, 6  ;;  %v2168_v3 = vstv %s4456_s28 }
 0x1ff   : > { %v1285_v37 = vadd.f32 %v1281_v46, %v1263_v29  ;;  %2074 = vrot.lane.b32.xlu0 %v2071_v49, %s2814_s17  ;;  %v2094_v31 = vrot.slane %v2087_v5, 6  ;;  %v2154_v58 = vrot.slane %v4482_v13, 6  ;;  %v4501_v10 = vstv %s2570_s3  ;;  %s2820_s3 = smov [#allocation7]  }
 0x200   : > { %1979 = vrot.lane.b32.xlu1 %v1976_v25, %s2819_s23  ;;  %v2135_v50 = vsel %vm2014_vm8, %v2133_v32, %v2134_v30  ;;  %v2153_v1 = vrot.slane %v2147_v9, 6  ;;  %v4507_v42 = vmul.f32 %v2168_v3, %v3190_v17  ;;  %v2169_v46 = vmul.f32 %v2168_v3, %v3177_v7 }
 0x201   : > { %v1305_v39 = vadd.f32 %v1301_v36, %v1285_v37  ;;  %v1383_v62 = vpop.permute.xlu0 %1382  ;;  %v2073_v21 = vsel %vm2014_vm8, %v2070_v20, %v2072_v14  ;;  %v2107_v59 = vmul.f32 %v4426_v8, %v3202_v33  ;;  %v2095_v23 = vsel %vm2014_vm8, %v2092_v63, %v2094_v31 }
 0x202   : > { %v1323_v18 = vpop.permute.xlu1 %1322  ;;  %v4461_v27 = vadd.f32 %v1383_v62, %v1368_v26  ;;  %v4522_v38 = vmul.f32 %v4501_v10, %v3159_v60  ;;  %v2155_v20 = vsel %vm2014_vm8, %v2153_v1, %v2154_v58  ;;  %v2176_v8 = vrot.slane %v4507_v42, 6 }
 0x203   : > { %v1327_v47 = vadd.f32 %v1323_v18, %v1305_v39  ;;  %2096 = vrot.lane.b32.xlu0 %v2093_v48, %s2815_s27  ;;  %v2175_v29 = vrot.slane %v2169_v46, 6  ;;  %v2189_v22 = vmul.f32 %v4501_v10, %v3140_v52  ;;  %v2114_v63 = vrot.slane %v2107_v59, 6 }
 0x204   : > { %1999 = vrot.lane.b32.xlu1 %v1996_v56, %s2819_s23  ;;  %v2129_v55 = vmul.f32 %v2126_v54, %v3217_v43  ;;  %v2210_v36 = vstv %s4495_s20  ;;  %v2196_v26 = vrot.slane %v4522_v38, 6  ;;  %v4539_v49 = vstv %s2572_s5  ;;  %s2741_s20 = sshll.u32 %s2820_s3, 4  ;;  %s2742_s20 = int_to_ptr.vmem [resolvable:$false] %s2741_s20 }
 0x205   : > { %v4478_v61 = vpop.permute.xlu0 %1404  ;;  %v2177_v25 = vsel %vm2014_vm8, %v2175_v29, %v2176_v8  ;;  %v2195_v57 = vrot.slane %v2189_v22, 6  ;;  %v4547_v54 = vmul.f32 %v2210_v36, %v3190_v17  ;;  %v2211_v39 = vmul.f32 %v2210_v36, %v3177_v7  ;;  %s2743_s5 = scalar_lea.vmem %s2742_s20, 8192 }
 0x206   : > { %v1343_v44 = vpop.permute.xlu1 %1342  ;;  %v2115_v62 = vsel %vm2014_vm8, %v2112_v19, %v2114_v63  ;;  %v2136_v48 = vrot.slane %v2129_v55, 6  ;;  %v2149_v0 = vmul.f32 %v4468_v45, %v3202_v33  ;;  %v4561_v24 = vmul.f32 %v4539_v49, %v3159_v60 }
 0x207   : > { %v1347_v34 = vadd.f32 %v1343_v44, %v1327_v47  ;;  %2116 = vrot.lane.b32.xlu0 %v2113_v4, %s2815_s27  ;;  %v4563_v47 = vstv %s2573_s8  ;;  %v2197_v19 = vsel %vm2014_vm8, %v2195_v57, %v2196_v26  ;;  %v2218_v45 = vrot.slane %v4547_v54, 6 }
 0x208   : > { %2056 = vrot.lane.b32.xlu1 %v2053_v53, %s2814_s17  ;;  %v2217_v56 = vrot.slane %v2211_v39, 6  ;;  %v2231_v11 = vmul.f32 %v4539_v49, %v3140_v52  ;;  %v2137_v40 = vsel %vm2014_vm8, %v2134_v30, %v2136_v48  ;;  %v2156_v5 = vrot.slane %v2149_v0, 6 }
 0x209   : > { %v4498_v12 = vpop.permute.xlu0 %1424  ;;  %v2171_v44 = vmul.f32 %v2168_v3, %v3217_v43  ;;  %v4583_v9 = vmul.f32 %v4563_v47, %v3190_v17  ;;  %v2238_v30 = vrot.slane %v4561_v24, 6  ;;  %v2253_v14 = vmul.f32 %v4563_v47, %v3177_v7 }
 0x20a   : > { %v1365_v28 = vpop.permute.xlu1 %1364  ;;  %v2219_v15 = vsel %vm2014_vm8, %v2217_v56, %v2218_v45  ;;  %v2237_v53 = vrot.slane %v2231_v11, 6  ;;  %v2157_v3 = vsel %vm2014_vm8, %v2154_v58, %v2156_v5  ;;  %v1451_v46 = vstv %s2534_s7 }
 0x20b   : > { %v1369_v41 = vadd.f32 %v1365_v28, %v1347_v34  ;;  %2138 = vrot.lane.b32.xlu0 %v2135_v50, %s2816_s4  ;;  %v2178_v31 = vrot.slane %v2171_v44, 6  ;;  %v2191_v28 = vmul.f32 %v4501_v10, %v3202_v33  ;;  %v2272_v50 = vstv %s2574_s29 }
 0x20c   : > { %2076 = vrot.lane.b32.xlu1 %v2073_v21, %s2814_s17  ;;  %s2533_s17 = sld [smem:[#allocation6 + $0x1c]]  ;;  %v2260_v13 = vrot.slane %v4583_v9, 6  ;;  %v2239_v59 = vsel %vm2014_vm8, %v2237_v53, %v2238_v30  ;;  %v2259_v10 = vrot.slane %v2253_v14, 6  ;;  %v2213_v22 = vmul.f32 %v2210_v36, %v3217_v43 }
 0x20d   : > { %v4518_v16 = vpop.permute.xlu0 %1481  ;;  %v2198_v29 = vrot.slane %v2191_v28, 6  ;;  %v1410_v63 = vadd.f32 %v4478_v61, %v4461_v27  ;;  %v1452_v54 = vmul.f32 %v1451_v46, %v3140_v52  ;;  %v2233_v0 = vmul.f32 %v4539_v49, %v3202_v33 }
 0x20e   : > { %v1385_v51 = vpop.permute.xlu1 %1384  ;;  %v2261_v36 = vsel %vm2014_vm8, %v2259_v10, %v2260_v13  ;;  %v2220_v61 = vrot.slane %v2213_v22, 6  ;;  %v2255_v44 = vmul.f32 %v4563_v47, %v3217_v43 }
 0x20f   : > { %v4530_v6 = vadd.f32 %v1385_v51, %v1369_v41  ;;  %2158 = vrot.lane.b32.xlu0 %v2155_v20, %s2816_s4  ;;  %v2273_v51 = vmul.f32 %v2272_v50, %v3140_v52  ;;  %v2179_v20 = vsel %vm2014_vm8, %v2176_v8, %v2178_v31  ;;  %v1430_v8 = vadd.f32 %v4498_v12, %v1410_v63 }
 0x210   : > { %2098 = vrot.lane.b32.xlu1 %v2095_v23, %s2815_s27  ;;  %v2274_v23 = vmul.f32 %v2272_v50, %v3159_v60  ;;  %v2199_v27 = vsel %vm2014_vm8, %v2196_v26, %v2198_v29  ;;  %v2221_v38 = vsel %vm2014_vm8, %v2218_v45, %v2220_v61  ;;  %v2240_v26 = vrot.slane %v2233_v0, 6 }
 0x211   : > { %v4536_v2 = vpop.permute.xlu0 %1501  ;;  %v2279_v48 = vrot.slane %v2273_v51, 6  ;;  %v2262_v31 = vrot.slane %v2255_v44, 6  ;;  %v2275_v45 = vmul.f32 %v2272_v50, %v3202_v33 }
 0x212   : > { %v4541_v37 = vpop.permute.xlu1 %1406  ;;  %v1434_v4 = vstv %s2533_s17 }
 0x213   : > { %2180 = vrot.lane.b32.xlu0 %v2177_v25, %s2817_s6  ;;  %v4599_v1 = vmul.f32 %v1434_v4, %v3190_v17  ;;  %v1435_v41 = vmul.f32 %v1434_v4, %v3177_v7  ;;  %v1453_v25 = vmul.f32 %v1451_v46, %v3159_v60  ;;  %v1411_v47 = vadd.f32 %v4541_v37, %v4530_v6 }
 0x214   : > { %2118 = vrot.lane.b32.xlu1 %v2115_v62, %s2815_s27  ;;  %v2280_v62 = vrot.slane %v2274_v23, 6  ;;  %v2263_v23 = vsel %vm2014_vm8, %v2260_v13, %v2262_v31  ;;  %s2547_s27 = sld [smem:[#allocation6 + $0x23]] }
 0x215   : > { %v4557_v18 = vpop.permute.xlu0 %1523  ;;  %v1443_v55 = vrot.slane %v4599_v1, 4  ;;  %v1442_v57 = vrot.slane %v1435_v41, 4  ;;  %v1459_v24 = vrot.slane %v1453_v25, 4  ;;  %v1454_v41 = vmul.f32 %v1451_v46, %v3202_v33 }
 0x216   : > { %v4565_v35 = vpop.permute.xlu1 %1426  ;;  %v2281_v5 = vsel %vm2014_vm8, %v2279_v48, %v2280_v62 }
 0x217   : > { %2200 = vrot.lane.b32.xlu0 %v2197_v19, %s2817_s6  ;;  %v1444_v12 = vsel %vm1441_vm7, %v1442_v57, %v1443_v55  ;;  %v1458_v19 = vrot.slane %v1452_v54, 4 }
 0x218   : > { %2140 = vrot.lane.b32.xlu1 %v2137_v40, %s2816_s4  ;;  %v1449_v11 = vadd.f32 %v1444_v12, %v1430_v8 }
 0x219   : > { %v4579_v32 = vpop.permute.xlu0 %1543  ;;  %v1460_v49 = vsel %vm1441_vm7, %v1458_v19, %v1459_v24 }
 0x21a   : > { %v4585_v34 = vpop.permute.xlu1 %1483  ;;  %v1465_v53 = vadd.f32 %v1460_v49, %v1449_v11 }
 0x21b   : > { %2222 = vrot.lane.b32.xlu0 %v2219_v15, %s2818_s24  ;;  %v1437_v15 = vmul.f32 %v1434_v4, %v3217_v43  ;;  %v1431_v4 = vadd.f32 %v4565_v35, %v1411_v47 }
 0x21c   : > { %2160 = vrot.lane.b32.xlu1 %v2157_v3, %s2816_s4  ;;  %v2241_v3 = vsel %vm2014_vm8, %v2238_v30, %v2240_v26  ;;  %v2282_v30 = vrot.slane %v2275_v45, 6  ;;  %s2548_s4 = sld [smem:[#allocation6 + $0x54]] }
 0x21d   : > { %v4602_v21 = vpop.permute.xlu0 %1565  ;;  %v1445_v1 = vrot.slane %v1437_v15, 4 }
 0x21e   : > { %v4605_v58 = vpop.permute.xlu1 %1503  ;;  %v2283_v46 = vsel %vm2014_vm8, %v2280_v62, %v2282_v30 }
 0x21f   : > { %2242 = vrot.lane.b32.xlu0 %v2239_v59, %s2818_s24  ;;  %v1487_v59 = vadd.f32 %v4518_v16, %v1465_v53  ;;  %v1446_v51 = vsel %vm1441_vm7, %v1443_v55, %v1445_v1 }
 0x220   : > { %2182 = vrot.lane.b32.xlu1 %v2179_v20, %s2817_s6  ;;  %v1461_v20 = vrot.slane %v1454_v41, 4  ;;  %v1450_v29 = vadd.f32 %v1446_v51, %v1431_v4 }
 0x221   : > { %v1586_v42 = vpop.permute.xlu0 %1585  ;;  %v1507_v6 = vadd.f32 %v4536_v2, %v1487_v59 }
 0x222   : > { %v4622_v39 = vpop.permute.xlu1 %1525  ;;  %v1462_v13 = vsel %vm1441_vm7, %v1459_v24, %v1461_v20  ;;  %v1737_v11 = vstv %s2548_s4 }
 0x223   : > { %2264 = vrot.lane.b32.xlu0 %v2261_v36, %s2819_s23  ;;  %v1529_v16 = vadd.f32 %v4557_v18, %v1507_v6  ;;  %v1466_v25 = vadd.f32 %v1462_v13, %v1450_v29  ;;  %v1721_v18 = vstv %s2547_s27  ;;  %v1739_v44 = vmul.f32 %v1737_v11, %v3159_v60 }
 0x224   : > { %2202 = vrot.lane.b32.xlu1 %v2199_v27, %s2817_s6  ;;  %v1724_v4 = vmul.f32 %v1721_v18, %v3217_v43  ;;  %v1740_v6 = vmul.f32 %v1737_v11, %v3202_v33  ;;  %s2561_s6 = sld [smem:[#allocation6 + $0x2a]] }
 0x225   : > { %v1608_v56 = vpop.permute.xlu0 %1607  ;;  %v1549_v22 = vadd.f32 %v4579_v32, %v1529_v16  ;;  %v1488_v8 = vadd.f32 %v4585_v34, %v1466_v25  ;;  %v1723_v32 = vmul.f32 %v1721_v18, %v3190_v17  ;;  %v1745_v31 = vrot.slane %v1739_v44, 5 }
 0x226   : > { %v1546_v40 = vpop.permute.xlu1 %1545  ;;  %v1731_v20 = vrot.slane %v1724_v4, 5  ;;  %v1747_v13 = vrot.slane %v1740_v6, 5 }
 0x227   : > { %2284 = vrot.lane.b32.xlu0 %v2281_v5, %s2819_s23  ;;  %v1571_v55 = vadd.f32 %v4602_v21, %v1549_v22  ;;  %v1508_v61 = vadd.f32 %v4605_v58, %v1488_v8  ;;  %v1722_v21 = vmul.f32 %v1721_v18, %v3177_v7  ;;  %v1738_v58 = vmul.f32 %v1737_v11, %v3140_v52 }
 0x228   : > { %2224 = vrot.lane.b32.xlu1 %v2221_v38, %s2818_s24 }
 0x229   : > { %v1628_v9 = vpop.permute.xlu0 %1627  ;;  %v1591_v2 = vadd.f32 %v1586_v42, %v1571_v55  ;;  %v1530_v24 = vadd.f32 %v4622_v39, %v1508_v61  ;;  %v1728_v26 = vrot.slane %v1722_v21, 5  ;;  %v1744_v45 = vrot.slane %v1738_v58, 5 }
 0x22a   : > { %v1568_v14 = vpop.permute.xlu1 %1567 }
 0x22b   : > { %v1613_v36 = vadd.f32 %v1608_v56, %v1591_v2  ;;  %v1550_v5 = vadd.f32 %v1546_v40, %v1530_v24  ;;  %v1729_v56 = vrot.slane %v1723_v32, 5  ;;  %v1748_v2 = vsel %vm338_vm1, %v1745_v31, %v1747_v13 }
 0x22c   : > { %2244 = vrot.lane.b32.xlu1 %v2241_v3, %s2818_s24  ;;  %s2562_s24 = sld [smem:[#allocation6 + $0x5b]]  ;;  %v2007_v32 = vstv %s2561_s6 }
 0x22d   : > { %v1650_v28 = vpop.permute.xlu0 %1649  ;;  %v1633_v48 = vadd.f32 %v1628_v9, %v1613_v36  ;;  %v1572_v38 = vadd.f32 %v1568_v14, %v1550_v5  ;;  %v1730_v3 = vsel %vm338_vm1, %v1728_v26, %v1729_v56  ;;  %v1746_v14 = vsel %vm338_vm1, %v1744_v45, %v1745_v31 }
 0x22e   : > { %v1588_v10 = vpop.permute.xlu1 %1587  ;;  %v2009_v11 = vmul.f32 %v2007_v32, %v3190_v17  ;;  %v2008_v5 = vmul.f32 %v2007_v32, %v3177_v7 }
 0x22f   : > { %v1655_v0 = vadd.f32 %v1650_v28, %v1633_v48  ;;  %v1592_v53 = vadd.f32 %v1588_v10, %v1572_v38 }
 0x230   : > { %2266 = vrot.lane.b32.xlu1 %v2263_v23, %s2819_s23 }
 0x231   : > { %v1670_v50 = vpop.permute.xlu0 %1669 }
 0x232   : > { %v1610_v37 = vpop.permute.xlu1 %1609  ;;  %v1675_v42 = vadd.f32 %v1670_v50, %v1655_v0 }
 0x233   : > { %v1614_v39 = vadd.f32 %v1610_v37, %v1592_v53  ;;  %v2015_v53 = vrot.slane %v2008_v5, 6 }
 0x234   : > { %2286 = vrot.lane.b32.xlu1 %v2283_v46, %s2819_s23  ;;  %s4695_s23 = scalar_lea.vmem [#allocation7], %s2475_s19  ;;  %s2583_s19 = sshll.u32 %s2859_s13, 12 }
 0x235   : > { %v1692_v35 = vpop.permute.xlu0 %1691  ;;  %s2382_s16 = sshll.u32 %s4695_s23, 4  ;;  %s4761_s28 = scalar_lea.hbm %s4839_s2, %s2583_s19  ;;  %s4765_s16 = int_to_ptr.vmem [resolvable:$true] %s2382_s16 }
 0x236   : > { %v1630_v63 = vpop.permute.xlu1 %1629  ;;  %v1697_v34 = vadd.f32 %v1692_v35, %v1675_v42  ;;  %v1732_v35 = vsel %vm338_vm1, %v1729_v56, %v1731_v20  ;;  %v2024_v42 = vstv %s2562_s24  ;;  %s2369_s13 = scalar_lea.sflag [#allocation4], %s2965_s14  ;;  %p2744_p10 = scmp.lt.s32.totalorder %s4765_s16, %s2742_s20 }
 0x237   : > { %v1634_v1 = vadd.f32 %v1630_v63, %v1614_v39  ;;  %v2026_v26 = vmul.f32 %v2024_v42, %v3159_v60  ;;  %v2025_v44 = vmul.f32 %v2024_v42, %v3140_v52 }
 0x239   : > { %v1712_v57 = vpop.permute.xlu0 %1711  ;;  %v2032_v45 = vrot.slane %v2026_v26, 6 }
 0x23a   : > { %v1652_v54 = vpop.permute.xlu1 %1651  ;;  %v1717_v15 = vadd.f32 %v1712_v57, %v1697_v34 }
 0x23b   : > { %v1656_v41 = vadd.f32 %v1652_v54, %v1634_v1 }
 0x23c   : > { %v1735_v28 = vadd.f32 %v1730_v3, %v1717_v15  ;;  %v2016_v15 = vrot.slane %v2009_v11, 6 }
 0x23d   : > { %v1768_v62 = vpop.permute.xlu0 %1767 }
 0x23e   : > { %v1672_v27 = vpop.permute.xlu1 %1671  ;;  %v1751_v23 = vadd.f32 %v1746_v14, %v1735_v28 }
 0x23f   : > { %v1676_v50 = vadd.f32 %v1672_v27, %v1656_v41 }
 0x240   : > { %v1773_v37 = vadd.f32 %v1768_v62, %v1751_v23  ;;  %v2010_v23 = vmul.f32 %v2007_v32, %v3217_v43 }
 0x241   : > { %v1788_v12 = vpop.permute.xlu0 %1787 }
 0x242   : > { %v1694_v19 = vpop.permute.xlu1 %1693  ;;  %v1793_v22 = vadd.f32 %v1788_v12, %v1773_v37  ;;  %v2018_v6 = vrot.slane %v2010_v23, 6 }
 0x243   : > { %v1698_v51 = vadd.f32 %v1694_v19, %v1676_v50 }
 0x244   : > { %v2019_v13 = vsel %vm2014_vm8, %v2016_v15, %v2018_v6  ;;  %v2661_v6 = vld [vmem:[%s2971_s25 + $0x10] sm:$0xff] }
 0x245   : > { %v1810_v49 = vpop.permute.xlu0 %1809 }
 0x246   : > { %v1714_v9 = vpop.permute.xlu1 %1713  ;;  %v1815_v55 = vadd.f32 %v1810_v49, %v1793_v22 }
 0x247   : > { %v1718_v46 = vadd.f32 %v1714_v9, %v1698_v51 }
 0x249   : > { %v1830_v47 = vpop.permute.xlu0 %1829  ;;  %v1736_v25 = vadd.f32 %v1732_v35, %v1718_v46 }
 0x24a   : > { %v1770_v40 = vpop.permute.xlu1 %1769  ;;  %v1835_v54 = vadd.f32 %v1830_v47, %v1815_v55  ;;  %v2031_v47 = vrot.slane %v2025_v44, 6 }
 0x24b   : > { %v1752_v36 = vadd.f32 %v1748_v2, %v1736_v25 }
 0x24c   : > { %v2033_v60 = vsel %vm2014_vm8, %v2031_v47, %v2032_v45 }
 0x24d   : > { %v1852_v59 = vpop.permute.xlu0 %1851  ;;  %v1774_v61 = vadd.f32 %v1770_v40, %v1752_v36  ;;  %v2017_v40 = vsel %vm2014_vm8, %v2015_v53, %v2016_v15 }
 0x24e   : > { %v1790_v30 = vpop.permute.xlu1 %1789  ;;  %v1857_v18 = vadd.f32 %v1852_v59, %v1835_v54 }
 0x24f   : > { %v1794_v19 = vadd.f32 %v1790_v30, %v1774_v61 }
 0x251   : > { %v1872_v10 = vpop.permute.xlu0 %1871 }
 0x252   : > { %v1812_v29 = vpop.permute.xlu1 %1811  ;;  %v1877_v27 = vadd.f32 %v1872_v10, %v1857_v18  ;;  %v2027_v10 = vmul.f32 %v2024_v42, %v3202_v33 }
 0x253   : > { %v1816_v56 = vadd.f32 %v1812_v29, %v1794_v19 }
 0x255   : > { %v1894_v16 = vpop.permute.xlu0 %1893 }
 0x256   : > { %v1832_v63 = vpop.permute.xlu1 %1831  ;;  %v1899_v0 = vadd.f32 %v1894_v16, %v1877_v27  ;;  %v2034_v16 = vrot.slane %v2027_v10, 6  ;;  %v2660_v10 = vld [vmem:[%s2971_s25] sm:$0xff] }
 0x257   : > { %v1836_v9 = vadd.f32 %v1832_v63, %v1816_v56 }
 0x258   : > { %v2035_v25 = vsel %vm2014_vm8, %v2032_v45, %v2034_v16  ;;  %v2663_v16 = vld [vmem:[%s2971_s25 + $0x30] sm:$0xff] }
 0x259   : > { %v1914_v57 = vpop.permute.xlu0 %1913 }
 0x25a   : > { %v1854_v8 = vpop.permute.xlu1 %1853  ;;  %v1919_v12 = vadd.f32 %v1914_v57, %v1899_v0 }
 0x25b   : > { %v1858_v3 = vadd.f32 %v1854_v8, %v1836_v9 }
 0x25d   : > { %v1936_v62 = vpop.permute.xlu0 %1935 }
 0x25e   : > { %v1874_v48 = vpop.permute.xlu1 %1873  ;;  %v1941_v34 = vadd.f32 %v1936_v62, %v1919_v12 }
 0x25f   : > { %v1878_v7 = vadd.f32 %v1874_v48, %v1858_v3 }
 0x261   : > { %v1956_v24 = vpop.permute.xlu0 %1955 }
 0x262   : > { %v1896_v21 = vpop.permute.xlu1 %1895  ;;  %v1961_v49 = vadd.f32 %v1956_v24, %v1941_v34 }
 0x263   : > { %v1900_v41 = vadd.f32 %v1896_v21, %v1878_v7 }
 0x265   : > { %v1978_v38 = vpop.permute.xlu0 %1977 }
 0x266   : > { %v1916_v58 = vpop.permute.xlu1 %1915  ;;  %v1983_v39 = vadd.f32 %v1978_v38, %v1961_v49 }
 0x267   : > { %v1920_v4 = vadd.f32 %v1916_v58, %v1900_v41 }
 0x269   : > { %v1998_v31 = vpop.permute.xlu0 %1997 }
 0x26a   : > { %v1938_v17 = vpop.permute.xlu1 %1937  ;;  %v2003_v28 = vadd.f32 %v1998_v31, %v1983_v39 }
 0x26b   : > { %v1942_v30 = vadd.f32 %v1938_v17, %v1920_v4 }
 0x26c   : > { %v2022_v1 = vadd.f32 %v2017_v40, %v2003_v28 }
 0x26d   : > { %v2055_v52 = vpop.permute.xlu0 %2054 }
 0x26e   : > { %v1958_v14 = vpop.permute.xlu1 %1957  ;;  %v2038_v59 = vadd.f32 %v2033_v60, %v2022_v1 }
 0x26f   : > { %v1962_v20 = vadd.f32 %v1958_v14, %v1942_v30 }
 0x270   : > { %v2060_v8 = vadd.f32 %v2055_v52, %v2038_v59 }
 0x271   : > { %v2075_v50 = vpop.permute.xlu0 %2074 }
 0x272   : > { %v1980_v51 = vpop.permute.xlu1 %1979  ;;  %v2080_v18 = vadd.f32 %v2075_v50, %v2060_v8 }
 0x273   : > { %v1984_v37 = vadd.f32 %v1980_v51, %v1962_v20 }
 0x275   : > { %v2097_v29 = vpop.permute.xlu0 %2096 }
 0x276   : > { %v2000_v46 = vpop.permute.xlu1 %1999  ;;  %v2102_v48 = vadd.f32 %v2097_v29, %v2080_v18  ;;  %v2662_v29 = vld [vmem:[%s2971_s25 + $0x20] sm:$0xff] }
 0x277   : > { %v2004_v35 = vadd.f32 %v2000_v46, %v1984_v37  ;;  %v2670_v18 = vld [vmem:[%s2971_s25 + $0xa0] sm:$0xff] }
 0x279   : > { %v2023_v22 = vadd.f32 %v2019_v13, %v2004_v35  ;;  %v2117_v63 = vpop.permute.xlu0 %2116  ;;  %v2664_v13 = vld [vmem:[%s2971_s25 + $0x40] sm:$0xff] }
 0x27a   : > { %v2057_v55 = vpop.permute.xlu1 %2056  ;;  %v2122_v61 = vadd.f32 %v2117_v63, %v2102_v48  ;;  %v2665_v63 = vld [vmem:[%s2971_s25 + $0x50] sm:$0xff] }
 0x27b   : > { %v2039_v43 = vadd.f32 %v2035_v25, %v2023_v22  ;;  %v2671_v48 = vld [vmem:[%s2971_s25 + $0xb0] sm:$0xff] }
 0x27d   : > { %v2139_v57 = vpop.permute.xlu0 %2138  ;;  %v2061_v42 = vadd.f32 %v2057_v55, %v2039_v43  ;;  %v2666_v55 = vld [vmem:[%s2971_s25 + $0x60] sm:$0xff] }
 0x27e   : > { %v2077_v2 = vpop.permute.xlu1 %2076  ;;  %v2144_v32 = vadd.f32 %v2139_v57, %v2122_v61  ;;  %v2667_v57 = vld [vmem:[%s2971_s25 + $0x70] sm:$0xff]  ;;  %v2672_v61 = vld [vmem:[%s2971_s25 + $0xc0] sm:$0xff] }
 0x27f   : > { %v2081_v56 = vadd.f32 %v2077_v2, %v2061_v42  ;;  %v2675_v42 = vld [vmem:[%s2971_s25 + $0xf0] sm:$0xff] }
 0x281   : > { %v2159_v54 = vpop.permute.xlu0 %2158 }
 0x282   : > { %v2099_v33 = vpop.permute.xlu1 %2098  ;;  %v2164_v12 = vadd.f32 %v2159_v54, %v2144_v32  ;;  %v2668_v54 = vld [vmem:[%s2971_s25 + $0x80] sm:$0xff]  ;;  %v2673_v32 = vld [vmem:[%s2971_s25 + $0xd0] sm:$0xff] }
 0x283   : > { %v2103_v26 = vadd.f32 %v2099_v33, %v2081_v56  ;;  %v2669_v33 = vld [vmem:[%s2971_s25 + $0x90] sm:$0xff]  ;;  %v2677_v56 = vld [vmem:[%s2971_s25 + $0x18] sm:$0xff] }
 0x285   : > { %v2181_v36 = vpop.permute.xlu0 %2180 }
 0x286   : > { %v2119_v62 = vpop.permute.xlu1 %2118  ;;  %v2186_v19 = vadd.f32 %v2181_v36, %v2164_v12 }
 0x287   : > { %v2123_v9 = vadd.f32 %v2119_v62, %v2103_v26  ;;  %v2678_v26 = vld [vmem:[%s2971_s25 + $0x28] sm:$0xff] }
 0x289   : > { %v2201_v27 = vpop.permute.xlu0 %2200 }
 0x28a   : > { %v2141_v0 = vpop.permute.xlu1 %2140  ;;  %v2206_v34 = vadd.f32 %v2201_v27, %v2186_v19 }
 0x28b   : > { %v2145_v53 = vadd.f32 %v2141_v0, %v2123_v9  ;;  %v2680_v9 = vld [vmem:[%s2971_s25 + $0x48] sm:$0xff] }
 0x28d   : > { %v2223_v24 = vpop.permute.xlu0 %2222 }
 0x28e   : > { %v2161_v21 = vpop.permute.xlu1 %2160  ;;  %v2228_v38 = vadd.f32 %v2223_v24, %v2206_v34 }
 0x28f   : > { %v2165_v45 = vadd.f32 %v2161_v21, %v2145_v53  ;;  %v2674_v21 = vld [vmem:[%s2971_s25 + $0xe0] sm:$0xff]  ;;  %v2681_v53 = vld [vmem:[%s2971_s25 + $0x58] sm:$0xff] }
 0x291   : > { %v2243_v11 = vpop.permute.xlu0 %2242 }
 0x292   : > { %v2183_v5 = vpop.permute.xlu1 %2182  ;;  %v2248_v49 = vadd.f32 %v2243_v11, %v2228_v38 }
 0x293   : > { %v2187_v17 = vadd.f32 %v2183_v5, %v2165_v45  ;;  %v2676_v5 = vld [vmem:[%s2971_s25 + $0x8] sm:$0xff]  ;;  %v2683_v45 = vld [vmem:[%s2971_s25 + $0x78] sm:$0xff] }
 0x295   : > { %v2265_v44 = vpop.permute.xlu0 %2264 }
 0x296   : > { %v2203_v58 = vpop.permute.xlu1 %2202  ;;  %v2270_v15 = vadd.f32 %v2265_v44, %v2248_v49 }
 0x297   : > { %v2207_v7 = vadd.f32 %v2203_v58, %v2187_v17  ;;  %v2679_v58 = vld [vmem:[%s2971_s25 + $0x38] sm:$0xff]  ;;  %v2684_v17 = vld [vmem:[%s2971_s25 + $0x88] sm:$0xff] }
 0x299   : > { %v2285_v39 = vpop.permute.xlu0 %2284 }
 0x29a   : > { %v2225_v3 = vpop.permute.xlu1 %2224  ;;  %v2290_v31 = vadd.f32 %v2285_v39, %v2270_v15 }
 0x29b   : > { %v2229_v40 = vadd.f32 %v2225_v3, %v2207_v7  ;;  %v2682_v3 = vld [vmem:[%s2971_s25 + $0x68] sm:$0xff]  ;;  %v2685_v7 = vld [vmem:[%s2971_s25 + $0x98] sm:$0xff] }
 0x29c   : > { %v2575_v47 = vmul.f32 -1.442695, %v2290_v31 }
 0x29e   : > { %v2245_v28 = vpop.permute.xlu1 %2244  ;;  %2652 = vpow2.f32 %v2575_v47 }
 0x29f   : > { %v2249_v41 = vadd.f32 %v2245_v28, %v2229_v40 }
 0x2a2   : > { %v2267_v1 = vpop.permute.xlu1 %2266 }
 0x2a3   : > { %v2271_v60 = vadd.f32 %v2267_v1, %v2249_v41  ;;  %v2686_v1 = vld [vmem:[%s2971_s25 + $0xa8] sm:$0xff] }
 0x2a6   : > { %v2287_v52 = vpop.permute.xlu1 %2286 }
 0x2a7   : > { %v2291_v14 = vadd.f32 %v2287_v52, %v2271_v60  ;;  %v2687_v60 = vld [vmem:[%s2971_s25 + $0xb8] sm:$0xff] }
 0x2a8   : > { %v2653_v59 = vpop.eup %2652 }
 0x2a9   : > { %v2576_v4 = vmul.f32 -1.442695, %v2291_v14  ;;  %v2298_v23 = vadd.f32 1.0, %v2653_v59  ;;  %v2688_v14 = vld [vmem:[%s2971_s25 + $0xc8] sm:$0xff] }
 0x2ab   : > { %2654 = vpow2.f32 %v2576_v4  ;;  %v2689_v4 = vld [vmem:[%s2971_s25 + $0xd8] sm:$0xff] }
 0x2ac   : > { %2656 = vrcp.f32 %v2298_v23 }
 0x2b5   : > { %v2655_v30 = vpop.eup %2654 }
 0x2b6   : > { %v2657_v50 = vpop.eup %2656  ;;  %v2299_v51 = vadd.f32 1.0, %v2655_v30  ;;  %v2690_v30 = vld [vmem:[%s2971_s25 + $0xe8] sm:$0xff] }
 0x2b7   : > { %v2304_v20 = vmul.f32 %v2660_v10, %v2657_v50  ;;  %v2306_v37 = vmul.f32 %v2661_v6, %v2657_v50  ;;  %v2308_v46 = vmul.f32 %v2662_v29, %v2657_v50  ;;  %v2310_v35 = vmul.f32 %v2663_v16, %v2657_v50 }
 0x2b8   : > { %2658 = vrcp.f32 %v2299_v51  ;;  %v2312_v22 = vmul.f32 %v2664_v13, %v2657_v50  ;;  %v2314_v25 = vmul.f32 %v2665_v63, %v2657_v50  ;;  %v2316_v43 = vmul.f32 %v2666_v55, %v2657_v50  ;;  %v2691_v51 = vld [vmem:[%s2971_s25 + $0xf8] sm:$0xff]  ;;  %s2737_s25 = scalar_lea.vmem %s4765_s16, 4096 }
 0x2b9   : > { %v2318_v2 = vmul.f32 %v2667_v57, %v2657_v50  ;;  %v2320_v8 = vmul.f32 %v2668_v54, %v2657_v50  ;;  %v2322_v36 = vmul.f32 %v2669_v33, %v2657_v50  ;;  %v2324_v62 = vmul.f32 %v2670_v18, %v2657_v50  ;;  %2336 = vst.msk [vmem:[%s4695_s23] sm:$0xff] %vm208_vm0, %v2304_v20  ;;  %p2738_p5 = scmp.ne.s32.totalorder %s4765_s16, %s2737_s25  ;;  %p2745_p1 = scmp.lt.s32.totalorder %s2743_s5, %s2737_s25 }
 0x2ba   : > { %2338 = vst.msk [vmem:[%s4695_s23 + $0x10] sm:$0xff] %vm208_vm0, %v2306_v37  ;;  %2340 = vst.msk [vmem:[%s4695_s23 + $0x20] sm:$0xff] %vm208_vm0, %v2308_v46  ;;  %v2326_v27 = vmul.f32 %v2671_v48, %v2657_v50  ;;  %v2328_v0 = vmul.f32 %v2672_v61, %v2657_v50  ;;  %v2330_v24 = vmul.f32 %v2673_v32, %v2657_v50 }
 0x2bb   : > { %2342 = vst.msk [vmem:[%s4695_s23 + $0x30] sm:$0xff] %vm208_vm0, %v2310_v35  ;;  %v2332_v12 = vmul.f32 %v2674_v21, %v2657_v50  ;;  %2344 = vst.msk [vmem:[%s4695_s23 + $0x40] sm:$0xff] %vm208_vm0, %v2312_v22  ;;  %v2334_v19 = vmul.f32 %v2675_v42, %v2657_v50  ;;  %p2739_p8 = pnand %p2738_p5, %p4889_p12  ;;  %p2746_p4 = por %p2745_p1, %p2744_p10 }
 0x2bc   : > { %2346 = vst.msk [vmem:[%s4695_s23 + $0x50] sm:$0xff] %vm208_vm0, %v2314_v25  ;;  %2348 = vst.msk [vmem:[%s4695_s23 + $0x60] sm:$0xff] %vm208_vm0, %v2316_v43 }
 0x2bd   : > { %2350 = vst.msk [vmem:[%s4695_s23 + $0x70] sm:$0xff] %vm208_vm0, %v2318_v2  ;;  %2352 = vst.msk [vmem:[%s4695_s23 + $0x80] sm:$0xff] %vm208_vm0, %v2320_v8  ;;  %p2740_p9 = pneg %p2739_p8 }
 0x2be   : > { %2354 = vst.msk [vmem:[%s4695_s23 + $0x90] sm:$0xff] %vm208_vm0, %v2322_v36  ;;  %2356 = vst.msk [vmem:[%s4695_s23 + $0xa0] sm:$0xff] %vm208_vm0, %v2324_v62 }
 0x2bf   : > { %2358 = vst.msk [vmem:[%s4695_s23 + $0xb0] sm:$0xff] %vm208_vm0, %v2326_v27  ;;  %2360 = vst.msk [vmem:[%s4695_s23 + $0xc0] sm:$0xff] %vm208_vm0, %v2328_v0  ;;  %p2747_p11 = pnand %p2746_p4, %p2740_p9 }
 0x2c0   : > { %2362 = vst.msk [vmem:[%s4695_s23 + $0xd0] sm:$0xff] %vm208_vm0, %v2330_v24  ;;  %2364 = vst.msk [vmem:[%s4695_s23 + $0xe0] sm:$0xff] %vm208_vm0, %v2332_v12 }
 0x2c1   : > { %2366 = vst.msk [vmem:[%s4695_s23 + $0xf0] sm:$0xff] %vm208_vm0, %v2334_v19 }
 0x2c2   : > { %v2659_v11 = vpop.eup %2658 }
 0x2c3   : > { %v2305_v34 = vmul.f32 %v2676_v5, %v2659_v11  ;;  %v2307_v38 = vmul.f32 %v2677_v56, %v2659_v11  ;;  %v2309_v44 = vmul.f32 %v2678_v26, %v2659_v11  ;;  %v2311_v49 = vmul.f32 %v2679_v58, %v2659_v11 }
 0x2c4   : > { %v2313_v15 = vmul.f32 %v2680_v9, %v2659_v11  ;;  %v2315_v39 = vmul.f32 %v2681_v53, %v2659_v11  ;;  %v2317_v31 = vmul.f32 %v2682_v3, %v2659_v11  ;;  %v2319_v47 = vmul.f32 %v2683_v45, %v2659_v11 }
 0x2c5   : > { %v2321_v28 = vmul.f32 %v2684_v17, %v2659_v11  ;;  %v2323_v40 = vmul.f32 %v2685_v7, %v2659_v11  ;;  %v2325_v41 = vmul.f32 %v2686_v1, %v2659_v11  ;;  %v2327_v52 = vmul.f32 %v2687_v60, %v2659_v11  ;;  %2337 = vst.msk [vmem:[%s4695_s23 + $0x8] sm:$0xff] %vm208_vm0, %v2305_v34 }
 0x2c6   : > { %2339 = vst.msk [vmem:[%s4695_s23 + $0x18] sm:$0xff] %vm208_vm0, %v2307_v38  ;;  %2341 = vst.msk [vmem:[%s4695_s23 + $0x28] sm:$0xff] %vm208_vm0, %v2309_v44  ;;  %v2329_v59 = vmul.f32 %v2688_v14, %v2659_v11  ;;  %v2331_v23 = vmul.f32 %v2689_v4, %v2659_v11  ;;  %v2333_v50 = vmul.f32 %v2690_v30, %v2659_v11 }
 0x2c7   : > { %2343 = vst.msk [vmem:[%s4695_s23 + $0x38] sm:$0xff] %vm208_vm0, %v2311_v49  ;;  %v2335_v10 = vmul.f32 %v2691_v51, %v2659_v11  ;;  %2345 = vst.msk [vmem:[%s4695_s23 + $0x48] sm:$0xff] %vm208_vm0, %v2313_v15 }
 0x2c8   : > { %2347 = vst.msk [vmem:[%s4695_s23 + $0x58] sm:$0xff] %vm208_vm0, %v2315_v39  ;;  %2349 = vst.msk [vmem:[%s4695_s23 + $0x68] sm:$0xff] %vm208_vm0, %v2317_v31 }
 0x2c9   : > { %2351 = vst.msk [vmem:[%s4695_s23 + $0x78] sm:$0xff] %vm208_vm0, %v2319_v47  ;;  %2353 = vst.msk [vmem:[%s4695_s23 + $0x88] sm:$0xff] %vm208_vm0, %v2321_v28 }
 0x2ca   : > { %2355 = vst.msk [vmem:[%s4695_s23 + $0x98] sm:$0xff] %vm208_vm0, %v2323_v40  ;;  %2357 = vst.msk [vmem:[%s4695_s23 + $0xa8] sm:$0xff] %vm208_vm0, %v2325_v41 }
 0x2cb   : > { %2359 = vst.msk [vmem:[%s4695_s23 + $0xb8] sm:$0xff] %vm208_vm0, %v2327_v52  ;;  %2361 = vst.msk [vmem:[%s4695_s23 + $0xc8] sm:$0xff] %vm208_vm0, %v2329_v59 }
 0x2cc   : > { %2363 = vst.msk [vmem:[%s4695_s23 + $0xd8] sm:$0xff] %vm208_vm0, %v2331_v23  ;;  %2365 = vst.msk [vmem:[%s4695_s23 + $0xe8] sm:$0xff] %vm208_vm0, %v2333_v50 }
 0x2cd   : > { %2367 = vst.msk [vmem:[%s4695_s23 + $0xf8] sm:$0xff] %vm208_vm0, %v2335_v10 }
 0x2ce   : > { %2750 = shalt.err (!%p2747_p11)
}
 0x2cf   : > { %s2751_s8 = scalar_lea.hbm %s4761_s28, 4096  ;;  %s2755_s7 = scalar_lea.hbm %s4839_s2, 8192 }
 0x2d0   : > { %p2752_p0 = scmp.ne.s32.totalorder %s4761_s28, %s2751_s8  ;;  %p2756_p6 = scmp.lt.u32.totalorder %s4761_s28, %s4839_s2 }
 0x2d1   : > { %p2757_p3 = scmp.lt.u32.totalorder %s2755_s7, %s2751_s8  ;;  %p2759_p5 = scmp.lt.u32.totalorder %s2751_s8, %s4761_s28 }
 0x2d2   : > { %p2753_p2 = pnand %p2752_p0, %p4889_p12 }
 0x2d3   : > { %p2758_p13 = por %p2757_p3, %p2756_p6 }
 0x2d4   : > { %p2754_p7 = pneg %p2753_p2 }
 0x2d5   : > { %p2760_p8 = por %p2759_p5, %p2758_p13 }
 0x2d7   : > { %p2761_p9 = pnand %p2760_p8, %p2754_p7 }
 0x2d9   : > { %2764 = shalt.err (!%p2761_p9)
}
 0x2da   : > { %s2821_s6 = smov 128   ;;  %s2822_s24 = smov 8  }
 0x2db   : > { %2590 = dma.vmem_to_hbm [thread:$0]  (%p4889_p12), %s4765_s16, 4096, %s4761_s28, %s2369_s13, %s2821_s6, %s2821_s6, %s2822_s24  }
 0x2dc PF: > { %s2397_s23 = sand.u32 1, %s2795_s9   ;;  %p4890_p10 = scmp.ne.s32.totalorder %s4853_s22, 0 }
 0x2dd   : > { %p4891_p1 = scmp.ge.s32.totalorder %s2807_s12, 2  ;;  %s2398_s19 = scalar_lea.sflag [#allocation4], %s2397_s23 }
 0x2df   : > { %p2601_p4 = pnand %p4891_p1, %p4890_p10 }
 0x2e1   : > { %2790 = dma.done.wait (!%p2601_p4), %s2398_s19, 4096  }
 0x2e2   : > { %2792 = vsyncadd (!%p2601_p4), %s2398_s19, 4294963200  ;;  %p16_p11 = scmp.ge.s32.totalorder %s2863_s15, 4   ;;  %s4892_s9 = smov %s2799_s10 }
 0x2e3   : > { %s4893_s10 = smov %s2803_s11  ;;  %s4894_s11 = smov %s2875_s18 }
 0x2e4   : > { %s4895_s12 = smov %s2863_s15  ;;  %18 = sbr.rel (!%p16_p11) target bundleno = 6 (0x6), region = 78 }
 0x2eb   :  { %2403 = vsyncpa [#allocation3], 1 }
 0x2ec   :  { %2405 = vsyncpa [#allocation3 + $0x1], 1 }
 0x2ed   :  { %2406 = vsyncpa [#allocation4], 1 }
 0x2ee   :  { %2408 = vsyncpa [#allocation4 + $0x1], 1 }
 0x2ef   :  { %2409 = vsyncpa [#allocation5], 1 }
 0x2f0   :  { %2411 = vsyncpa [#allocation5 + $0x1], 1 }

</bundles_post_ra>
